<compile_context>
chip_gen: v7x
topology: tpu7x:2x2x1
jax: 0.10.0
libtpu: 0.0.40
codegen_flags: <defaults>
</compile_context>

<pallas_src>
import jax
import jax.numpy as jnp
from jax import lax
from jax.experimental import pallas as pl
from jax.experimental.pallas import tpu as pltpu


# ----------------------------------------------------------------------------
# Kernel
# ----------------------------------------------------------------------------
def _gru_kernel(x_ref, w_ih_ref, w_hh_ref, b_x_ref, b_hn_ref,
                w_fc_ref, b_fc_ref, out_ref, h_sc, gi_sc):
    """One (batch_block, pipeline_step) grid step of the GRU + final Linear.

    Refs (VMEM):
      x_ref:    (Tc, Bb, I)      time-major streamed input block (bf16)
      w_ih_ref: (I, 3*Hp)        fused gate-padded input->hidden weights (bf16)
      w_hh_ref: (Hp, 3*Hp)       fused gate-padded hidden->hidden weights (bf16)
      b_x_ref:  (1, 3*Hp)        folded biases: (b_ir+b_hr | b_iz+b_hz | b_in)
      b_hn_ref: (1, Hp)          b_hn (stays with the h-projection term)
      w_fc_ref: (Hp, O_pad)      fc weight, lane-dense zero-padded (bf16)
      b_fc_ref: (1, O_pad)
      out_ref:  (Bb, O_pad)
      h_sc:     (Bb, Hp)         hidden state, persists across time chunks
      gi_sc:    (2*Tc, Bb, 3*Hp) two-slot hoisted projection (software pipeline)
    """
    c = pl.program_id(1)
    n_chunks = pl.num_programs(1) - 1          # last grid step is the flush step
    Tc, Bb, I = x_ref.shape
    Hp, GH = w_hh_ref.shape
    f32 = jnp.float32

    @pl.when(c == 0)
    def _init():
        h_sc[...] = jnp.zeros_like(h_sc)

    # -- Stage A: project chunk c one step ahead of its recurrence (MXU bulk) --
    @pl.when(c < n_chunks)
    def _project():
        slot = c % 2
        x2d = x_ref[...].reshape(Tc * Bb, I)                 # layout no-op (time-major)
        gi = jnp.dot(x2d, w_ih_ref[...],
                     preferred_element_type=f32) + b_x_ref[...]
        start = pl.multiple_of(slot * Tc, Tc)
        gi_sc[pl.ds(start, Tc)] = gi.reshape(Tc, Bb, GH)

    # -- Stage B: serial recurrence over chunk c-1 from the other slot ---------
    @pl.when(c > 0)
    def _recur():
        base = ((c + 1) % 2) * Tc                            # slot of chunk c-1

        def step(t, h):
            gi = gi_sc[base + t]                             # (Bb, GH) contiguous slab
            gh = jnp.dot(h.astype(jnp.bfloat16), w_hh_ref[...],
                         preferred_element_type=f32)         # fused r|z|n matmul
            r = jax.nn.sigmoid(gi[:, :Hp] + gh[:, :Hp])
            z = jax.nn.sigmoid(gi[:, Hp:2 * Hp] + gh[:, Hp:2 * Hp])
            n = jnp.tanh(gi[:, 2 * Hp:] + r * (gh[:, 2 * Hp:] + b_hn_ref[...]))
            return n + z * (h - n)                           # == (1-z)*n + z*h

        h = lax.fori_loop(0, Tc, step, h_sc[...], unroll=min(8, Tc))
        h_sc[...] = h

        # -- final Linear on the last hidden state (lane-dense padded store) ---
        # TODO(synk): nn.Dropout(0.2) is identity in eval/inference mode; omitted.
        @pl.when(c == n_chunks)
        def _finalize():
            out_ref[...] = (jnp.dot(h.astype(jnp.bfloat16), w_fc_ref[...],
                                    preferred_element_type=f32) + b_fc_ref[...])


# ----------------------------------------------------------------------------
# Wrapper helpers
# ----------------------------------------------------------------------------
def _device_kind():
    try:
        return jax.devices()[0].device_kind.lower()
    except Exception:
        return ""


def _largest_divisor_leq(n, cap):
    cap = max(1, min(n, int(cap)))
    for d in range(cap, 0, -1):
        if n % d == 0:
            return d
    return n


def gru_model_forward(x, kp):
    """x: (B, T, I) batch_first, like the PyTorch module. Returns (B, O) f32."""
    B, T, I = x.shape
    Hp = int(kp["hidden_pad"])
    GH = 3 * Hp
    O = int(kp["output_size"])
    O_pad = kp["w_fc_p"].shape[1]

    kind = _device_kind()
    is_v7x = "v7" in kind

    # ---- chip-aware batch blocking (never split on 1-TC chips) ----------------
    if is_v7x and B > 1:
        half = (B + 1) // 2
        Bb = ((half + 7) // 8) * 8            # two sublane-aligned blocks (one per TC)
        B_pad = 2 * Bb
    else:
        Bb, B_pad = B, B

    # ---- VMEM budget -> time-chunk size and scoped limit -----------------------
    vmem_ceiling = (48 if is_v7x else 100) * 1024 * 1024
    weight_bytes = ((kp["w_ih_f"].size + kp["w_hh_f"].size + kp["w_fc_p"].size) * 2
                    + (kp["b_x"].size + kp["b_hn"].size + kp["b_fc_p"].size) * 4)
    fixed_bytes = 2 * weight_bytes + Bb * Hp * 4 + 2 * Bb * O_pad * 4 + (2 << 20)
    per_step_bytes = Bb * (2 * I * 2 + 2 * GH * 4)   # 2x bf16 x buffers + 2-slot f32 gi
    avail = max(vmem_ceiling - fixed_bytes, per_step_bytes)
    Tc = _largest_divisor_leq(T, avail // per_step_bytes)
    n_chunks = T // Tc

    # ---- time-major, bf16, batch-padded input ----------------------------------
    # One wrapper-side relayout of x keeps every in-kernel reshape a layout no-op
    # and makes each per-timestep gi read a contiguous (Bb, 3*Hp) slab.
    x_t = jnp.transpose(x, (1, 0, 2)).astype(jnp.bfloat16)     # (T, B, I)
    if B_pad != B:
        x_t = jnp.pad(x_t, ((0, 0), (0, B_pad - B), (0, 0)))

    grid = (B_pad // Bb, n_chunks + 1)                          # +1 pipeline flush step

    def _const_spec(shape, single_buffer):
        idx = lambda b, c: (0,) * len(shape)
        if single_buffer:
            # Resident weights: one VMEM copy instead of the default double buffer.
            return pl.BlockSpec(shape, idx, pipeline_mode=pl.Buffered(1))
        return pl.BlockSpec(shape, idx)

    def _run(single_buffer):
        grid_spec = pltpu.PrefetchScalarGridSpec(
            num_scalar_prefetch=0,
            grid=grid,
            in_specs=[
                # x: streamed one (Tc, Bb, I) block per step; clamp on the flush step.
                pl.BlockSpec((Tc, Bb, I),
                             lambda b, c: (jnp.minimum(c, n_chunks - 1), b, 0)),
                _const_spec((I, GH), single_buffer),
                _const_spec((Hp, GH), single_buffer),
                _const_spec((1, GH), single_buffer),
                _const_spec((1, Hp), single_buffer),
                _const_spec((Hp, O_pad), single_buffer),
                _const_spec((1, O_pad), single_buffer),
            ],
            out_specs=pl.BlockSpec((Bb, O_pad), lambda b, c: (b, 0)),
            scratch_shapes=[
                pltpu.VMEM((Bb, Hp), jnp.float32),             # h (persists over chunks)
                pltpu.VMEM((2 * Tc, Bb, GH), jnp.float32),     # two-slot gi projections
            ],
        )
        return pl.pallas_call(
            _gru_kernel,
            out_shape=jax.ShapeDtypeStruct((B_pad, O_pad), jnp.float32),
            grid_spec=grid_spec,
            compiler_params=pltpu.CompilerParams(
                dimension_semantics=("parallel", "arbitrary"),
                vmem_limit_bytes=vmem_ceiling),
        )(x_t, kp["w_ih_f"], kp["w_hh_f"], kp["b_x"], kp["b_hn"],
          kp["w_fc_p"], kp["b_fc_p"])

    try:
        out_padded = _run(single_buffer=True)
        out_padded.block_until_ready()
    except Exception:
        # This Pallas build rejects pl.Buffered(1); fall back to default buffering.
        out_padded = _run(single_buffer=False)

    return out_padded[:B, :O]


# ----------------------------------------------------------------------------
# Parameters (PyTorch-layout init + kernel-layout repack)
# ----------------------------------------------------------------------------
def init_raw_params(key, input_size, hidden_size, output_size):
    """PyTorch-style init: GRU and Linear weights U(-1/sqrt(H), 1/sqrt(H))."""
    ks = jax.random.split(key, 6)
    kg = 1.0 / (hidden_size ** 0.5)
    return {
        "w_ih": jax.random.uniform(ks[0], (3 * hidden_size, input_size), jnp.float32, -kg, kg),
        "w_hh": jax.random.uniform(ks[1], (3 * hidden_size, hidden_size), jnp.float32, -kg, kg),
        "b_ih": jax.random.uniform(ks[2], (3 * hidden_size,), jnp.float32, -kg, kg),
        "b_hh": jax.random.uniform(ks[3], (3 * hidden_size,), jnp.float32, -kg, kg),
        "w_fc": jax.random.uniform(ks[4], (output_size, hidden_size), jnp.float32, -kg, kg),
        "b_fc": jax.random.uniform(ks[5], (output_size,), jnp.float32, -kg, kg),
    }


def make_kernel_params(raw, input_size, hidden_size, output_size):
    """Repack PyTorch-layout weights into fused, 128-lane-per-gate, bf16 layout."""
    I, H, O = input_size, hidden_size, output_size
    Hp = ((H + 127) // 128) * 128
    GH = 3 * Hp
    O_pad = ((O + 127) // 128) * 128

    w_ih = raw["w_ih"].reshape(3, H, I)     # gate order: r, z, n
    w_hh = raw["w_hh"].reshape(3, H, H)
    b_ih = raw["b_ih"].reshape(3, H)
    b_hh = raw["b_hh"].reshape(3, H)

    w_ih_f = jnp.zeros((I, GH), jnp.float32)
    w_hh_f = jnp.zeros((Hp, GH), jnp.float32)
    for g in range(3):
        w_ih_f = w_ih_f.at[:, g * Hp:g * Hp + H].set(w_ih[g].T)
        w_hh_f = w_hh_f.at[:H, g * Hp:g * Hp + H].set(w_hh[g].T)

    b_x = jnp.zeros((1, GH), jnp.float32)
    b_x = b_x.at[:, 0 * Hp:0 * Hp + H].set((b_ih[0] + b_hh[0])[None])   # r: b_ir+b_hr
    b_x = b_x.at[:, 1 * Hp:1 * Hp + H].set((b_ih[1] + b_hh[1])[None])   # z: b_iz+b_hz
    b_x = b_x.at[:, 2 * Hp:2 * Hp + H].set(b_ih[2][None])               # n: b_in only
    b_hn = jnp.zeros((1, Hp), jnp.float32).at[:, :H].set(b_hh[2][None])

    w_fc_p = jnp.zeros((Hp, O_pad), jnp.float32).at[:H, :O].set(raw["w_fc"].T)
    b_fc_p = jnp.zeros((1, O_pad), jnp.float32).at[:, :O].set(raw["b_fc"][None])

    return {
        "w_ih_f": w_ih_f.astype(jnp.bfloat16),
        "w_hh_f": w_hh_f.astype(jnp.bfloat16),
        "b_x": b_x, "b_hn": b_hn,
        "w_fc_p": w_fc_p.astype(jnp.bfloat16), "b_fc_p": b_fc_p,
        "hidden_pad": Hp, "output_size": O,
    }


# ----------------------------------------------------------------------------
# Pure-JAX reference of the PyTorch GRUModel.forward (eval mode)
# ----------------------------------------------------------------------------
def reference_forward(x, raw, hidden_size):
    H = hidden_size
    w_ih_t = raw["w_ih"].T
    w_hh_t = raw["w_hh"].T
    b_ih = raw["b_ih"].reshape(1, 3 * H)
    b_hh = raw["b_hh"].reshape(1, 3 * H)
    B = x.shape[0]

    def cell(h, x_t):
        gi = x_t @ w_ih_t + b_ih
        gh = h @ w_hh_t + b_hh
        r = jax.nn.sigmoid(gi[:, :H] + gh[:, :H])
        z = jax.nn.sigmoid(gi[:, H:2 * H] + gh[:, H:2 * H])
        n = jnp.tanh(gi[:, 2 * H:] + r * gh[:, 2 * H:])
        return (1.0 - z) * n + z * h, None

    h0 = jnp.zeros((B, H), jnp.float32)
    h_last, _ = lax.scan(cell, h0, jnp.transpose(x, (1, 0, 2)).astype(jnp.float32))
    return h_last @ raw["w_fc"].T + raw["b_fc"].reshape(1, -1)


# ----------------------------------------------------------------------------
if __name__ == "__main__":
    input_size, hidden_size, output_size = 16, 32, 4
    batch, seq = 2, 8

    key = jax.random.PRNGKey(0)
    kx, kparam = jax.random.split(key)
    x = jax.random.normal(kx, (batch, seq, input_size), jnp.float32)

    raw = init_raw_params(kparam, input_size, hidden_size, output_size)
    kp = make_kernel_params(raw, input_size, hidden_size, output_size)

    out = gru_model_forward(x, kp)
    out = jax.block_until_ready(out)

    ref = reference_forward(x, raw, hidden_size)
    assert out.shape == (batch, output_size)
    # bf16 MXU operands (f32 accumulation): tolerance relaxed vs. pure-f32 check.
    assert jnp.allclose(out, ref, atol=2e-2, rtol=2e-2), "mismatch vs reference"

    print("KERNEL_OK")
</pallas_src>

<mosaic_0001>
module attributes {stable_mosaic.version = 11 : i64} {
  func.func @_gru_kernel(%arg0: i32, %arg1: i32, %arg2: memref<8x2x16xbf16, #tpu.memory_space<vmem>>, %arg3: memref<16x384xbf16, #tpu.memory_space<vmem>>, %arg4: memref<128x384xbf16, #tpu.memory_space<vmem>>, %arg5: memref<1x384xf32, #tpu.memory_space<vmem>>, %arg6: memref<1x128xf32, #tpu.memory_space<vmem>>, %arg7: memref<128x128xbf16, #tpu.memory_space<vmem>>, %arg8: memref<1x128xf32, #tpu.memory_space<vmem>>, %arg9: memref<2x128xf32, #tpu.memory_space<vmem>>, %arg10: memref<2x128xf32, #tpu.memory_space<vmem>>, %arg11: memref<16x2x384xf32, #tpu.memory_space<vmem>>) attributes {dimension_semantics = [#tpu.dimension_semantics<parallel>, #tpu.dimension_semantics<arbitrary>], iteration_bounds = array<i64: 1, 2>, scalar_prefetch = 0 : i64, scratch_operands = 2 : i64, tpu.core_type = #tpu.core_type<tc>, window_params = [{transform_indices = @transform_0, window_bounds = array<i64: 8, 2, 16>}, {pipeline_mode = #tpu.pipeline_mode<synchronous>, transform_indices = @transform_1, window_bounds = array<i64: 16, 384>}, {pipeline_mode = #tpu.pipeline_mode<synchronous>, transform_indices = @transform_2, window_bounds = array<i64: 128, 384>}, {pipeline_mode = #tpu.pipeline_mode<synchronous>, transform_indices = @transform_3, window_bounds = array<i64: 1, 384>}, {pipeline_mode = #tpu.pipeline_mode<synchronous>, transform_indices = @transform_4, window_bounds = array<i64: 1, 128>}, {pipeline_mode = #tpu.pipeline_mode<synchronous>, transform_indices = @transform_5, window_bounds = array<i64: 128, 128>}, {pipeline_mode = #tpu.pipeline_mode<synchronous>, transform_indices = @transform_6, window_bounds = array<i64: 1, 128>}, {transform_indices = @transform_7, window_bounds = array<i64: 2, 128>}]} {
    %c0_i32 = arith.constant 0 : i32
    %0 = arith.cmpi eq, %arg1, %c0_i32 : i32
    %1 = arith.extui %0 : i1 to i32
    %c0_i32_0 = arith.constant 0 : i32
    %2 = arith.cmpi ne, %1, %c0_i32_0 : i32
    scf.if %2 {
      %cst = arith.constant 0.000000e+00 : f32
      %9 = vector.broadcast %cst : f32 to vector<2x128xf32>
      %c0 = arith.constant 0 : index
      %c0_4 = arith.constant 0 : index
      %10 = vector.load %arg10[%c0, %c0_4] : memref<2x128xf32, #tpu.memory_space<vmem>>, vector<2x128xf32>
      tpu.vector_store %arg10[%c0, %c0_4], %9 {strides = array<i32>} : memref<2x128xf32, #tpu.memory_space<vmem>>, vector<2x128xf32>,
    } else {
    }
    %c1_i32 = arith.constant 1 : i32
    %3 = arith.cmpi slt, %arg1, %c1_i32 : i32
    %4 = arith.extui %3 : i1 to i32
    %c0_i32_1 = arith.constant 0 : i32
    %5 = arith.cmpi ne, %4, %c0_i32_1 : i32
    scf.if %5 {
      %c2_i32 = arith.constant 2 : i32
      %c0_i32_4 = arith.constant 0 : i32
      %9 = arith.cmpi eq, %c2_i32, %c0_i32_4 : i32
      %c1_i32_5 = arith.constant 1 : i32
      %10 = arith.select %9, %c1_i32_5, %c2_i32 : i32
      %11 = arith.remsi %arg1, %10 : i32
      %c0_i32_6 = arith.constant 0 : i32
      %12 = arith.cmpi ne, %11, %c0_i32_6 : i32
      %c0_i32_7 = arith.constant 0 : i32
      %13 = arith.cmpi slt, %11, %c0_i32_7 : i32
      %c0_i32_8 = arith.constant 0 : i32
      %14 = arith.cmpi slt, %10, %c0_i32_8 : i32
      %15 = arith.xori %13, %14 : i1
      %16 = arith.andi %15, %12 : i1
      %17 = arith.addi %11, %10 : i32
      %18 = arith.select %16, %17, %11 : i32
      %c0 = arith.constant 0 : index
      %c0_9 = arith.constant 0 : index
      %c0_10 = arith.constant 0 : index
      %19 = vector.load %arg2[%c0, %c0_9, %c0_10] : memref<8x2x16xbf16, #tpu.memory_space<vmem>>, vector<8x2x16xbf16>
      %20 = vector.shape_cast %19 : vector<8x2x16xbf16> to vector<16x16xbf16>
      %c0_11 = arith.constant 0 : index
      %c0_12 = arith.constant 0 : index
      %21 = vector.load %arg3[%c0_11, %c0_12] : memref<16x384xbf16, #tpu.memory_space<vmem>>, vector<16x384xbf16>
      %cst = arith.constant dense<0.000000e+00> : vector<16x384xf32>
      %22 = tpu.matmul %20, %21, %cst {dimension_numbers = #tpu.dot_dimension_numbers<[1], [0], [0], [1], [0, 0, 1, 1], [], []>} : vector<16x16xbf16>, vector<16x384xbf16>, vector<16x384xf32> -> vector<16x384xf32>
      %c0_13 = arith.constant 0 : index
      %c0_14 = arith.constant 0 : index
      %23 = vector.load %arg5[%c0_13, %c0_14] : memref<1x384xf32, #tpu.memory_space<vmem>>, vector<1x384xf32>
      %24 = vector.broadcast %23 : vector<1x384xf32> to vector<16x384xf32>
      %25 = arith.addf %22, %24 : vector<16x384xf32>
      %c8_i32 = arith.constant 8 : i32
      %26 = arith.muli %18, %c8_i32 : i32
      %27 = tpu.assume_multiple %26, 8 : i32
      %28 = vector.shape_cast %25 : vector<16x384xf32> to vector<8x2x384xf32>
      %29 = arith.index_cast %27 : i32 to index
      %c0_15 = arith.constant 0 : index
      %c0_16 = arith.constant 0 : index
      %30 = vector.load %arg11[%29, %c0_15, %c0_16] : memref<16x2x384xf32, #tpu.memory_space<vmem>>, vector<8x2x384xf32>
      tpu.vector_store %arg11[%29, %c0_15, %c0_16], %28 {strides = array<i32>} : memref<16x2x384xf32, #tpu.memory_space<vmem>>, vector<8x2x384xf32>,
    } else {
    }
    %c0_i32_2 = arith.constant 0 : i32
    %6 = arith.cmpi sgt, %arg1, %c0_i32_2 : i32
    %7 = arith.extui %6 : i1 to i32
    %c0_i32_3 = arith.constant 0 : i32
    %8 = arith.cmpi ne, %7, %c0_i32_3 : i32
    scf.if %8 {
      %c1_i32_4 = arith.constant 1 : i32
      %9 = arith.addi %arg1, %c1_i32_4 : i32
      %c2_i32 = arith.constant 2 : i32
      %c0_i32_5 = arith.constant 0 : i32
      %10 = arith.cmpi eq, %c2_i32, %c0_i32_5 : i32
      %c1_i32_6 = arith.constant 1 : i32
      %11 = arith.select %10, %c1_i32_6, %c2_i32 : i32
      %12 = arith.remsi %9, %11 : i32
      %c0_i32_7 = arith.constant 0 : i32
      %13 = arith.cmpi ne, %12, %c0_i32_7 : i32
      %c0_i32_8 = arith.constant 0 : i32
      %14 = arith.cmpi slt, %12, %c0_i32_8 : i32
      %c0_i32_9 = arith.constant 0 : i32
      %15 = arith.cmpi slt, %11, %c0_i32_9 : i32
      %16 = arith.xori %14, %15 : i1
      %17 = arith.andi %16, %13 : i1
      %18 = arith.addi %12, %11 : i32
      %19 = arith.select %17, %18, %12 : i32
      %c8_i32 = arith.constant 8 : i32
      %20 = arith.muli %19, %c8_i32 : i32
      %c0 = arith.constant 0 : index
      %c0_10 = arith.constant 0 : index
      %21 = vector.load %arg10[%c0, %c0_10] : memref<2x128xf32, #tpu.memory_space<vmem>>, vector<2x128xf32>
      %c0_i32_11 = arith.constant 0 : i32
      %22 = arith.addi %20, %c0_i32_11 : i32
      %23 = arith.index_cast %22 : i32 to index
      %c0_12 = arith.constant 0 : index
      %c0_13 = arith.constant 0 : index
      %24 = vector.load %arg11[%23, %c0_12, %c0_13] : memref<16x2x384xf32, #tpu.memory_space<vmem>>, vector<1x2x384xf32>
      %25 = vector.shape_cast %24 : vector<1x2x384xf32> to vector<2x384xf32>
      %26 = arith.truncf %21 : vector<2x128xf32> to vector<2x128xbf16>
      %c0_14 = arith.constant 0 : index
      %c0_15 = arith.constant 0 : index
      %27 = vector.load %arg4[%c0_14, %c0_15] : memref<128x384xbf16, #tpu.memory_space<vmem>>, vector<128x384xbf16>
      %cst = arith.constant dense<0.000000e+00> : vector<2x384xf32>
      %28 = tpu.matmul %26, %27, %cst {dimension_numbers = #tpu.dot_dimension_numbers<[1], [0], [0], [1], [0, 0, 1, 1], [], []>} : vector<2x128xbf16>, vector<128x384xbf16>, vector<2x384xf32> -> vector<2x384xf32>
      %29 = vector.extract_strided_slice %25 {offsets = [0, 0], sizes = [2, 128], strides = [1, 1]} : vector<2x384xf32> to vector<2x128xf32>
      %30 = vector.extract_strided_slice %28 {offsets = [0, 0], sizes = [2, 128], strides = [1, 1]} : vector<2x384xf32> to vector<2x128xf32>
      %31 = arith.addf %29, %30 : vector<2x128xf32>
      %32 = arith.negf %31 : vector<2x128xf32>
      %33 = math.exp %32 : vector<2x128xf32>
      %cst_16 = arith.constant 1.000000e+00 : f32
      %34 = vector.broadcast %cst_16 : f32 to vector<2x128xf32>
      %35 = arith.addf %34, %33 : vector<2x128xf32>
      %36 = arith.divf %34, %35 : vector<2x128xf32>
      %37 = vector.extract_strided_slice %25 {offsets = [0, 128], sizes = [2, 128], strides = [1, 1]} : vector<2x384xf32> to vector<2x128xf32>
      %38 = vector.extract_strided_slice %28 {offsets = [0, 128], sizes = [2, 128], strides = [1, 1]} : vector<2x384xf32> to vector<2x128xf32>
      %39 = arith.addf %37, %38 : vector<2x128xf32>
      %40 = arith.negf %39 : vector<2x128xf32>
      %41 = math.exp %40 : vector<2x128xf32>
      %cst_17 = arith.constant 1.000000e+00 : f32
      %42 = vector.broadcast %cst_17 : f32 to vector<2x128xf32>
      %43 = arith.addf %42, %41 : vector<2x128xf32>
      %44 = arith.divf %42, %43 : vector<2x128xf32>
      %45 = vector.extract_strided_slice %25 {offsets = [0, 256], sizes = [2, 128], strides = [1, 1]} : vector<2x384xf32> to vector<2x128xf32>
      %46 = vector.extract_strided_slice %28 {offsets = [0, 256], sizes = [2, 128], strides = [1, 1]} : vector<2x384xf32> to vector<2x128xf32>
      %c0_18 = arith.constant 0 : index
      %c0_19 = arith.constant 0 : index
      %47 = vector.load %arg6[%c0_18, %c0_19] : memref<1x128xf32, #tpu.memory_space<vmem>>, vector<1x128xf32>
      %48 = vector.broadcast %47 : vector<1x128xf32> to vector<2x128xf32>
      %49 = arith.addf %46, %48 : vector<2x128xf32>
      %50 = arith.mulf %36, %49 : vector<2x128xf32>
      %51 = arith.addf %45, %50 : vector<2x128xf32>
      %52 = math.tanh %51 : vector<2x128xf32>
      %53 = arith.subf %21, %52 : vector<2x128xf32>
      %54 = arith.mulf %44, %53 : vector<2x128xf32>
      %55 = arith.addf %52, %54 : vector<2x128xf32>
      %c1_i32_20 = arith.constant 1 : i32
      %56 = arith.addi %20, %c1_i32_20 : i32
      %57 = arith.index_cast %56 : i32 to index
      %c0_21 = arith.constant 0 : index
      %c0_22 = arith.constant 0 : index
      %58 = vector.load %arg11[%57, %c0_21, %c0_22] : memref<16x2x384xf32, #tpu.memory_space<vmem>>, vector<1x2x384xf32>
      %59 = vector.shape_cast %58 : vector<1x2x384xf32> to vector<2x384xf32>
      %60 = arith.truncf %55 : vector<2x128xf32> to vector<2x128xbf16>
      %c0_23 = arith.constant 0 : index
      %c0_24 = arith.constant 0 : index
      %61 = vector.load %arg4[%c0_23, %c0_24] : memref<128x384xbf16, #tpu.memory_space<vmem>>, vector<128x384xbf16>
      %cst_25 = arith.constant dense<0.000000e+00> : vector<2x384xf32>
      %62 = tpu.matmul %60, %61, %cst_25 {dimension_numbers = #tpu.dot_dimension_numbers<[1], [0], [0], [1], [0, 0, 1, 1], [], []>} : vector<2x128xbf16>, vector<128x384xbf16>, vector<2x384xf32> -> vector<2x384xf32>
      %63 = vector.extract_strided_slice %59 {offsets = [0, 0], sizes = [2, 128], strides = [1, 1]} : vector<2x384xf32> to vector<2x128xf32>
      %64 = vector.extract_strided_slice %62 {offsets = [0, 0], sizes = [2, 128], strides = [1, 1]} : vector<2x384xf32> to vector<2x128xf32>
      %65 = arith.addf %63, %64 : vector<2x128xf32>
      %66 = arith.negf %65 : vector<2x128xf32>
      %67 = math.exp %66 : vector<2x128xf32>
      %cst_26 = arith.constant 1.000000e+00 : f32
      %68 = vector.broadcast %cst_26 : f32 to vector<2x128xf32>
      %69 = arith.addf %68, %67 : vector<2x128xf32>
      %70 = arith.divf %68, %69 : vector<2x128xf32>
      %71 = vector.extract_strided_slice %59 {offsets = [0, 128], sizes = [2, 128], strides = [1, 1]} : vector<2x384xf32> to vector<2x128xf32>
      %72 = vector.extract_strided_slice %62 {offsets = [0, 128], sizes = [2, 128], strides = [1, 1]} : vector<2x384xf32> to vector<2x128xf32>
      %73 = arith.addf %71, %72 : vector<2x128xf32>
      %74 = arith.negf %73 : vector<2x128xf32>
      %75 = math.exp %74 : vector<2x128xf32>
      %cst_27 = arith.constant 1.000000e+00 : f32
      %76 = vector.broadcast %cst_27 : f32 to vector<2x128xf32>
      %77 = arith.addf %76, %75 : vector<2x128xf32>
      %78 = arith.divf %76, %77 : vector<2x128xf32>
      %79 = vector.extract_strided_slice %59 {offsets = [0, 256], sizes = [2, 128], strides = [1, 1]} : vector<2x384xf32> to vector<2x128xf32>
      %80 = vector.extract_strided_slice %62 {offsets = [0, 256], sizes = [2, 128], strides = [1, 1]} : vector<2x384xf32> to vector<2x128xf32>
      %c0_28 = arith.constant 0 : index
      %c0_29 = arith.constant 0 : index
      %81 = vector.load %arg6[%c0_28, %c0_29] : memref<1x128xf32, #tpu.memory_space<vmem>>, vector<1x128xf32>
      %82 = vector.broadcast %81 : vector<1x128xf32> to vector<2x128xf32>
      %83 = arith.addf %80, %82 : vector<2x128xf32>
      %84 = arith.mulf %70, %83 : vector<2x128xf32>
      %85 = arith.addf %79, %84 : vector<2x128xf32>
      %86 = math.tanh %85 : vector<2x128xf32>
      %87 = arith.subf %55, %86 : vector<2x128xf32>
      %88 = arith.mulf %78, %87 : vector<2x128xf32>
      %89 = arith.addf %86, %88 : vector<2x128xf32>
      %c2_i32_30 = arith.constant 2 : i32
      %90 = arith.addi %20, %c2_i32_30 : i32
      %91 = arith.index_cast %90 : i32 to index
      %c0_31 = arith.constant 0 : index
      %c0_32 = arith.constant 0 : index
      %92 = vector.load %arg11[%91, %c0_31, %c0_32] : memref<16x2x384xf32, #tpu.memory_space<vmem>>, vector<1x2x384xf32>
      %93 = vector.shape_cast %92 : vector<1x2x384xf32> to vector<2x384xf32>
      %94 = arith.truncf %89 : vector<2x128xf32> to vector<2x128xbf16>
      %c0_33 = arith.constant 0 : index
      %c0_34 = arith.constant 0 : index
      %95 = vector.load %arg4[%c0_33, %c0_34] : memref<128x384xbf16, #tpu.memory_space<vmem>>, vector<128x384xbf16>
      %cst_35 = arith.constant dense<0.000000e+00> : vector<2x384xf32>
      %96 = tpu.matmul %94, %95, %cst_35 {dimension_numbers = #tpu.dot_dimension_numbers<[1], [0], [0], [1], [0, 0, 1, 1], [], []>} : vector<2x128xbf16>, vector<128x384xbf16>, vector<2x384xf32> -> vector<2x384xf32>
      %97 = vector.extract_strided_slice %93 {offsets = [0, 0], sizes = [2, 128], strides = [1, 1]} : vector<2x384xf32> to vector<2x128xf32>
      %98 = vector.extract_strided_slice %96 {offsets = [0, 0], sizes = [2, 128], strides = [1, 1]} : vector<2x384xf32> to vector<2x128xf32>
      %99 = arith.addf %97, %98 : vector<2x128xf32>
      %100 = arith.negf %99 : vector<2x128xf32>
      %101 = math.exp %100 : vector<2x128xf32>
      %cst_36 = arith.constant 1.000000e+00 : f32
      %102 = vector.broadcast %cst_36 : f32 to vector<2x128xf32>
      %103 = arith.addf %102, %101 : vector<2x128xf32>
      %104 = arith.divf %102, %103 : vector<2x128xf32>
      %105 = vector.extract_strided_slice %93 {offsets = [0, 128], sizes = [2, 128], strides = [1, 1]} : vector<2x384xf32> to vector<2x128xf32>
      %106 = vector.extract_strided_slice %96 {offsets = [0, 128], sizes = [2, 128], strides = [1, 1]} : vector<2x384xf32> to vector<2x128xf32>
      %107 = arith.addf %105, %106 : vector<2x128xf32>
      %108 = arith.negf %107 : vector<2x128xf32>
      %109 = math.exp %108 : vector<2x128xf32>
      %cst_37 = arith.constant 1.000000e+00 : f32
      %110 = vector.broadcast %cst_37 : f32 to vector<2x128xf32>
      %111 = arith.addf %110, %109 : vector<2x128xf32>
      %112 = arith.divf %110, %111 : vector<2x128xf32>
      %113 = vector.extract_strided_slice %93 {offsets = [0, 256], sizes = [2, 128], strides = [1, 1]} : vector<2x384xf32> to vector<2x128xf32>
      %114 = vector.extract_strided_slice %96 {offsets = [0, 256], sizes = [2, 128], strides = [1, 1]} : vector<2x384xf32> to vector<2x128xf32>
      %c0_38 = arith.constant 0 : index
      %c0_39 = arith.constant 0 : index
      %115 = vector.load %arg6[%c0_38, %c0_39] : memref<1x128xf32, #tpu.memory_space<vmem>>, vector<1x128xf32>
      %116 = vector.broadcast %115 : vector<1x128xf32> to vector<2x128xf32>
      %117 = arith.addf %114, %116 : vector<2x128xf32>
      %118 = arith.mulf %104, %117 : vector<2x128xf32>
      %119 = arith.addf %113, %118 : vector<2x128xf32>
      %120 = math.tanh %119 : vector<2x128xf32>
      %121 = arith.subf %89, %120 : vector<2x128xf32>
      %122 = arith.mulf %112, %121 : vector<2x128xf32>
      %123 = arith.addf %120, %122 : vector<2x128xf32>
      %c3_i32 = arith.constant 3 : i32
      %124 = arith.addi %20, %c3_i32 : i32
      %125 = arith.index_cast %124 : i32 to index
      %c0_40 = arith.constant 0 : index
      %c0_41 = arith.constant 0 : index
      %126 = vector.load %arg11[%125, %c0_40, %c0_41] : memref<16x2x384xf32, #tpu.memory_space<vmem>>, vector<1x2x384xf32>
      %127 = vector.shape_cast %126 : vector<1x2x384xf32> to vector<2x384xf32>
      %128 = arith.truncf %123 : vector<2x128xf32> to vector<2x128xbf16>
      %c0_42 = arith.constant 0 : index
      %c0_43 = arith.constant 0 : index
      %129 = vector.load %arg4[%c0_42, %c0_43] : memref<128x384xbf16, #tpu.memory_space<vmem>>, vector<128x384xbf16>
      %cst_44 = arith.constant dense<0.000000e+00> : vector<2x384xf32>
      %130 = tpu.matmul %128, %129, %cst_44 {dimension_numbers = #tpu.dot_dimension_numbers<[1], [0], [0], [1], [0, 0, 1, 1], [], []>} : vector<2x128xbf16>, vector<128x384xbf16>, vector<2x384xf32> -> vector<2x384xf32>
      %131 = vector.extract_strided_slice %127 {offsets = [0, 0], sizes = [2, 128], strides = [1, 1]} : vector<2x384xf32> to vector<2x128xf32>
      %132 = vector.extract_strided_slice %130 {offsets = [0, 0], sizes = [2, 128], strides = [1, 1]} : vector<2x384xf32> to vector<2x128xf32>
      %133 = arith.addf %131, %132 : vector<2x128xf32>
      %134 = arith.negf %133 : vector<2x128xf32>
      %135 = math.exp %134 : vector<2x128xf32>
      %cst_45 = arith.constant 1.000000e+00 : f32
      %136 = vector.broadcast %cst_45 : f32 to vector<2x128xf32>
      %137 = arith.addf %136, %135 : vector<2x128xf32>
      %138 = arith.divf %136, %137 : vector<2x128xf32>
      %139 = vector.extract_strided_slice %127 {offsets = [0, 128], sizes = [2, 128], strides = [1, 1]} : vector<2x384xf32> to vector<2x128xf32>
      %140 = vector.extract_strided_slice %130 {offsets = [0, 128], sizes = [2, 128], strides = [1, 1]} : vector<2x384xf32> to vector<2x128xf32>
      %141 = arith.addf %139, %140 : vector<2x128xf32>
      %142 = arith.negf %141 : vector<2x128xf32>
      %143 = math.exp %142 : vector<2x128xf32>
      %cst_46 = arith.constant 1.000000e+00 : f32
      %144 = vector.broadcast %cst_46 : f32 to vector<2x128xf32>
      %145 = arith.addf %144, %143 : vector<2x128xf32>
      %146 = arith.divf %144, %145 : vector<2x128xf32>
      %147 = vector.extract_strided_slice %127 {offsets = [0, 256], sizes = [2, 128], strides = [1, 1]} : vector<2x384xf32> to vector<2x128xf32>
      %148 = vector.extract_strided_slice %130 {offsets = [0, 256], sizes = [2, 128], strides = [1, 1]} : vector<2x384xf32> to vector<2x128xf32>
      %c0_47 = arith.constant 0 : index
      %c0_48 = arith.constant 0 : index
      %149 = vector.load %arg6[%c0_47, %c0_48] : memref<1x128xf32, #tpu.memory_space<vmem>>, vector<1x128xf32>
      %150 = vector.broadcast %149 : vector<1x128xf32> to vector<2x128xf32>
      %151 = arith.addf %148, %150 : vector<2x128xf32>
      %152 = arith.mulf %138, %151 : vector<2x128xf32>
      %153 = arith.addf %147, %152 : vector<2x128xf32>
      %154 = math.tanh %153 : vector<2x128xf32>
      %155 = arith.subf %123, %154 : vector<2x128xf32>
      %156 = arith.mulf %146, %155 : vector<2x128xf32>
      %157 = arith.addf %154, %156 : vector<2x128xf32>
      %c4_i32 = arith.constant 4 : i32
      %158 = arith.addi %20, %c4_i32 : i32
      %159 = arith.index_cast %158 : i32 to index
      %c0_49 = arith.constant 0 : index
      %c0_50 = arith.constant 0 : index
      %160 = vector.load %arg11[%159, %c0_49, %c0_50] : memref<16x2x384xf32, #tpu.memory_space<vmem>>, vector<1x2x384xf32>
      %161 = vector.shape_cast %160 : vector<1x2x384xf32> to vector<2x384xf32>
      %162 = arith.truncf %157 : vector<2x128xf32> to vector<2x128xbf16>
      %c0_51 = arith.constant 0 : index
      %c0_52 = arith.constant 0 : index
      %163 = vector.load %arg4[%c0_51, %c0_52] : memref<128x384xbf16, #tpu.memory_space<vmem>>, vector<128x384xbf16>
      %cst_53 = arith.constant dense<0.000000e+00> : vector<2x384xf32>
      %164 = tpu.matmul %162, %163, %cst_53 {dimension_numbers = #tpu.dot_dimension_numbers<[1], [0], [0], [1], [0, 0, 1, 1], [], []>} : vector<2x128xbf16>, vector<128x384xbf16>, vector<2x384xf32> -> vector<2x384xf32>
      %165 = vector.extract_strided_slice %161 {offsets = [0, 0], sizes = [2, 128], strides = [1, 1]} : vector<2x384xf32> to vector<2x128xf32>
      %166 = vector.extract_strided_slice %164 {offsets = [0, 0], sizes = [2, 128], strides = [1, 1]} : vector<2x384xf32> to vector<2x128xf32>
      %167 = arith.addf %165, %166 : vector<2x128xf32>
      %168 = arith.negf %167 : vector<2x128xf32>
      %169 = math.exp %168 : vector<2x128xf32>
      %cst_54 = arith.constant 1.000000e+00 : f32
      %170 = vector.broadcast %cst_54 : f32 to vector<2x128xf32>
      %171 = arith.addf %170, %169 : vector<2x128xf32>
      %172 = arith.divf %170, %171 : vector<2x128xf32>
      %173 = vector.extract_strided_slice %161 {offsets = [0, 128], sizes = [2, 128], strides = [1, 1]} : vector<2x384xf32> to vector<2x128xf32>
      %174 = vector.extract_strided_slice %164 {offsets = [0, 128], sizes = [2, 128], strides = [1, 1]} : vector<2x384xf32> to vector<2x128xf32>
      %175 = arith.addf %173, %174 : vector<2x128xf32>
      %176 = arith.negf %175 : vector<2x128xf32>
      %177 = math.exp %176 : vector<2x128xf32>
      %cst_55 = arith.constant 1.000000e+00 : f32
      %178 = vector.broadcast %cst_55 : f32 to vector<2x128xf32>
      %179 = arith.addf %178, %177 : vector<2x128xf32>
      %180 = arith.divf %178, %179 : vector<2x128xf32>
      %181 = vector.extract_strided_slice %161 {offsets = [0, 256], sizes = [2, 128], strides = [1, 1]} : vector<2x384xf32> to vector<2x128xf32>
      %182 = vector.extract_strided_slice %164 {offsets = [0, 256], sizes = [2, 128], strides = [1, 1]} : vector<2x384xf32> to vector<2x128xf32>
      %c0_56 = arith.constant 0 : index
      %c0_57 = arith.constant 0 : index
      %183 = vector.load %arg6[%c0_56, %c0_57] : memref<1x128xf32, #tpu.memory_space<vmem>>, vector<1x128xf32>
      %184 = vector.broadcast %183 : vector<1x128xf32> to vector<2x128xf32>
      %185 = arith.addf %182, %184 : vector<2x128xf32>
      %186 = arith.mulf %172, %185 : vector<2x128xf32>
      %187 = arith.addf %181, %186 : vector<2x128xf32>
      %188 = math.tanh %187 : vector<2x128xf32>
      %189 = arith.subf %157, %188 : vector<2x128xf32>
      %190 = arith.mulf %180, %189 : vector<2x128xf32>
      %191 = arith.addf %188, %190 : vector<2x128xf32>
      %c5_i32 = arith.constant 5 : i32
      %192 = arith.addi %20, %c5_i32 : i32
      %193 = arith.index_cast %192 : i32 to index
      %c0_58 = arith.constant 0 : index
      %c0_59 = arith.constant 0 : index
      %194 = vector.load %arg11[%193, %c0_58, %c0_59] : memref<16x2x384xf32, #tpu.memory_space<vmem>>, vector<1x2x384xf32>
      %195 = vector.shape_cast %194 : vector<1x2x384xf32> to vector<2x384xf32>
      %196 = arith.truncf %191 : vector<2x128xf32> to vector<2x128xbf16>
      %c0_60 = arith.constant 0 : index
      %c0_61 = arith.constant 0 : index
      %197 = vector.load %arg4[%c0_60, %c0_61] : memref<128x384xbf16, #tpu.memory_space<vmem>>, vector<128x384xbf16>
      %cst_62 = arith.constant dense<0.000000e+00> : vector<2x384xf32>
      %198 = tpu.matmul %196, %197, %cst_62 {dimension_numbers = #tpu.dot_dimension_numbers<[1], [0], [0], [1], [0, 0, 1, 1], [], []>} : vector<2x128xbf16>, vector<128x384xbf16>, vector<2x384xf32> -> vector<2x384xf32>
      %199 = vector.extract_strided_slice %195 {offsets = [0, 0], sizes = [2, 128], strides = [1, 1]} : vector<2x384xf32> to vector<2x128xf32>
      %200 = vector.extract_strided_slice %198 {offsets = [0, 0], sizes = [2, 128], strides = [1, 1]} : vector<2x384xf32> to vector<2x128xf32>
      %201 = arith.addf %199, %200 : vector<2x128xf32>
      %202 = arith.negf %201 : vector<2x128xf32>
      %203 = math.exp %202 : vector<2x128xf32>
      %cst_63 = arith.constant 1.000000e+00 : f32
      %204 = vector.broadcast %cst_63 : f32 to vector<2x128xf32>
      %205 = arith.addf %204, %203 : vector<2x128xf32>
      %206 = arith.divf %204, %205 : vector<2x128xf32>
      %207 = vector.extract_strided_slice %195 {offsets = [0, 128], sizes = [2, 128], strides = [1, 1]} : vector<2x384xf32> to vector<2x128xf32>
      %208 = vector.extract_strided_slice %198 {offsets = [0, 128], sizes = [2, 128], strides = [1, 1]} : vector<2x384xf32> to vector<2x128xf32>
      %209 = arith.addf %207, %208 : vector<2x128xf32>
      %210 = arith.negf %209 : vector<2x128xf32>
      %211 = math.exp %210 : vector<2x128xf32>
      %cst_64 = arith.constant 1.000000e+00 : f32
      %212 = vector.broadcast %cst_64 : f32 to vector<2x128xf32>
      %213 = arith.addf %212, %211 : vector<2x128xf32>
      %214 = arith.divf %212, %213 : vector<2x128xf32>
      %215 = vector.extract_strided_slice %195 {offsets = [0, 256], sizes = [2, 128], strides = [1, 1]} : vector<2x384xf32> to vector<2x128xf32>
      %216 = vector.extract_strided_slice %198 {offsets = [0, 256], sizes = [2, 128], strides = [1, 1]} : vector<2x384xf32> to vector<2x128xf32>
      %c0_65 = arith.constant 0 : index
      %c0_66 = arith.constant 0 : index
      %217 = vector.load %arg6[%c0_65, %c0_66] : memref<1x128xf32, #tpu.memory_space<vmem>>, vector<1x128xf32>
      %218 = vector.broadcast %217 : vector<1x128xf32> to vector<2x128xf32>
      %219 = arith.addf %216, %218 : vector<2x128xf32>
      %220 = arith.mulf %206, %219 : vector<2x128xf32>
      %221 = arith.addf %215, %220 : vector<2x128xf32>
      %222 = math.tanh %221 : vector<2x128xf32>
      %223 = arith.subf %191, %222 : vector<2x128xf32>
      %224 = arith.mulf %214, %223 : vector<2x128xf32>
      %225 = arith.addf %222, %224 : vector<2x128xf32>
      %c6_i32 = arith.constant 6 : i32
      %226 = arith.addi %20, %c6_i32 : i32
      %227 = arith.index_cast %226 : i32 to index
      %c0_67 = arith.constant 0 : index
      %c0_68 = arith.constant 0 : index
      %228 = vector.load %arg11[%227, %c0_67, %c0_68] : memref<16x2x384xf32, #tpu.memory_space<vmem>>, vector<1x2x384xf32>
      %229 = vector.shape_cast %228 : vector<1x2x384xf32> to vector<2x384xf32>
      %230 = arith.truncf %225 : vector<2x128xf32> to vector<2x128xbf16>
      %c0_69 = arith.constant 0 : index
      %c0_70 = arith.constant 0 : index
      %231 = vector.load %arg4[%c0_69, %c0_70] : memref<128x384xbf16, #tpu.memory_space<vmem>>, vector<128x384xbf16>
      %cst_71 = arith.constant dense<0.000000e+00> : vector<2x384xf32>
      %232 = tpu.matmul %230, %231, %cst_71 {dimension_numbers = #tpu.dot_dimension_numbers<[1], [0], [0], [1], [0, 0, 1, 1], [], []>} : vector<2x128xbf16>, vector<128x384xbf16>, vector<2x384xf32> -> vector<2x384xf32>
      %233 = vector.extract_strided_slice %229 {offsets = [0, 0], sizes = [2, 128], strides = [1, 1]} : vector<2x384xf32> to vector<2x128xf32>
      %234 = vector.extract_strided_slice %232 {offsets = [0, 0], sizes = [2, 128], strides = [1, 1]} : vector<2x384xf32> to vector<2x128xf32>
      %235 = arith.addf %233, %234 : vector<2x128xf32>
      %236 = arith.negf %235 : vector<2x128xf32>
      %237 = math.exp %236 : vector<2x128xf32>
      %cst_72 = arith.constant 1.000000e+00 : f32
      %238 = vector.broadcast %cst_72 : f32 to vector<2x128xf32>
      %239 = arith.addf %238, %237 : vector<2x128xf32>
      %240 = arith.divf %238, %239 : vector<2x128xf32>
      %241 = vector.extract_strided_slice %229 {offsets = [0, 128], sizes = [2, 128], strides = [1, 1]} : vector<2x384xf32> to vector<2x128xf32>
      %242 = vector.extract_strided_slice %232 {offsets = [0, 128], sizes = [2, 128], strides = [1, 1]} : vector<2x384xf32> to vector<2x128xf32>
      %243 = arith.addf %241, %242 : vector<2x128xf32>
      %244 = arith.negf %243 : vector<2x128xf32>
      %245 = math.exp %244 : vector<2x128xf32>
      %cst_73 = arith.constant 1.000000e+00 : f32
      %246 = vector.broadcast %cst_73 : f32 to vector<2x128xf32>
      %247 = arith.addf %246, %245 : vector<2x128xf32>
      %248 = arith.divf %246, %247 : vector<2x128xf32>
      %249 = vector.extract_strided_slice %229 {offsets = [0, 256], sizes = [2, 128], strides = [1, 1]} : vector<2x384xf32> to vector<2x128xf32>
      %250 = vector.extract_strided_slice %232 {offsets = [0, 256], sizes = [2, 128], strides = [1, 1]} : vector<2x384xf32> to vector<2x128xf32>
      %c0_74 = arith.constant 0 : index
      %c0_75 = arith.constant 0 : index
      %251 = vector.load %arg6[%c0_74, %c0_75] : memref<1x128xf32, #tpu.memory_space<vmem>>, vector<1x128xf32>
      %252 = vector.broadcast %251 : vector<1x128xf32> to vector<2x128xf32>
      %253 = arith.addf %250, %252 : vector<2x128xf32>
      %254 = arith.mulf %240, %253 : vector<2x128xf32>
      %255 = arith.addf %249, %254 : vector<2x128xf32>
      %256 = math.tanh %255 : vector<2x128xf32>
      %257 = arith.subf %225, %256 : vector<2x128xf32>
      %258 = arith.mulf %248, %257 : vector<2x128xf32>
      %259 = arith.addf %256, %258 : vector<2x128xf32>
      %c7_i32 = arith.constant 7 : i32
      %260 = arith.addi %20, %c7_i32 : i32
      %261 = arith.index_cast %260 : i32 to index
      %c0_76 = arith.constant 0 : index
      %c0_77 = arith.constant 0 : index
      %262 = vector.load %arg11[%261, %c0_76, %c0_77] : memref<16x2x384xf32, #tpu.memory_space<vmem>>, vector<1x2x384xf32>
      %263 = vector.shape_cast %262 : vector<1x2x384xf32> to vector<2x384xf32>
      %264 = arith.truncf %259 : vector<2x128xf32> to vector<2x128xbf16>
      %c0_78 = arith.constant 0 : index
      %c0_79 = arith.constant 0 : index
      %265 = vector.load %arg4[%c0_78, %c0_79] : memref<128x384xbf16, #tpu.memory_space<vmem>>, vector<128x384xbf16>
      %cst_80 = arith.constant dense<0.000000e+00> : vector<2x384xf32>
      %266 = tpu.matmul %264, %265, %cst_80 {dimension_numbers = #tpu.dot_dimension_numbers<[1], [0], [0], [1], [0, 0, 1, 1], [], []>} : vector<2x128xbf16>, vector<128x384xbf16>, vector<2x384xf32> -> vector<2x384xf32>
      %267 = vector.extract_strided_slice %263 {offsets = [0, 0], sizes = [2, 128], strides = [1, 1]} : vector<2x384xf32> to vector<2x128xf32>
      %268 = vector.extract_strided_slice %266 {offsets = [0, 0], sizes = [2, 128], strides = [1, 1]} : vector<2x384xf32> to vector<2x128xf32>
      %269 = arith.addf %267, %268 : vector<2x128xf32>
      %270 = arith.negf %269 : vector<2x128xf32>
      %271 = math.exp %270 : vector<2x128xf32>
      %cst_81 = arith.constant 1.000000e+00 : f32
      %272 = vector.broadcast %cst_81 : f32 to vector<2x128xf32>
      %273 = arith.addf %272, %271 : vector<2x128xf32>
      %274 = arith.divf %272, %273 : vector<2x128xf32>
      %275 = vector.extract_strided_slice %263 {offsets = [0, 128], sizes = [2, 128], strides = [1, 1]} : vector<2x384xf32> to vector<2x128xf32>
      %276 = vector.extract_strided_slice %266 {offsets = [0, 128], sizes = [2, 128], strides = [1, 1]} : vector<2x384xf32> to vector<2x128xf32>
      %277 = arith.addf %275, %276 : vector<2x128xf32>
      %278 = arith.negf %277 : vector<2x128xf32>
      %279 = math.exp %278 : vector<2x128xf32>
      %cst_82 = arith.constant 1.000000e+00 : f32
      %280 = vector.broadcast %cst_82 : f32 to vector<2x128xf32>
      %281 = arith.addf %280, %279 : vector<2x128xf32>
      %282 = arith.divf %280, %281 : vector<2x128xf32>
      %283 = vector.extract_strided_slice %263 {offsets = [0, 256], sizes = [2, 128], strides = [1, 1]} : vector<2x384xf32> to vector<2x128xf32>
      %284 = vector.extract_strided_slice %266 {offsets = [0, 256], sizes = [2, 128], strides = [1, 1]} : vector<2x384xf32> to vector<2x128xf32>
      %c0_83 = arith.constant 0 : index
      %c0_84 = arith.constant 0 : index
      %285 = vector.load %arg6[%c0_83, %c0_84] : memref<1x128xf32, #tpu.memory_space<vmem>>, vector<1x128xf32>
      %286 = vector.broadcast %285 : vector<1x128xf32> to vector<2x128xf32>
      %287 = arith.addf %284, %286 : vector<2x128xf32>
      %288 = arith.mulf %274, %287 : vector<2x128xf32>
      %289 = arith.addf %283, %288 : vector<2x128xf32>
      %290 = math.tanh %289 : vector<2x128xf32>
      %291 = arith.subf %259, %290 : vector<2x128xf32>
      %292 = arith.mulf %282, %291 : vector<2x128xf32>
      %293 = arith.addf %290, %292 : vector<2x128xf32>
      %c8_i32_85 = arith.constant 8 : i32
      %c0_86 = arith.constant 0 : index
      %c0_87 = arith.constant 0 : index
      %294 = vector.load %arg10[%c0_86, %c0_87] : memref<2x128xf32, #tpu.memory_space<vmem>>, vector<2x128xf32>
      tpu.vector_store %arg10[%c0_86, %c0_87], %293 {strides = array<i32>} : memref<2x128xf32, #tpu.memory_space<vmem>>, vector<2x128xf32>,
      %c1_i32_88 = arith.constant 1 : i32
      %295 = arith.cmpi eq, %arg1, %c1_i32_88 : i32
      %296 = arith.extui %295 : i1 to i32
      %c0_i32_89 = arith.constant 0 : i32
      %297 = arith.cmpi ne, %296, %c0_i32_89 : i32
      scf.if %297 {
        %298 = arith.truncf %293 : vector<2x128xf32> to vector<2x128xbf16>
        %c0_90 = arith.constant 0 : index
        %c0_91 = arith.constant 0 : index
        %299 = vector.load %arg7[%c0_90, %c0_91] : memref<128x128xbf16, #tpu.memory_space<vmem>>, vector<128x128xbf16>
        %cst_92 = arith.constant dense<0.000000e+00> : vector<2x128xf32>
        %300 = tpu.matmul %298, %299, %cst_92 {dimension_numbers = #tpu.dot_dimension_numbers<[1], [0], [0], [1], [0, 0, 1, 1], [], []>} : vector<2x128xbf16>, vector<128x128xbf16>, vector<2x128xf32> -> vector<2x128xf32>
        %c0_93 = arith.constant 0 : index
        %c0_94 = arith.constant 0 : index
        %301 = vector.load %arg8[%c0_93, %c0_94] : memref<1x128xf32, #tpu.memory_space<vmem>>, vector<1x128xf32>
        %302 = vector.broadcast %301 : vector<1x128xf32> to vector<2x128xf32>
        %303 = arith.addf %300, %302 : vector<2x128xf32>
        %c0_95 = arith.constant 0 : index
        %c0_96 = arith.constant 0 : index
        %304 = vector.load %arg9[%c0_95, %c0_96] : memref<2x128xf32, #tpu.memory_space<vmem>>, vector<2x128xf32>
        tpu.vector_store %arg9[%c0_95, %c0_96], %303 {strides = array<i32>} : memref<2x128xf32, #tpu.memory_space<vmem>>, vector<2x128xf32>,
      } else {
      }
    } else {
    }
    return
  }
  func.func @transform_0(%arg0: i32, %arg1: i32) -> (i32, i32, i32) {
    %c0_i32 = arith.constant 0 : i32
    %0 = arith.minsi %arg1, %c0_i32 : i32
    %c0_i32_0 = arith.constant 0 : i32
    %c0_i32_1 = arith.constant 0 : i32
    return %0, %arg0, %c0_i32_0 : i32, i32, i32
  }
  func.func @transform_1(%arg0: i32, %arg1: i32) -> (i32, i32) {
    %c0_i32 = arith.constant 0 : i32
    %c0_i32_0 = arith.constant 0 : i32
    %c0_i32_1 = arith.constant 0 : i32
    return %c0_i32, %c0_i32_0 : i32, i32
  }
  func.func @transform_2(%arg0: i32, %arg1: i32) -> (i32, i32) {
    %c0_i32 = arith.constant 0 : i32
    %c0_i32_0 = arith.constant 0 : i32
    %c0_i32_1 = arith.constant 0 : i32
    return %c0_i32, %c0_i32_0 : i32, i32
  }
  func.func @transform_3(%arg0: i32, %arg1: i32) -> (i32, i32) {
    %c0_i32 = arith.constant 0 : i32
    %c0_i32_0 = arith.constant 0 : i32
    %c0_i32_1 = arith.constant 0 : i32
    return %c0_i32, %c0_i32_0 : i32, i32
  }
  func.func @transform_4(%arg0: i32, %arg1: i32) -> (i32, i32) {
    %c0_i32 = arith.constant 0 : i32
    %c0_i32_0 = arith.constant 0 : i32
    %c0_i32_1 = arith.constant 0 : i32
    return %c0_i32, %c0_i32_0 : i32, i32
  }
  func.func @transform_5(%arg0: i32, %arg1: i32) -> (i32, i32) {
    %c0_i32 = arith.constant 0 : i32
    %c0_i32_0 = arith.constant 0 : i32
    %c0_i32_1 = arith.constant 0 : i32
    return %c0_i32, %c0_i32_0 : i32, i32
  }
  func.func @transform_6(%arg0: i32, %arg1: i32) -> (i32, i32) {
    %c0_i32 = arith.constant 0 : i32
    %c0_i32_0 = arith.constant 0 : i32
    %c0_i32_1 = arith.constant 0 : i32
    return %c0_i32, %c0_i32_0 : i32, i32
  }
  func.func @transform_7(%arg0: i32, %arg1: i32) -> (i32, i32) {
    %c0_i32 = arith.constant 0 : i32
    %c0_i32_0 = arith.constant 0 : i32
    return %arg0, %c0_i32 : i32, i32
  }
}

module attributes {stable_mosaic.version = 11 : i64} {
  func.func @_gru_kernel(%arg0: i32, %arg1: i32, %arg2: memref<8x2x16xbf16, #tpu.memory_space<vmem>>, %arg3: memref<16x384xbf16, #tpu.memory_space<vmem>>, %arg4: memref<128x384xbf16, #tpu.memory_space<vmem>>, %arg5: memref<1x384xf32, #tpu.memory_space<vmem>>, %arg6: memref<1x128xf32, #tpu.memory_space<vmem>>, %arg7: memref<128x128xbf16, #tpu.memory_space<vmem>>, %arg8: memref<1x128xf32, #tpu.memory_space<vmem>>, %arg9: memref<2x128xf32, #tpu.memory_space<vmem>>, %arg10: memref<2x128xf32, #tpu.memory_space<vmem>>, %arg11: memref<16x2x384xf32, #tpu.memory_space<vmem>>) attributes {dimension_semantics = [#tpu.dimension_semantics<parallel>, #tpu.dimension_semantics<arbitrary>], iteration_bounds = array<i64: 1, 2>, scalar_prefetch = 0 : i64, scratch_operands = 2 : i64, tpu.core_type = #tpu.core_type<tc>, window_params = [{transform_indices = @transform_0, window_bounds = array<i64: 8, 2, 16>}, {pipeline_mode = #tpu.pipeline_mode<synchronous>, transform_indices = @transform_1, window_bounds = array<i64: 16, 384>}, {pipeline_mode = #tpu.pipeline_mode<synchronous>, transform_indices = @transform_2, window_bounds = array<i64: 128, 384>}, {pipeline_mode = #tpu.pipeline_mode<synchronous>, transform_indices = @transform_3, window_bounds = array<i64: 1, 384>}, {pipeline_mode = #tpu.pipeline_mode<synchronous>, transform_indices = @transform_4, window_bounds = array<i64: 1, 128>}, {pipeline_mode = #tpu.pipeline_mode<synchronous>, transform_indices = @transform_5, window_bounds = array<i64: 128, 128>}, {pipeline_mode = #tpu.pipeline_mode<synchronous>, transform_indices = @transform_6, window_bounds = array<i64: 1, 128>}, {transform_indices = @transform_7, window_bounds = array<i64: 2, 128>}]} {
    %c0_i32 = arith.constant 0 : i32
    %0 = arith.cmpi eq, %arg1, %c0_i32 : i32
    %1 = arith.extui %0 : i1 to i32
    %c0_i32_0 = arith.constant 0 : i32
    %2 = arith.cmpi ne, %1, %c0_i32_0 : i32
    scf.if %2 {
      %cst = arith.constant 0.000000e+00 : f32
      %9 = vector.broadcast %cst : f32 to vector<2x128xf32>
      %c0 = arith.constant 0 : index
      %c0_4 = arith.constant 0 : index
      %10 = vector.load %arg10[%c0, %c0_4] : memref<2x128xf32, #tpu.memory_space<vmem>>, vector<2x128xf32>
      tpu.vector_store %arg10[%c0, %c0_4], %9 {strides = array<i32>} : memref<2x128xf32, #tpu.memory_space<vmem>>, vector<2x128xf32>,
    } else {
    }
    %c1_i32 = arith.constant 1 : i32
    %3 = arith.cmpi slt, %arg1, %c1_i32 : i32
    %4 = arith.extui %3 : i1 to i32
    %c0_i32_1 = arith.constant 0 : i32
    %5 = arith.cmpi ne, %4, %c0_i32_1 : i32
    scf.if %5 {
      %c2_i32 = arith.constant 2 : i32
      %c0_i32_4 = arith.constant 0 : i32
      %9 = arith.cmpi eq, %c2_i32, %c0_i32_4 : i32
      %c1_i32_5 = arith.constant 1 : i32
      %10 = arith.select %9, %c1_i32_5, %c2_i32 : i32
      %11 = arith.remsi %arg1, %10 : i32
      %c0_i32_6 = arith.constant 0 : i32
      %12 = arith.cmpi ne, %11, %c0_i32_6 : i32
      %c0_i32_7 = arith.constant 0 : i32
      %13 = arith.cmpi slt, %11, %c0_i32_7 : i32
      %c0_i32_8 = arith.constant 0 : i32
      %14 = arith.cmpi slt, %10, %c0_i32_8 : i32
      %15 = arith.xori %13, %14 : i1
      %16 = arith.andi %15, %12 : i1
      %17 = arith.addi %11, %10 : i32
      %18 = arith.select %16, %17, %11 : i32
      %c0 = arith.constant 0 : index
      %c0_9 = arith.constant 0 : index
      %c0_10 = arith.constant 0 : index
      %19 = vector.load %arg2[%c0, %c0_9, %c0_10] : memref<8x2x16xbf16, #tpu.memory_space<vmem>>, vector<8x2x16xbf16>
      %20 = vector.shape_cast %19 : vector<8x2x16xbf16> to vector<16x16xbf16>
      %c0_11 = arith.constant 0 : index
      %c0_12 = arith.constant 0 : index
      %21 = vector.load %arg3[%c0_11, %c0_12] : memref<16x384xbf16, #tpu.memory_space<vmem>>, vector<16x384xbf16>
      %cst = arith.constant dense<0.000000e+00> : vector<16x384xf32>
      %22 = tpu.matmul %20, %21, %cst {dimension_numbers = #tpu.dot_dimension_numbers<[1], [0], [0], [1], [0, 0, 1, 1], [], []>} : vector<16x16xbf16>, vector<16x384xbf16>, vector<16x384xf32> -> vector<16x384xf32>
      %c0_13 = arith.constant 0 : index
      %c0_14 = arith.constant 0 : index
      %23 = vector.load %arg5[%c0_13, %c0_14] : memref<1x384xf32, #tpu.memory_space<vmem>>, vector<1x384xf32>
      %24 = vector.broadcast %23 : vector<1x384xf32> to vector<16x384xf32>
      %25 = arith.addf %22, %24 : vector<16x384xf32>
      %c8_i32 = arith.constant 8 : i32
      %26 = arith.muli %18, %c8_i32 : i32
      %27 = tpu.assume_multiple %26, 8 : i32
      %28 = vector.shape_cast %25 : vector<16x384xf32> to vector<8x2x384xf32>
      %29 = arith.index_cast %27 : i32 to index
      %c0_15 = arith.constant 0 : index
      %c0_16 = arith.constant 0 : index
      %30 = vector.load %arg11[%29, %c0_15, %c0_16] : memref<16x2x384xf32, #tpu.memory_space<vmem>>, vector<8x2x384xf32>
      tpu.vector_store %arg11[%29, %c0_15, %c0_16], %28 {strides = array<i32>} : memref<16x2x384xf32, #tpu.memory_space<vmem>>, vector<8x2x384xf32>,
    } else {
    }
    %c0_i32_2 = arith.constant 0 : i32
    %6 = arith.cmpi sgt, %arg1, %c0_i32_2 : i32
    %7 = arith.extui %6 : i1 to i32
    %c0_i32_3 = arith.constant 0 : i32
    %8 = arith.cmpi ne, %7, %c0_i32_3 : i32
    scf.if %8 {
      %c1_i32_4 = arith.constant 1 : i32
      %9 = arith.addi %arg1, %c1_i32_4 : i32
      %c2_i32 = arith.constant 2 : i32
      %c0_i32_5 = arith.constant 0 : i32
      %10 = arith.cmpi eq, %c2_i32, %c0_i32_5 : i32
      %c1_i32_6 = arith.constant 1 : i32
      %11 = arith.select %10, %c1_i32_6, %c2_i32 : i32
      %12 = arith.remsi %9, %11 : i32
      %c0_i32_7 = arith.constant 0 : i32
      %13 = arith.cmpi ne, %12, %c0_i32_7 : i32
      %c0_i32_8 = arith.constant 0 : i32
      %14 = arith.cmpi slt, %12, %c0_i32_8 : i32
      %c0_i32_9 = arith.constant 0 : i32
      %15 = arith.cmpi slt, %11, %c0_i32_9 : i32
      %16 = arith.xori %14, %15 : i1
      %17 = arith.andi %16, %13 : i1
      %18 = arith.addi %12, %11 : i32
      %19 = arith.select %17, %18, %12 : i32
      %c8_i32 = arith.constant 8 : i32
      %20 = arith.muli %19, %c8_i32 : i32
      %c0 = arith.constant 0 : index
      %c0_10 = arith.constant 0 : index
      %21 = vector.load %arg10[%c0, %c0_10] : memref<2x128xf32, #tpu.memory_space<vmem>>, vector<2x128xf32>
      %c0_i32_11 = arith.constant 0 : i32
      %22 = arith.addi %20, %c0_i32_11 : i32
      %23 = arith.index_cast %22 : i32 to index
      %c0_12 = arith.constant 0 : index
      %c0_13 = arith.constant 0 : index
      %24 = vector.load %arg11[%23, %c0_12, %c0_13] : memref<16x2x384xf32, #tpu.memory_space<vmem>>, vector<1x2x384xf32>
      %25 = vector.shape_cast %24 : vector<1x2x384xf32> to vector<2x384xf32>
      %26 = arith.truncf %21 : vector<2x128xf32> to vector<2x128xbf16>
      %c0_14 = arith.constant 0 : index
      %c0_15 = arith.constant 0 : index
      %27 = vector.load %arg4[%c0_14, %c0_15] : memref<128x384xbf16, #tpu.memory_space<vmem>>, vector<128x384xbf16>
      %cst = arith.constant dense<0.000000e+00> : vector<2x384xf32>
      %28 = tpu.matmul %26, %27, %cst {dimension_numbers = #tpu.dot_dimension_numbers<[1], [0], [0], [1], [0, 0, 1, 1], [], []>} : vector<2x128xbf16>, vector<128x384xbf16>, vector<2x384xf32> -> vector<2x384xf32>
      %29 = vector.extract_strided_slice %25 {offsets = [0, 0], sizes = [2, 128], strides = [1, 1]} : vector<2x384xf32> to vector<2x128xf32>
      %30 = vector.extract_strided_slice %28 {offsets = [0, 0], sizes = [2, 128], strides = [1, 1]} : vector<2x384xf32> to vector<2x128xf32>
      %31 = arith.addf %29, %30 : vector<2x128xf32>
      %32 = arith.negf %31 : vector<2x128xf32>
      %33 = math.exp %32 : vector<2x128xf32>
      %cst_16 = arith.constant 1.000000e+00 : f32
      %34 = vector.broadcast %cst_16 : f32 to vector<2x128xf32>
      %35 = arith.addf %34, %33 : vector<2x128xf32>
      %36 = arith.divf %34, %35 : vector<2x128xf32>
      %37 = vector.extract_strided_slice %25 {offsets = [0, 128], sizes = [2, 128], strides = [1, 1]} : vector<2x384xf32> to vector<2x128xf32>
      %38 = vector.extract_strided_slice %28 {offsets = [0, 128], sizes = [2, 128], strides = [1, 1]} : vector<2x384xf32> to vector<2x128xf32>
      %39 = arith.addf %37, %38 : vector<2x128xf32>
      %40 = arith.negf %39 : vector<2x128xf32>
      %41 = math.exp %40 : vector<2x128xf32>
      %cst_17 = arith.constant 1.000000e+00 : f32
      %42 = vector.broadcast %cst_17 : f32 to vector<2x128xf32>
      %43 = arith.addf %42, %41 : vector<2x128xf32>
      %44 = arith.divf %42, %43 : vector<2x128xf32>
      %45 = vector.extract_strided_slice %25 {offsets = [0, 256], sizes = [2, 128], strides = [1, 1]} : vector<2x384xf32> to vector<2x128xf32>
      %46 = vector.extract_strided_slice %28 {offsets = [0, 256], sizes = [2, 128], strides = [1, 1]} : vector<2x384xf32> to vector<2x128xf32>
      %c0_18 = arith.constant 0 : index
      %c0_19 = arith.constant 0 : index
      %47 = vector.load %arg6[%c0_18, %c0_19] : memref<1x128xf32, #tpu.memory_space<vmem>>, vector<1x128xf32>
      %48 = vector.broadcast %47 : vector<1x128xf32> to vector<2x128xf32>
      %49 = arith.addf %46, %48 : vector<2x128xf32>
      %50 = arith.mulf %36, %49 : vector<2x128xf32>
      %51 = arith.addf %45, %50 : vector<2x128xf32>
      %52 = math.tanh %51 : vector<2x128xf32>
      %53 = arith.subf %21, %52 : vector<2x128xf32>
      %54 = arith.mulf %44, %53 : vector<2x128xf32>
      %55 = arith.addf %52, %54 : vector<2x128xf32>
      %c1_i32_20 = arith.constant 1 : i32
      %56 = arith.addi %20, %c1_i32_20 : i32
      %57 = arith.index_cast %56 : i32 to index
      %c0_21 = arith.constant 0 : index
      %c0_22 = arith.constant 0 : index
      %58 = vector.load %arg11[%57, %c0_21, %c0_22] : memref<16x2x384xf32, #tpu.memory_space<vmem>>, vector<1x2x384xf32>
      %59 = vector.shape_cast %58 : vector<1x2x384xf32> to vector<2x384xf32>
      %60 = arith.truncf %55 : vector<2x128xf32> to vector<2x128xbf16>
      %c0_23 = arith.constant 0 : index
      %c0_24 = arith.constant 0 : index
      %61 = vector.load %arg4[%c0_23, %c0_24] : memref<128x384xbf16, #tpu.memory_space<vmem>>, vector<128x384xbf16>
      %cst_25 = arith.constant dense<0.000000e+00> : vector<2x384xf32>
      %62 = tpu.matmul %60, %61, %cst_25 {dimension_numbers = #tpu.dot_dimension_numbers<[1], [0], [0], [1], [0, 0, 1, 1], [], []>} : vector<2x128xbf16>, vector<128x384xbf16>, vector<2x384xf32> -> vector<2x384xf32>
      %63 = vector.extract_strided_slice %59 {offsets = [0, 0], sizes = [2, 128], strides = [1, 1]} : vector<2x384xf32> to vector<2x128xf32>
      %64 = vector.extract_strided_slice %62 {offsets = [0, 0], sizes = [2, 128], strides = [1, 1]} : vector<2x384xf32> to vector<2x128xf32>
      %65 = arith.addf %63, %64 : vector<2x128xf32>
      %66 = arith.negf %65 : vector<2x128xf32>
      %67 = math.exp %66 : vector<2x128xf32>
      %cst_26 = arith.constant 1.000000e+00 : f32
      %68 = vector.broadcast %cst_26 : f32 to vector<2x128xf32>
      %69 = arith.addf %68, %67 : vector<2x128xf32>
      %70 = arith.divf %68, %69 : vector<2x128xf32>
      %71 = vector.extract_strided_slice %59 {offsets = [0, 128], sizes = [2, 128], strides = [1, 1]} : vector<2x384xf32> to vector<2x128xf32>
      %72 = vector.extract_strided_slice %62 {offsets = [0, 128], sizes = [2, 128], strides = [1, 1]} : vector<2x384xf32> to vector<2x128xf32>
      %73 = arith.addf %71, %72 : vector<2x128xf32>
      %74 = arith.negf %73 : vector<2x128xf32>
      %75 = math.exp %74 : vector<2x128xf32>
      %cst_27 = arith.constant 1.000000e+00 : f32
      %76 = vector.broadcast %cst_27 : f32 to vector<2x128xf32>
      %77 = arith.addf %76, %75 : vector<2x128xf32>
      %78 = arith.divf %76, %77 : vector<2x128xf32>
      %79 = vector.extract_strided_slice %59 {offsets = [0, 256], sizes = [2, 128], strides = [1, 1]} : vector<2x384xf32> to vector<2x128xf32>
      %80 = vector.extract_strided_slice %62 {offsets = [0, 256], sizes = [2, 128], strides = [1, 1]} : vector<2x384xf32> to vector<2x128xf32>
      %c0_28 = arith.constant 0 : index
      %c0_29 = arith.constant 0 : index
      %81 = vector.load %arg6[%c0_28, %c0_29] : memref<1x128xf32, #tpu.memory_space<vmem>>, vector<1x128xf32>
      %82 = vector.broadcast %81 : vector<1x128xf32> to vector<2x128xf32>
      %83 = arith.addf %80, %82 : vector<2x128xf32>
      %84 = arith.mulf %70, %83 : vector<2x128xf32>
      %85 = arith.addf %79, %84 : vector<2x128xf32>
      %86 = math.tanh %85 : vector<2x128xf32>
      %87 = arith.subf %55, %86 : vector<2x128xf32>
      %88 = arith.mulf %78, %87 : vector<2x128xf32>
      %89 = arith.addf %86, %88 : vector<2x128xf32>
      %c2_i32_30 = arith.constant 2 : i32
      %90 = arith.addi %20, %c2_i32_30 : i32
      %91 = arith.index_cast %90 : i32 to index
      %c0_31 = arith.constant 0 : index
      %c0_32 = arith.constant 0 : index
      %92 = vector.load %arg11[%91, %c0_31, %c0_32] : memref<16x2x384xf32, #tpu.memory_space<vmem>>, vector<1x2x384xf32>
      %93 = vector.shape_cast %92 : vector<1x2x384xf32> to vector<2x384xf32>
      %94 = arith.truncf %89 : vector<2x128xf32> to vector<2x128xbf16>
      %c0_33 = arith.constant 0 : index
      %c0_34 = arith.constant 0 : index
      %95 = vector.load %arg4[%c0_33, %c0_34] : memref<128x384xbf16, #tpu.memory_space<vmem>>, vector<128x384xbf16>
      %cst_35 = arith.constant dense<0.000000e+00> : vector<2x384xf32>
      %96 = tpu.matmul %94, %95, %cst_35 {dimension_numbers = #tpu.dot_dimension_numbers<[1], [0], [0], [1], [0, 0, 1, 1], [], []>} : vector<2x128xbf16>, vector<128x384xbf16>, vector<2x384xf32> -> vector<2x384xf32>
      %97 = vector.extract_strided_slice %93 {offsets = [0, 0], sizes = [2, 128], strides = [1, 1]} : vector<2x384xf32> to vector<2x128xf32>
      %98 = vector.extract_strided_slice %96 {offsets = [0, 0], sizes = [2, 128], strides = [1, 1]} : vector<2x384xf32> to vector<2x128xf32>
      %99 = arith.addf %97, %98 : vector<2x128xf32>
      %100 = arith.negf %99 : vector<2x128xf32>
      %101 = math.exp %100 : vector<2x128xf32>
      %cst_36 = arith.constant 1.000000e+00 : f32
      %102 = vector.broadcast %cst_36 : f32 to vector<2x128xf32>
      %103 = arith.addf %102, %101 : vector<2x128xf32>
      %104 = arith.divf %102, %103 : vector<2x128xf32>
      %105 = vector.extract_strided_slice %93 {offsets = [0, 128], sizes = [2, 128], strides = [1, 1]} : vector<2x384xf32> to vector<2x128xf32>
      %106 = vector.extract_strided_slice %96 {offsets = [0, 128], sizes = [2, 128], strides = [1, 1]} : vector<2x384xf32> to vector<2x128xf32>
      %107 = arith.addf %105, %106 : vector<2x128xf32>
      %108 = arith.negf %107 : vector<2x128xf32>
      %109 = math.exp %108 : vector<2x128xf32>
      %cst_37 = arith.constant 1.000000e+00 : f32
      %110 = vector.broadcast %cst_37 : f32 to vector<2x128xf32>
      %111 = arith.addf %110, %109 : vector<2x128xf32>
      %112 = arith.divf %110, %111 : vector<2x128xf32>
      %113 = vector.extract_strided_slice %93 {offsets = [0, 256], sizes = [2, 128], strides = [1, 1]} : vector<2x384xf32> to vector<2x128xf32>
      %114 = vector.extract_strided_slice %96 {offsets = [0, 256], sizes = [2, 128], strides = [1, 1]} : vector<2x384xf32> to vector<2x128xf32>
      %c0_38 = arith.constant 0 : index
      %c0_39 = arith.constant 0 : index
      %115 = vector.load %arg6[%c0_38, %c0_39] : memref<1x128xf32, #tpu.memory_space<vmem>>, vector<1x128xf32>
      %116 = vector.broadcast %115 : vector<1x128xf32> to vector<2x128xf32>
      %117 = arith.addf %114, %116 : vector<2x128xf32>
      %118 = arith.mulf %104, %117 : vector<2x128xf32>
      %119 = arith.addf %113, %118 : vector<2x128xf32>
      %120 = math.tanh %119 : vector<2x128xf32>
      %121 = arith.subf %89, %120 : vector<2x128xf32>
      %122 = arith.mulf %112, %121 : vector<2x128xf32>
      %123 = arith.addf %120, %122 : vector<2x128xf32>
      %c3_i32 = arith.constant 3 : i32
      %124 = arith.addi %20, %c3_i32 : i32
      %125 = arith.index_cast %124 : i32 to index
      %c0_40 = arith.constant 0 : index
      %c0_41 = arith.constant 0 : index
      %126 = vector.load %arg11[%125, %c0_40, %c0_41] : memref<16x2x384xf32, #tpu.memory_space<vmem>>, vector<1x2x384xf32>
      %127 = vector.shape_cast %126 : vector<1x2x384xf32> to vector<2x384xf32>
      %128 = arith.truncf %123 : vector<2x128xf32> to vector<2x128xbf16>
      %c0_42 = arith.constant 0 : index
      %c0_43 = arith.constant 0 : index
      %129 = vector.load %arg4[%c0_42, %c0_43] : memref<128x384xbf16, #tpu.memory_space<vmem>>, vector<128x384xbf16>
      %cst_44 = arith.constant dense<0.000000e+00> : vector<2x384xf32>
      %130 = tpu.matmul %128, %129, %cst_44 {dimension_numbers = #tpu.dot_dimension_numbers<[1], [0], [0], [1], [0, 0, 1, 1], [], []>} : vector<2x128xbf16>, vector<128x384xbf16>, vector<2x384xf32> -> vector<2x384xf32>
      %131 = vector.extract_strided_slice %127 {offsets = [0, 0], sizes = [2, 128], strides = [1, 1]} : vector<2x384xf32> to vector<2x128xf32>
      %132 = vector.extract_strided_slice %130 {offsets = [0, 0], sizes = [2, 128], strides = [1, 1]} : vector<2x384xf32> to vector<2x128xf32>
      %133 = arith.addf %131, %132 : vector<2x128xf32>
      %134 = arith.negf %133 : vector<2x128xf32>
      %135 = math.exp %134 : vector<2x128xf32>
      %cst_45 = arith.constant 1.000000e+00 : f32
      %136 = vector.broadcast %cst_45 : f32 to vector<2x128xf32>
      %137 = arith.addf %136, %135 : vector<2x128xf32>
      %138 = arith.divf %136, %137 : vector<2x128xf32>
      %139 = vector.extract_strided_slice %127 {offsets = [0, 128], sizes = [2, 128], strides = [1, 1]} : vector<2x384xf32> to vector<2x128xf32>
      %140 = vector.extract_strided_slice %130 {offsets = [0, 128], sizes = [2, 128], strides = [1, 1]} : vector<2x384xf32> to vector<2x128xf32>
      %141 = arith.addf %139, %140 : vector<2x128xf32>
      %142 = arith.negf %141 : vector<2x128xf32>
      %143 = math.exp %142 : vector<2x128xf32>
      %cst_46 = arith.constant 1.000000e+00 : f32
      %144 = vector.broadcast %cst_46 : f32 to vector<2x128xf32>
      %145 = arith.addf %144, %143 : vector<2x128xf32>
      %146 = arith.divf %144, %145 : vector<2x128xf32>
      %147 = vector.extract_strided_slice %127 {offsets = [0, 256], sizes = [2, 128], strides = [1, 1]} : vector<2x384xf32> to vector<2x128xf32>
      %148 = vector.extract_strided_slice %130 {offsets = [0, 256], sizes = [2, 128], strides = [1, 1]} : vector<2x384xf32> to vector<2x128xf32>
      %c0_47 = arith.constant 0 : index
      %c0_48 = arith.constant 0 : index
      %149 = vector.load %arg6[%c0_47, %c0_48] : memref<1x128xf32, #tpu.memory_space<vmem>>, vector<1x128xf32>
      %150 = vector.broadcast %149 : vector<1x128xf32> to vector<2x128xf32>
      %151 = arith.addf %148, %150 : vector<2x128xf32>
      %152 = arith.mulf %138, %151 : vector<2x128xf32>
      %153 = arith.addf %147, %152 : vector<2x128xf32>
      %154 = math.tanh %153 : vector<2x128xf32>
      %155 = arith.subf %123, %154 : vector<2x128xf32>
      %156 = arith.mulf %146, %155 : vector<2x128xf32>
      %157 = arith.addf %154, %156 : vector<2x128xf32>
      %c4_i32 = arith.constant 4 : i32
      %158 = arith.addi %20, %c4_i32 : i32
      %159 = arith.index_cast %158 : i32 to index
      %c0_49 = arith.constant 0 : index
      %c0_50 = arith.constant 0 : index
      %160 = vector.load %arg11[%159, %c0_49, %c0_50] : memref<16x2x384xf32, #tpu.memory_space<vmem>>, vector<1x2x384xf32>
      %161 = vector.shape_cast %160 : vector<1x2x384xf32> to vector<2x384xf32>
      %162 = arith.truncf %157 : vector<2x128xf32> to vector<2x128xbf16>
      %c0_51 = arith.constant 0 : index
      %c0_52 = arith.constant 0 : index
      %163 = vector.load %arg4[%c0_51, %c0_52] : memref<128x384xbf16, #tpu.memory_space<vmem>>, vector<128x384xbf16>
      %cst_53 = arith.constant dense<0.000000e+00> : vector<2x384xf32>
      %164 = tpu.matmul %162, %163, %cst_53 {dimension_numbers = #tpu.dot_dimension_numbers<[1], [0], [0], [1], [0, 0, 1, 1], [], []>} : vector<2x128xbf16>, vector<128x384xbf16>, vector<2x384xf32> -> vector<2x384xf32>
      %165 = vector.extract_strided_slice %161 {offsets = [0, 0], sizes = [2, 128], strides = [1, 1]} : vector<2x384xf32> to vector<2x128xf32>
      %166 = vector.extract_strided_slice %164 {offsets = [0, 0], sizes = [2, 128], strides = [1, 1]} : vector<2x384xf32> to vector<2x128xf32>
      %167 = arith.addf %165, %166 : vector<2x128xf32>
      %168 = arith.negf %167 : vector<2x128xf32>
      %169 = math.exp %168 : vector<2x128xf32>
      %cst_54 = arith.constant 1.000000e+00 : f32
      %170 = vector.broadcast %cst_54 : f32 to vector<2x128xf32>
      %171 = arith.addf %170, %169 : vector<2x128xf32>
      %172 = arith.divf %170, %171 : vector<2x128xf32>
      %173 = vector.extract_strided_slice %161 {offsets = [0, 128], sizes = [2, 128], strides = [1, 1]} : vector<2x384xf32> to vector<2x128xf32>
      %174 = vector.extract_strided_slice %164 {offsets = [0, 128], sizes = [2, 128], strides = [1, 1]} : vector<2x384xf32> to vector<2x128xf32>
      %175 = arith.addf %173, %174 : vector<2x128xf32>
      %176 = arith.negf %175 : vector<2x128xf32>
      %177 = math.exp %176 : vector<2x128xf32>
      %cst_55 = arith.constant 1.000000e+00 : f32
      %178 = vector.broadcast %cst_55 : f32 to vector<2x128xf32>
      %179 = arith.addf %178, %177 : vector<2x128xf32>
      %180 = arith.divf %178, %179 : vector<2x128xf32>
      %181 = vector.extract_strided_slice %161 {offsets = [0, 256], sizes = [2, 128], strides = [1, 1]} : vector<2x384xf32> to vector<2x128xf32>
      %182 = vector.extract_strided_slice %164 {offsets = [0, 256], sizes = [2, 128], strides = [1, 1]} : vector<2x384xf32> to vector<2x128xf32>
      %c0_56 = arith.constant 0 : index
      %c0_57 = arith.constant 0 : index
      %183 = vector.load %arg6[%c0_56, %c0_57] : memref<1x128xf32, #tpu.memory_space<vmem>>, vector<1x128xf32>
      %184 = vector.broadcast %183 : vector<1x128xf32> to vector<2x128xf32>
      %185 = arith.addf %182, %184 : vector<2x128xf32>
      %186 = arith.mulf %172, %185 : vector<2x128xf32>
      %187 = arith.addf %181, %186 : vector<2x128xf32>
      %188 = math.tanh %187 : vector<2x128xf32>
      %189 = arith.subf %157, %188 : vector<2x128xf32>
      %190 = arith.mulf %180, %189 : vector<2x128xf32>
      %191 = arith.addf %188, %190 : vector<2x128xf32>
      %c5_i32 = arith.constant 5 : i32
      %192 = arith.addi %20, %c5_i32 : i32
      %193 = arith.index_cast %192 : i32 to index
      %c0_58 = arith.constant 0 : index
      %c0_59 = arith.constant 0 : index
      %194 = vector.load %arg11[%193, %c0_58, %c0_59] : memref<16x2x384xf32, #tpu.memory_space<vmem>>, vector<1x2x384xf32>
      %195 = vector.shape_cast %194 : vector<1x2x384xf32> to vector<2x384xf32>
      %196 = arith.truncf %191 : vector<2x128xf32> to vector<2x128xbf16>
      %c0_60 = arith.constant 0 : index
      %c0_61 = arith.constant 0 : index
      %197 = vector.load %arg4[%c0_60, %c0_61] : memref<128x384xbf16, #tpu.memory_space<vmem>>, vector<128x384xbf16>
      %cst_62 = arith.constant dense<0.000000e+00> : vector<2x384xf32>
      %198 = tpu.matmul %196, %197, %cst_62 {dimension_numbers = #tpu.dot_dimension_numbers<[1], [0], [0], [1], [0, 0, 1, 1], [], []>} : vector<2x128xbf16>, vector<128x384xbf16>, vector<2x384xf32> -> vector<2x384xf32>
      %199 = vector.extract_strided_slice %195 {offsets = [0, 0], sizes = [2, 128], strides = [1, 1]} : vector<2x384xf32> to vector<2x128xf32>
      %200 = vector.extract_strided_slice %198 {offsets = [0, 0], sizes = [2, 128], strides = [1, 1]} : vector<2x384xf32> to vector<2x128xf32>
      %201 = arith.addf %199, %200 : vector<2x128xf32>
      %202 = arith.negf %201 : vector<2x128xf32>
      %203 = math.exp %202 : vector<2x128xf32>
      %cst_63 = arith.constant 1.000000e+00 : f32
      %204 = vector.broadcast %cst_63 : f32 to vector<2x128xf32>
      %205 = arith.addf %204, %203 : vector<2x128xf32>
      %206 = arith.divf %204, %205 : vector<2x128xf32>
      %207 = vector.extract_strided_slice %195 {offsets = [0, 128], sizes = [2, 128], strides = [1, 1]} : vector<2x384xf32> to vector<2x128xf32>
      %208 = vector.extract_strided_slice %198 {offsets = [0, 128], sizes = [2, 128], strides = [1, 1]} : vector<2x384xf32> to vector<2x128xf32>
      %209 = arith.addf %207, %208 : vector<2x128xf32>
      %210 = arith.negf %209 : vector<2x128xf32>
      %211 = math.exp %210 : vector<2x128xf32>
      %cst_64 = arith.constant 1.000000e+00 : f32
      %212 = vector.broadcast %cst_64 : f32 to vector<2x128xf32>
      %213 = arith.addf %212, %211 : vector<2x128xf32>
      %214 = arith.divf %212, %213 : vector<2x128xf32>
      %215 = vector.extract_strided_slice %195 {offsets = [0, 256], sizes = [2, 128], strides = [1, 1]} : vector<2x384xf32> to vector<2x128xf32>
      %216 = vector.extract_strided_slice %198 {offsets = [0, 256], sizes = [2, 128], strides = [1, 1]} : vector<2x384xf32> to vector<2x128xf32>
      %c0_65 = arith.constant 0 : index
      %c0_66 = arith.constant 0 : index
      %217 = vector.load %arg6[%c0_65, %c0_66] : memref<1x128xf32, #tpu.memory_space<vmem>>, vector<1x128xf32>
      %218 = vector.broadcast %217 : vector<1x128xf32> to vector<2x128xf32>
      %219 = arith.addf %216, %218 : vector<2x128xf32>
      %220 = arith.mulf %206, %219 : vector<2x128xf32>
      %221 = arith.addf %215, %220 : vector<2x128xf32>
      %222 = math.tanh %221 : vector<2x128xf32>
      %223 = arith.subf %191, %222 : vector<2x128xf32>
      %224 = arith.mulf %214, %223 : vector<2x128xf32>
      %225 = arith.addf %222, %224 : vector<2x128xf32>
      %c6_i32 = arith.constant 6 : i32
      %226 = arith.addi %20, %c6_i32 : i32
      %227 = arith.index_cast %226 : i32 to index
      %c0_67 = arith.constant 0 : index
      %c0_68 = arith.constant 0 : index
      %228 = vector.load %arg11[%227, %c0_67, %c0_68] : memref<16x2x384xf32, #tpu.memory_space<vmem>>, vector<1x2x384xf32>
      %229 = vector.shape_cast %228 : vector<1x2x384xf32> to vector<2x384xf32>
      %230 = arith.truncf %225 : vector<2x128xf32> to vector<2x128xbf16>
      %c0_69 = arith.constant 0 : index
      %c0_70 = arith.constant 0 : index
      %231 = vector.load %arg4[%c0_69, %c0_70] : memref<128x384xbf16, #tpu.memory_space<vmem>>, vector<128x384xbf16>
      %cst_71 = arith.constant dense<0.000000e+00> : vector<2x384xf32>
      %232 = tpu.matmul %230, %231, %cst_71 {dimension_numbers = #tpu.dot_dimension_numbers<[1], [0], [0], [1], [0, 0, 1, 1], [], []>} : vector<2x128xbf16>, vector<128x384xbf16>, vector<2x384xf32> -> vector<2x384xf32>
      %233 = vector.extract_strided_slice %229 {offsets = [0, 0], sizes = [2, 128], strides = [1, 1]} : vector<2x384xf32> to vector<2x128xf32>
      %234 = vector.extract_strided_slice %232 {offsets = [0, 0], sizes = [2, 128], strides = [1, 1]} : vector<2x384xf32> to vector<2x128xf32>
      %235 = arith.addf %233, %234 : vector<2x128xf32>
      %236 = arith.negf %235 : vector<2x128xf32>
      %237 = math.exp %236 : vector<2x128xf32>
      %cst_72 = arith.constant 1.000000e+00 : f32
      %238 = vector.broadcast %cst_72 : f32 to vector<2x128xf32>
      %239 = arith.addf %238, %237 : vector<2x128xf32>
      %240 = arith.divf %238, %239 : vector<2x128xf32>
      %241 = vector.extract_strided_slice %229 {offsets = [0, 128], sizes = [2, 128], strides = [1, 1]} : vector<2x384xf32> to vector<2x128xf32>
      %242 = vector.extract_strided_slice %232 {offsets = [0, 128], sizes = [2, 128], strides = [1, 1]} : vector<2x384xf32> to vector<2x128xf32>
      %243 = arith.addf %241, %242 : vector<2x128xf32>
      %244 = arith.negf %243 : vector<2x128xf32>
      %245 = math.exp %244 : vector<2x128xf32>
      %cst_73 = arith.constant 1.000000e+00 : f32
      %246 = vector.broadcast %cst_73 : f32 to vector<2x128xf32>
      %247 = arith.addf %246, %245 : vector<2x128xf32>
      %248 = arith.divf %246, %247 : vector<2x128xf32>
      %249 = vector.extract_strided_slice %229 {offsets = [0, 256], sizes = [2, 128], strides = [1, 1]} : vector<2x384xf32> to vector<2x128xf32>
      %250 = vector.extract_strided_slice %232 {offsets = [0, 256], sizes = [2, 128], strides = [1, 1]} : vector<2x384xf32> to vector<2x128xf32>
      %c0_74 = arith.constant 0 : index
      %c0_75 = arith.constant 0 : index
      %251 = vector.load %arg6[%c0_74, %c0_75] : memref<1x128xf32, #tpu.memory_space<vmem>>, vector<1x128xf32>
      %252 = vector.broadcast %251 : vector<1x128xf32> to vector<2x128xf32>
      %253 = arith.addf %250, %252 : vector<2x128xf32>
      %254 = arith.mulf %240, %253 : vector<2x128xf32>
      %255 = arith.addf %249, %254 : vector<2x128xf32>
      %256 = math.tanh %255 : vector<2x128xf32>
      %257 = arith.subf %225, %256 : vector<2x128xf32>
      %258 = arith.mulf %248, %257 : vector<2x128xf32>
      %259 = arith.addf %256, %258 : vector<2x128xf32>
      %c7_i32 = arith.constant 7 : i32
      %260 = arith.addi %20, %c7_i32 : i32
      %261 = arith.index_cast %260 : i32 to index
      %c0_76 = arith.constant 0 : index
      %c0_77 = arith.constant 0 : index
      %262 = vector.load %arg11[%261, %c0_76, %c0_77] : memref<16x2x384xf32, #tpu.memory_space<vmem>>, vector<1x2x384xf32>
      %263 = vector.shape_cast %262 : vector<1x2x384xf32> to vector<2x384xf32>
      %264 = arith.truncf %259 : vector<2x128xf32> to vector<2x128xbf16>
      %c0_78 = arith.constant 0 : index
      %c0_79 = arith.constant 0 : index
      %265 = vector.load %arg4[%c0_78, %c0_79] : memref<128x384xbf16, #tpu.memory_space<vmem>>, vector<128x384xbf16>
      %cst_80 = arith.constant dense<0.000000e+00> : vector<2x384xf32>
      %266 = tpu.matmul %264, %265, %cst_80 {dimension_numbers = #tpu.dot_dimension_numbers<[1], [0], [0], [1], [0, 0, 1, 1], [], []>} : vector<2x128xbf16>, vector<128x384xbf16>, vector<2x384xf32> -> vector<2x384xf32>
      %267 = vector.extract_strided_slice %263 {offsets = [0, 0], sizes = [2, 128], strides = [1, 1]} : vector<2x384xf32> to vector<2x128xf32>
      %268 = vector.extract_strided_slice %266 {offsets = [0, 0], sizes = [2, 128], strides = [1, 1]} : vector<2x384xf32> to vector<2x128xf32>
      %269 = arith.addf %267, %268 : vector<2x128xf32>
      %270 = arith.negf %269 : vector<2x128xf32>
      %271 = math.exp %270 : vector<2x128xf32>
      %cst_81 = arith.constant 1.000000e+00 : f32
      %272 = vector.broadcast %cst_81 : f32 to vector<2x128xf32>
      %273 = arith.addf %272, %271 : vector<2x128xf32>
      %274 = arith.divf %272, %273 : vector<2x128xf32>
      %275 = vector.extract_strided_slice %263 {offsets = [0, 128], sizes = [2, 128], strides = [1, 1]} : vector<2x384xf32> to vector<2x128xf32>
      %276 = vector.extract_strided_slice %266 {offsets = [0, 128], sizes = [2, 128], strides = [1, 1]} : vector<2x384xf32> to vector<2x128xf32>
      %277 = arith.addf %275, %276 : vector<2x128xf32>
      %278 = arith.negf %277 : vector<2x128xf32>
      %279 = math.exp %278 : vector<2x128xf32>
      %cst_82 = arith.constant 1.000000e+00 : f32
      %280 = vector.broadcast %cst_82 : f32 to vector<2x128xf32>
      %281 = arith.addf %280, %279 : vector<2x128xf32>
      %282 = arith.divf %280, %281 : vector<2x128xf32>
      %283 = vector.extract_strided_slice %263 {offsets = [0, 256], sizes = [2, 128], strides = [1, 1]} : vector<2x384xf32> to vector<2x128xf32>
      %284 = vector.extract_strided_slice %266 {offsets = [0, 256], sizes = [2, 128], strides = [1, 1]} : vector<2x384xf32> to vector<2x128xf32>
      %c0_83 = arith.constant 0 : index
      %c0_84 = arith.constant 0 : index
      %285 = vector.load %arg6[%c0_83, %c0_84] : memref<1x128xf32, #tpu.memory_space<vmem>>, vector<1x128xf32>
      %286 = vector.broadcast %285 : vector<1x128xf32> to vector<2x128xf32>
      %287 = arith.addf %284, %286 : vector<2x128xf32>
      %288 = arith.mulf %274, %287 : vector<2x128xf32>
      %289 = arith.addf %283, %288 : vector<2x128xf32>
      %290 = math.tanh %289 : vector<2x128xf32>
      %291 = arith.subf %259, %290 : vector<2x128xf32>
      %292 = arith.mulf %282, %291 : vector<2x128xf32>
      %293 = arith.addf %290, %292 : vector<2x128xf32>
      %c8_i32_85 = arith.constant 8 : i32
      %c0_86 = arith.constant 0 : index
      %c0_87 = arith.constant 0 : index
      %294 = vector.load %arg10[%c0_86, %c0_87] : memref<2x128xf32, #tpu.memory_space<vmem>>, vector<2x128xf32>
      tpu.vector_store %arg10[%c0_86, %c0_87], %293 {strides = array<i32>} : memref<2x128xf32, #tpu.memory_space<vmem>>, vector<2x128xf32>,
      %c1_i32_88 = arith.constant 1 : i32
      %295 = arith.cmpi eq, %arg1, %c1_i32_88 : i32
      %296 = arith.extui %295 : i1 to i32
      %c0_i32_89 = arith.constant 0 : i32
      %297 = arith.cmpi ne, %296, %c0_i32_89 : i32
      scf.if %297 {
        %298 = arith.truncf %293 : vector<2x128xf32> to vector<2x128xbf16>
        %c0_90 = arith.constant 0 : index
        %c0_91 = arith.constant 0 : index
        %299 = vector.load %arg7[%c0_90, %c0_91] : memref<128x128xbf16, #tpu.memory_space<vmem>>, vector<128x128xbf16>
        %cst_92 = arith.constant dense<0.000000e+00> : vector<2x128xf32>
        %300 = tpu.matmul %298, %299, %cst_92 {dimension_numbers = #tpu.dot_dimension_numbers<[1], [0], [0], [1], [0, 0, 1, 1], [], []>} : vector<2x128xbf16>, vector<128x128xbf16>, vector<2x128xf32> -> vector<2x128xf32>
        %c0_93 = arith.constant 0 : index
        %c0_94 = arith.constant 0 : index
        %301 = vector.load %arg8[%c0_93, %c0_94] : memref<1x128xf32, #tpu.memory_space<vmem>>, vector<1x128xf32>
        %302 = vector.broadcast %301 : vector<1x128xf32> to vector<2x128xf32>
        %303 = arith.addf %300, %302 : vector<2x128xf32>
        %c0_95 = arith.constant 0 : index
        %c0_96 = arith.constant 0 : index
        %304 = vector.load %arg9[%c0_95, %c0_96] : memref<2x128xf32, #tpu.memory_space<vmem>>, vector<2x128xf32>
        tpu.vector_store %arg9[%c0_95, %c0_96], %303 {strides = array<i32>} : memref<2x128xf32, #tpu.memory_space<vmem>>, vector<2x128xf32>,
      } else {
      }
    } else {
    }
    return
  }
  func.func @transform_0(%arg0: i32, %arg1: i32) -> (i32, i32, i32) {
    %c0_i32 = arith.constant 0 : i32
    %0 = arith.minsi %arg1, %c0_i32 : i32
    %c0_i32_0 = arith.constant 0 : i32
    %c0_i32_1 = arith.constant 0 : i32
    return %0, %arg0, %c0_i32_0 : i32, i32, i32
  }
  func.func @transform_1(%arg0: i32, %arg1: i32) -> (i32, i32) {
    %c0_i32 = arith.constant 0 : i32
    %c0_i32_0 = arith.constant 0 : i32
    %c0_i32_1 = arith.constant 0 : i32
    return %c0_i32, %c0_i32_0 : i32, i32
  }
  func.func @transform_2(%arg0: i32, %arg1: i32) -> (i32, i32) {
    %c0_i32 = arith.constant 0 : i32
    %c0_i32_0 = arith.constant 0 : i32
    %c0_i32_1 = arith.constant 0 : i32
    return %c0_i32, %c0_i32_0 : i32, i32
  }
  func.func @transform_3(%arg0: i32, %arg1: i32) -> (i32, i32) {
    %c0_i32 = arith.constant 0 : i32
    %c0_i32_0 = arith.constant 0 : i32
    %c0_i32_1 = arith.constant 0 : i32
    return %c0_i32, %c0_i32_0 : i32, i32
  }
  func.func @transform_4(%arg0: i32, %arg1: i32) -> (i32, i32) {
    %c0_i32 = arith.constant 0 : i32
    %c0_i32_0 = arith.constant 0 : i32
    %c0_i32_1 = arith.constant 0 : i32
    return %c0_i32, %c0_i32_0 : i32, i32
  }
  func.func @transform_5(%arg0: i32, %arg1: i32) -> (i32, i32) {
    %c0_i32 = arith.constant 0 : i32
    %c0_i32_0 = arith.constant 0 : i32
    %c0_i32_1 = arith.constant 0 : i32
    return %c0_i32, %c0_i32_0 : i32, i32
  }
  func.func @transform_6(%arg0: i32, %arg1: i32) -> (i32, i32) {
    %c0_i32 = arith.constant 0 : i32
    %c0_i32_0 = arith.constant 0 : i32
    %c0_i32_1 = arith.constant 0 : i32
    return %c0_i32, %c0_i32_0 : i32, i32
  }
  func.func @transform_7(%arg0: i32, %arg1: i32) -> (i32, i32) {
    %c0_i32 = arith.constant 0 : i32
    %c0_i32_0 = arith.constant 0 : i32
    return %arg0, %c0_i32 : i32, i32
  }
}

</mosaic_0001>

<bundles_post_ra>
// kernel: tpu_custom_call.1
= control target key start
LH: loop header
LB: loop body
LE: loop exit
PB: predicated region body
PF: predicated region fallthrough
CT: control target
= control target key end

     0   :  { %s3760_s0 = inlined_call_operand.hbm [shape: bf16[8,2,16], index: 0, kind: input, shape index: {}]   ;;  %s3761_s1 = inlined_call_operand.hbm [shape: bf16[16,384], index: 1, kind: input, shape index: {}]   ;;  %s3762_s2 = inlined_call_operand.hbm [shape: bf16[128,384], index: 2, kind: input, shape index: {}]   ;;  %s3763_s3 = inlined_call_operand.hbm [shape: f32[1,384], index: 3, kind: input, shape index: {}]   ;;  %s3764_s4 = inlined_call_operand.hbm [shape: f32[1,128], index: 4, kind: input, shape index: {}]   ;;  %s3765_s5 = inlined_call_operand.hbm [shape: bf16[128,128], index: 5, kind: input, shape index: {}]   ;;  %s3766_s6 = inlined_call_operand.hbm [shape: f32[1,128], index: 6, kind: input, shape index: {}]   ;;  %s3767_s7 = inlined_call_operand.hbm [shape: f32[2,128], index: 7, kind: output, shape index: {}]  }
   0x1   :  { %3776 = sst [smem:[#allocation22_spill]] %s3761_s1 }
   0x2   :  { %3777 = sst [smem:[#allocation23_spill]] %s3763_s3 }
   0x3   :  { %12 = vsyncpa [#allocation5], 0 }
   0x4   :  { %14 = vsyncpa [#allocation5 + $0x1], 0 }
   0x5   :  { %15 = vsyncpa [#allocation8], 0 }
   0x6   :  { %16 = vsyncpa [#allocation11], 0 }
   0x7   :  { %17 = vsyncpa [#allocation14], 0 }
   0x8   :  { %18 = vsyncpa [#allocation6], 0  ;;  %s3083_s24 = smov 0   ;;  %s3085_s25 = smov 0  }
   0x9   :  { %s3087_s26 = smov 0   ;;  %s3089_s27 = smov 0  }
   0xa   :  { %s3091_s28 = smov 0  }
   0xb LB: > { %s3768_s29 = sadd.s32 4294967295, %s3016_s28   ;;  %p2072_p0 = scmp.ge.s32.totalorder %s3016_s28, 1  ;;  %s3016_s28 = sphi %s3091_s28, %s24_s28   ;;  %s3012_s27 = sphi %s3089_s27, %s3797_s27   ;;  %s3008_s26 = sphi %s3087_s26, %s3796_s26   ;;  %s3004_s25 = sphi %s3085_s25, %s3750_s25   ;;  %s3000_s24 = sphi %s3083_s24, %s3795_s24  }
   0xc   : > { %p3112_p1 = scmp.eq.s32.totalorder %s3768_s29, 0  ;;  %p225_p2 = scmp.lt.s32.totalorder %s3016_s28, 3 }
   0xd   : > { %s3018_s9 = smov [#allocation7]   ;;  %s3019_s12 = smov [#allocation10]  }
   0xe   : > { %s3778_s30 = scalar_select %p3112_p1, 1, 0 }
   0xf   : > { %p3117_p3 = pnand %p2072_p0, %p225_p2  ;;  %s237_s10 = sshll.u32 %s3018_s9, 4  ;;  %s3121_s10 = int_to_ptr.vmem [resolvable:$true] %s237_s10 }
  0x10   : > { %s264_s13 = sshll.u32 %s3019_s12, 4  ;;  %s3020_s14 = smov [#allocation13]   ;;  %s3131_s13 = int_to_ptr.vmem [resolvable:$true] %s264_s13 }
  0x11   : > { %s3779_s8 = scalar_select %p3117_p3, 1, 0 }
  0x12   : > { %p2489_p4 = pneg %p3117_p3  ;;  %s3133_s15 = sshll.u32 %s3020_s14, 4  ;;  %s286_s15 = int_to_ptr.vmem [resolvable:$true] %s3133_s15 }
  0x13   : > { %s3781_s1 = sld [smem:[#allocation22_spill]] }
  0x14   : > { %p3127_p5 = pnand %p2489_p4, %p3112_p1 }
  0x16   : > { %p3143_p7 = pneg %p3127_p5 }
  0x19   : > { %s2729_s18 = scalar_lea.hbm %s3781_s1, 384 }
  0x1a   : > { %p2730_p6 = scmp.ne.s32.totalorder %s3781_s1, %s2729_s18  ;;  %p2736_p10 = scmp.lt.u32.totalorder %s2729_s18, %s3781_s1 }
  0x1c   : > { %p2732_p8 = pnand %p3143_p7, %p2730_p6 }
  0x1e   : > { %p2733_p9 = pneg %p2732_p8 }
  0x20   : > { %p2738_p11 = pnand %p2736_p10, %p2733_p9 }
  0x22   : > { %2741 = shalt.err (!%p2738_p11)
}
  0x23   : > { %s2742_s9 = scalar_lea.vmem %s3121_s10, 384  ;;  %p2750_p2 = scmp.lt.s32.totalorder %s3121_s10, %s3121_s10 }
  0x24   : > { %p2743_p12 = scmp.ne.s32.totalorder %s3121_s10, %s2742_s9  ;;  %p2751_p4 = scmp.lt.s32.totalorder %s2742_s9, %s2742_s9 }
  0x26   : > { %p2745_p13 = pnand %p2743_p12, %p3143_p7  ;;  %p2752_p6 = por %p2751_p4, %p2750_p2 }
  0x28   : > { %p2746_p0 = pneg %p2745_p13 }
  0x2a   : > { %p2753_p8 = pnand %p2752_p6, %p2746_p0 }
  0x2c   : > { %2756 = shalt.err (!%p2753_p8)
}
  0x2d   : > { %s3772_s12 = smov 192   ;;  %s3773_s14 = smov 12  }
  0x2e   : > { %2492 = dma.hbm_to_vmem [thread:$0]  (!%p3127_p5), %s3781_s1, 384, %s3121_s10, [#allocation8], %s3772_s12, %s3772_s12, %s3773_s14  }
  0x2f   : > { %s3783_s3 = sld [smem:[#allocation23_spill]] }
  0x35   : > { %s2757_s20 = scalar_lea.hbm %s3783_s3, 48 }
  0x36   : > { %p2758_p9 = scmp.ne.s32.totalorder %s3783_s3, %s2757_s20  ;;  %p2764_p12 = scmp.lt.u32.totalorder %s2757_s20, %s3783_s3 }
  0x38   : > { %p2760_p10 = pnand %p2758_p9, %p3143_p7 }
  0x3a   : > { %p2761_p11 = pneg %p2760_p10 }
  0x3c   : > { %p2766_p13 = pnand %p2764_p12, %p2761_p11 }
  0x3e   : > { %2769 = shalt.err (!%p2766_p13)
}
  0x3f   : > { %s2770_s10 = scalar_lea.vmem %s3131_s13, 48  ;;  %s2777_s16 = scalar_lea.vmem %s3131_s13, 64 }
  0x40   : > { %p2771_p0 = scmp.ne.s32.totalorder %s3131_s13, %s2770_s10  ;;  %p2778_p6 = scmp.lt.s32.totalorder %s3131_s13, %s3131_s13 }
  0x41   : > { %p2779_p8 = scmp.lt.s32.totalorder %s2777_s16, %s2770_s10 }
  0x42   : > { %p2773_p2 = pnand %p2771_p0, %p3143_p7 }
  0x43   : > { %p2780_p9 = por %p2779_p8, %p2778_p6 }
  0x44   : > { %p2774_p4 = pneg %p2773_p2 }
  0x46   : > { %p2781_p10 = pnand %p2780_p9, %p2774_p4 }
  0x48   : > { %2784 = shalt.err (!%p2781_p10)
}
  0x49   : > { %2498 = dma.hbm_to_vmem [thread:$0]  (!%p3127_p5), %s3783_s3, 48, %s3131_s13, [#allocation11]  }
  0x4a   : > { %s2785_s20 = scalar_lea.hbm %s3765_s5, 1024 }
  0x4b   : > { %p2786_p11 = scmp.ne.s32.totalorder %s3765_s5, %s2785_s20  ;;  %p2792_p0 = scmp.lt.u32.totalorder %s2785_s20, %s3765_s5 }
  0x4d   : > { %p2788_p12 = pnand %p2786_p11, %p3143_p7 }
  0x4f   : > { %p2789_p13 = pneg %p2788_p12 }
  0x51   : > { %p2794_p2 = pnand %p2792_p0, %p2789_p13 }
  0x53   : > { %2797 = shalt.err (!%p2794_p2)
}
  0x54   : > { %s2798_s16 = scalar_lea.vmem %s286_s15, 1024  ;;  %p2806_p9 = scmp.lt.s32.totalorder %s286_s15, %s286_s15 }
  0x55   : > { %p2799_p4 = scmp.ne.s32.totalorder %s286_s15, %s2798_s16  ;;  %p2807_p10 = scmp.lt.s32.totalorder %s2798_s16, %s2798_s16 }
  0x57   : > { %p2801_p6 = pnand %p2799_p4, %p3143_p7  ;;  %p2808_p3 = por %p2807_p10, %p2806_p9 }
  0x59   : > { %p2802_p8 = pneg %p2801_p6 }
  0x5b   : > { %p2809_p1 = pnand %p2808_p3, %p2802_p8 }
  0x5d   : > { %2812 = shalt.err (!%p2809_p1)
}
  0x5e   : > { %s3023_s13 = smov 64   ;;  %s3024_s29 = smov 4  }
  0x5f   : > { %2504 = dma.hbm_to_vmem [thread:$0]  (!%p3127_p5), %s3765_s5, 1024, %s286_s15, [#allocation14], %s3023_s13, %s3023_s13, %s3024_s29  }
  0x60   : > { %s3025_s19 = smov [#allocation9]   ;;  %s3026_s22 = smov [#allocation12]  }
  0x61   : > { %s250_s20 = sshll.u32 %s3025_s19, 4  ;;  %s275_s23 = sshll.u32 %s3026_s22, 4  ;;  %s251_s20 = int_to_ptr.vmem [resolvable:$true] %s250_s20  ;;  %s276_s23 = int_to_ptr.vmem [resolvable:$true] %s275_s23 }
  0x62   : > { %s2813_s16 = scalar_lea.hbm %s3762_s2, 3072 }
  0x63   : > { %p2814_p1 = scmp.ne.s32.totalorder %s3762_s2, %s2813_s16  ;;  %p2820_p12 = scmp.lt.u32.totalorder %s2813_s16, %s3762_s2 }
  0x65   : > { %p2816_p3 = pnand %p2814_p1, %p3143_p7 }
  0x67   : > { %p2817_p11 = pneg %p2816_p3 }
  0x69   : > { %p2822_p13 = pnand %p2820_p12, %p2817_p11 }
  0x6b   : > { %2825 = shalt.err (!%p2822_p13)
}
  0x6c   : > { %s2826_s15 = scalar_lea.vmem %s251_s20, 3072  ;;  %p2834_p6 = scmp.lt.s32.totalorder %s251_s20, %s251_s20 }
  0x6d   : > { %p2827_p0 = scmp.ne.s32.totalorder %s251_s20, %s2826_s15  ;;  %p2835_p8 = scmp.lt.s32.totalorder %s2826_s15, %s2826_s15 }
  0x6f   : > { %p2829_p2 = pnand %p2827_p0, %p3143_p7  ;;  %p2836_p9 = por %p2835_p8, %p2834_p6 }
  0x71   : > { %p2830_p4 = pneg %p2829_p2 }
  0x73   : > { %p2837_p10 = pnand %p2836_p9, %p2830_p4 }
  0x75   : > { %2840 = shalt.err (!%p2837_p10)
}
  0x76   : > { %s3784_s12 = smov 12   ;;  %s3785_s14 = smov 192  }
  0x77   : > { %2495 = dma.hbm_to_vmem [thread:$0]  (!%p3127_p5), %s3762_s2, 3072, %s251_s20, [#allocation8], %s3785_s14, %s3785_s14, %s3784_s12  }
  0x78   : > { %s2841_s17 = scalar_lea.hbm %s3764_s4, 16 }
  0x79   : > { %p2842_p1 = scmp.ne.s32.totalorder %s3764_s4, %s2841_s17  ;;  %p2848_p12 = scmp.lt.u32.totalorder %s2841_s17, %s3764_s4 }
  0x7b   : > { %p2844_p3 = pnand %p2842_p1, %p3143_p7 }
  0x7d   : > { %p2845_p11 = pneg %p2844_p3 }
  0x7f   : > { %p2850_p13 = pnand %p2848_p12, %p2845_p11 }
  0x81   : > { %2853 = shalt.err (!%p2850_p13)
}
  0x82   : > { %s2854_s10 = scalar_lea.vmem %s276_s23, 16  ;;  %s2861_s20 = scalar_lea.vmem %s276_s23, 32 }
  0x83   : > { %p2855_p0 = scmp.ne.s32.totalorder %s276_s23, %s2854_s10  ;;  %p2862_p6 = scmp.lt.s32.totalorder %s276_s23, %s276_s23 }
  0x84   : > { %p2863_p8 = scmp.lt.s32.totalorder %s2861_s20, %s2854_s10 }
  0x85   : > { %p2857_p2 = pnand %p2855_p0, %p3143_p7 }
  0x86   : > { %p2864_p9 = por %p2863_p8, %p2862_p6 }
  0x87   : > { %p2858_p4 = pneg %p2857_p2 }
  0x89   : > { %p2865_p10 = pnand %p2864_p9, %p2858_p4 }
  0x8b   : > { %2868 = shalt.err (!%p2865_p10)
}
  0x8c   : > { %2501 = dma.hbm_to_vmem [thread:$0]  (!%p3127_p5), %s3764_s4, 16, %s276_s23, [#allocation11]  }
  0x8d   : > { %s3027_s12 = smov [#allocation15]   ;;  %s2869_s13 = scalar_lea.hbm %s3766_s6, 16 }
  0x8e   : > { %s299_s14 = sshll.u32 %s3027_s12, 4  ;;  %p2870_p1 = scmp.ne.s32.totalorder %s3766_s6, %s2869_s13  ;;  %s300_s14 = int_to_ptr.vmem [resolvable:$true] %s299_s14 }
  0x8f   : > { %p2876_p12 = scmp.lt.u32.totalorder %s2869_s13, %s3766_s6 }
  0x90   : > { %p2872_p3 = pnand %p2870_p1, %p3143_p7 }
  0x92   : > { %p2873_p11 = pneg %p2872_p3 }
  0x94   : > { %p2878_p13 = pnand %p2876_p12, %p2873_p11 }
  0x96   : > { %2881 = shalt.err (!%p2878_p13)
}
  0x97   : > { %s2882_s23 = scalar_lea.vmem %s300_s14, 16  ;;  %s2889_s22 = scalar_lea.vmem %s300_s14, 32 }
  0x98   : > { %p2883_p0 = scmp.ne.s32.totalorder %s300_s14, %s2882_s23  ;;  %p2890_p6 = scmp.lt.s32.totalorder %s300_s14, %s300_s14 }
  0x99   : > { %p2891_p8 = scmp.lt.s32.totalorder %s2889_s22, %s2882_s23 }
  0x9a   : > { %p2885_p2 = pnand %p2883_p0, %p3143_p7 }
  0x9b   : > { %p2892_p9 = por %p2891_p8, %p2890_p6 }
  0x9c   : > { %p2886_p4 = pneg %p2885_p2 }
  0x9e   : > { %p2893_p10 = pnand %p2892_p9, %p2886_p4 }
  0xa0   : > { %2896 = shalt.err (!%p2893_p10)
}
  0xa1   : > { %2507 = dma.hbm_to_vmem [thread:$0]  (!%p3127_p5), %s3766_s6, 16, %s300_s14, [#allocation14]  }
  0xa2   : > { %s33_s21 = sadd.s32 1, %s3012_s27  ;;  %p2997_p1 = scmp.ne.s32.totalorder %s3004_s25, 0 }
  0xa3   : > { %p34_p7 = scmp.ge.s32.totalorder %s33_s21, 2  ;;  %p57_p3 = scmp.eq.s32.totalorder %s3016_s28, 0 }
  0xa4   : > { %p62_p11 = scmp.ne.s32.totalorder %s3004_s25, %s3000_s24  ;;  %p2518_p13 = scmp.lt.s32.totalorder %s3016_s28, 2 }
  0xa5   : > { %s3799_s21 = smov (%p34_p7, %s33_s21), 0  ;;  %p58_p12 = por %p2997_p1, %p57_p3 }
  0xa6   : > { %p3786_p0 = scmp.ne.s32.totalorder %s3778_s30, 0  ;;  %s3028_s20 = smov [#allocation4]  }
  0xa7   : > { %s324_s16 = sshll.u32 %s3028_s20, 4  ;;  %p3281_p4 = pnand %p2518_p13, %p58_p12  ;;  %s325_s16 = int_to_ptr.vmem [resolvable:$true] %s324_s16 }
  0xa8   : > { %p3277_p2 = por %p3786_p0, %p62_p11  ;;  %s2897_s1 = scalar_lea.hbm %s3760_s0, 128 }
  0xa9   : > { %s3788_s15 = scalar_select %p3281_p4, 1, 0 }
  0xaa   : > { %s3787_s11 = scalar_select %p3277_p2, 1, 0 }
  0xab   : > { %p2898_p5 = scmp.ne.s32.totalorder %s3760_s0, %s2897_s1  ;;  %p2899_p6 = pneg %p3281_p4 }
  0xac   : > { %p2904_p10 = scmp.lt.u32.totalorder %s2897_s1, %s2897_s1  ;;  %p2906_p7 = scmp.lt.u32.totalorder %s2897_s1, %s3760_s0 }
  0xad   : > { %p2900_p8 = pnand %p2899_p6, %p2898_p5 }
  0xae   : > { %p2907_p1 = por %p2906_p7, %p2904_p10 }
  0xaf   : > { %p2901_p9 = pneg %p2900_p8 }
  0xb1   : > { %p2908_p3 = pnand %p2907_p1, %p2901_p9 }
  0xb3   : > { %2911 = shalt.err (!%p2908_p3)
}
  0xb4   : > { %s2912_s17 = scalar_lea.vmem %s325_s16, 128  ;;  %s2919_s18 = scalar_lea.vmem %s325_s16, 256 }
  0xb5   : > { %p2913_p11 = scmp.ne.s32.totalorder %s325_s16, %s2912_s17  ;;  %p2920_p0 = scmp.lt.s32.totalorder %s325_s16, %s325_s16 }
  0xb6   : > { %p2921_p2 = scmp.lt.s32.totalorder %s2919_s18, %s2912_s17 }
  0xb7   : > { %p2915_p12 = pnand %p2913_p11, %p2899_p6 }
  0xb8   : > { %p2922_p4 = por %p2921_p2, %p2920_p0 }
  0xb9   : > { %p2916_p13 = pneg %p2915_p12 }
  0xbb   : > { %p2923_p5 = pnand %p2922_p4, %p2916_p13 }
  0xbd   : > { %2926 = shalt.err (!%p2923_p5)
}
  0xbe   : > { %s3029_s19 = smov 16   ;;  %s3030_s23 = smov 1  }
  0xbf   : > { %p3789_p8 = scmp.ne.s32.totalorder %s3788_s15, 0  ;;  %p3790_p9 = scmp.ne.s32.totalorder %s3779_s8, 0 }
  0xc0   : > { %s338_s10 = sand.u32 (!%p3790_p9), 1, %s3004_s25   ;;  %p3791_p2 = scmp.ne.s32.totalorder (!%p3790_p9), %s3787_s11, 0 }
  0xc1   : > { %2511 = dma.hbm_to_vmem [thread:$0]  (!%p3789_p8), %s3760_s0, 128, %s325_s16, [#allocation5], %s3029_s19, %s3029_s19, %s3030_s23  }
  0xc2   : > { %336 = sbr.rel (%p3790_p9) target bundleno = 2843 (0xb1b), region = 48  ;;  %s2084_s20 = sshll.u32 (!%p3790_p9), %s338_s10, 3 }
  0xc3   : > { %s339_s12 = scalar_lea.sflag (!%p3790_p9), [#allocation5], %s338_s10  ;;  %s3304_s14 = scalar_lea.vmem (!%p3790_p9), [#allocation4], %s2084_s20 }
  0xc9   : > { %2978 = dma.done.wait (%p3791_p2), %s339_s12, 128  }
  0xca   : > { %2980 = vsyncadd (%p3791_p2), %s339_s12, 4294967168  ;;  %p3792_p4 = scmp.ne.s32.totalorder %s3778_s30, 0 }
  0xcc   : > { %2982 = dma.done.wait (%p3792_p4), [#allocation8], 3456  }
  0xcd   : > { %2984 = vsyncadd (%p3792_p4), [#allocation8], 4294963840 }
  0xce   : > { %2986 = dma.done.wait (%p3792_p4), [#allocation11], 64  }
  0xcf   : > { %2988 = vsyncadd (%p3792_p4), [#allocation11], 4294967232 }
  0xd0   : > { %2990 = dma.done.wait (%p3792_p4), [#allocation14], 1040  }
  0xd1   : > { %2992 = vsyncadd (%p3792_p4), [#allocation14], 4294966256  ;;  %p2091_p6 = scmp.ne.s32.totalorder %s3008_s26, 0 }
  0xd2   : > { %v3031_v0 = vmov (!%p2091_p6), 0.0  }
  0xd3   : > { %399 = sbr.rel (%p2091_p6) target bundleno = 218 (0xda), region = 80  ;;  %400 = vst [vmem:[#allocation2] sm:$0x3] (!%p2091_p6), %v3031_v0 }
  0xda PF: > { %p2092_p10 = scmp.ge.s32.totalorder %s3008_s26, 1 }
  0xdb   : > { %v2599_v1 = vld [vmem:[#allocation7 + $0x4] ss:$12 sps:$4 sm:$0xff] (!%p2092_p10)   ;;  %v3032_v2 = vmov (!%p2092_p10), 0.0   ;;  %v2601_v3 = vld [vmem:[#allocation7] ss:$12 sps:$4 sm:$0xff] (!%p2092_p10)   ;;  %v3033_v4 = vmov (!%p2092_p10), 0   ;;  %v431_v6 = vlaneseq (!%p2092_p10) }
  0xdc   : > { %404 = sbr.rel (%p2092_p10) target bundleno = 464 (0x1d0), region = 84  ;;  %2273 = vmatprep.subr.bf16.mxu1 (!%p2092_p10), %v3032_v2  ;;  %555 = vmatprep.mubr.bf16.mxu0 (!%p2092_p10), %v3033_v4  ;;  %v2602_v5 = vld [vmem:[#allocation7 + $0x8] ss:$12 sps:$4 sm:$0xff] (!%p2092_p10)   ;;  %vm3034_vm0 = vmmov (!%p2092_p10), 0   ;;  %v417_v7 = vld [vmem:[%s3304_s14] sm:$0x1] (!%p2092_p10) }
  0xdd   : > { %523 = vmatprep.subr.bf16.mxu0 (!%p2092_p10), %v2599_v1  ;;  %2275 = vmatprep.mubr.msk.bf16.mxu1 (!%p2092_p10), %vm3034_vm0, %v3032_v2  ;;  %v418_v8 = vld [vmem:[%s3304_s14 + $0x1] sm:$0x1] (!%p2092_p10)  ;;  %v419_v9 = vld [vmem:[%s3304_s14 + $0x2] sm:$0x1] (!%p2092_p10)  ;;  %v420_v10 = vld [vmem:[%s3304_s14 + $0x3] sm:$0x1] (!%p2092_p10) }
  0xde   : > { %524 = vmatpush1.bf16.msra.mxu0 (!%p2092_p10), %v2601_v3  ;;  %2274 = vmatpush3.bf16.msra.mxu1 (!%p2092_p10), %v2602_v5  ;;  %v421_v11 = vld [vmem:[%s3304_s14 + $0x4] sm:$0x1] (!%p2092_p10)  ;;  %v422_v12 = vld [vmem:[%s3304_s14 + $0x5] sm:$0x1] (!%p2092_p10)  ;;  %v423_v13 = vld [vmem:[%s3304_s14 + $0x6] sm:$0x1] (!%p2092_p10)  ;;  %v454_v18 = vcombine.low (!%p2092_p10), %v417_v7, %v418_v8  ;;  %v455_v19 = vcombine.low (!%p2092_p10), %v419_v9, %v420_v10 }
  0xdf   : > { %v424_v14 = vld [vmem:[%s3304_s14 + $0x7] sm:$0x1] (!%p2092_p10)  ;;  %v432_v15 = vshrl.u32 (!%p2092_p10), %v431_v6, 7  ;;  %v3035_v16 = vmov (!%p2092_p10), 1966171168   ;;  %v456_v20 = vcombine.low (!%p2092_p10), %v421_v11, %v422_v12  ;;  %vm519_vm1 = vcmask (!%p2092_p10), 130048  }
  0xe0   : > { %v459_v17 = vunpack.c.l.s4 (!%p2092_p10), %v3035_v16  ;;  %v457_v21 = vcombine.low (!%p2092_p10), %v423_v13, %v424_v14  ;;  %s406_s30 = ssub.s32 (!%p2092_p10), 0, %s3008_s26  ;;  %p405_p7 = scmp.lt.s32.totalorder (!%p2092_p10), %s3008_s26, 0  ;;  %v3036_v35 = vmov (!%p2092_p10), 1983009808   ;;  %v429_v37 = vld [vmem:[#allocation10] sm:$0x7] (!%p2092_p10) }
  0xe1   : > { %s2093_s8 = smin.u32 (!%p2092_p10), %s3008_s26, %s406_s30  ;;  %v433_v33 = vsub.s32 (!%p2092_p10), 0, %v432_v15  ;;  %v441_v34 = vsub.s32 (!%p2092_p10), 2, %v432_v15  ;;  %v618_v36 = vunpack.c.l.s4 (!%p2092_p10), %v3036_v35  ;;  %v437_v38 = vsub.s32 (!%p2092_p10), 1, %v432_v15 }
  0xe2   : > { %v460_v22 = vunpack.c.0.s8 (!%p2092_p10), %v459_v17  ;;  %s408_s11 = sand.u32 (!%p2092_p10), 1, %s2093_s8  }
  0xe3   : > { %s409_s16 = ssub.s32 0, %s408_s11  ;;  %v434_v39 = vrot.slane %v429_v37, %v433_v33  ;;  %v442_v40 = vrot.slane %v429_v37, %v441_v34  ;;  %v619_v41 = vunpack.c.0.s8 %v618_v36  ;;  %v438_v42 = vrot.slane %v429_v37, %v437_v38 }
  0xe4   : > { %v463_v23 = vsub.s32 %v460_v22, %v432_v15  ;;  %s3801_s16 = smov (!%p405_p7, %s409_s16), %s408_s11 }
  0xe5   : > { %p2095_p1 = scmp.lt.s32.totalorder %s3801_s16, 0  ;;  %s415_s15 = sadd.s32 2, %s3801_s16  ;;  %v622_v47 = vsub.s32 %v619_v41, %v432_v15 }
  0xe6   : > { %v464_v24 = vrot.slane %v454_v18, %v463_v23  ;;  %v471_v25 = vrot.slane %v455_v19, %v463_v23  ;;  %v478_v26 = vrot.slane %v456_v20, %v463_v23  ;;  %v485_v27 = vrot.slane %v457_v21, %v463_v23 }
  0xe7   : > { %s3803_s15 = smov (!%p2095_p1, %s415_s15), %s3801_s16 }
  0xe8   : > { %v486_v28 = vcombine.low %v464_v24, %v471_v25  ;;  %v487_v29 = vcombine.low %v478_v26, %v485_v27  ;;  %s2188_s1 = smul.u32 48, %s3803_s15 }
  0xea   : > { %v494_v30 = vrot.slane %v486_v28, %v463_v23  ;;  %v501_v31 = vrot.slane %v487_v29, %v463_v23  ;;  %s694_s24 = scalar_lea.vmem [#allocation3], %s2188_s1 }
  0xec   : > { %v502_v32 = vcombine.low %v494_v30, %v501_v31 }
  0xee   : > { %2099 = vmatmul.mubr.msk.bf16.vlgmr.msra.gmra.mrb[0].mxu0 %vm519_vm1, %v502_v32  ;;  %2276 = vmatmul.mubr.msk.bf16.vlgmr.msra.gmra.mrb[0].mxu1 %vm519_vm1, %v502_v32 }
 0x1c1   : > { %v557_v43 = vpop.f32.mrb[0].mxu0  ;;  %v600_v44 = vpop.f32.mrb[0].mxu1 }
 0x1c2   : > { %v558_v45 = vadd.f32 %v557_v43, %v434_v39  ;;  %v601_v46 = vadd.f32 %v600_v44, %v442_v40  ;;  %v559_v48 = vpop.f32.mrb[1].mxu0  ;;  %v2277_v49 = vpop.f32.mrb[1].mxu1 }
 0x1c3   : > { %v560_v50 = vadd.f32 %v559_v48, %v438_v42  ;;  %v561_v51 = vpop.f32.mrb[2].mxu0  ;;  %v603_v52 = vpop.f32.mrb[2].mxu1 }
 0x1c4   : > { %v616_v53 = vcombine.high %v601_v46, %v601_v46  ;;  %v562_v54 = vadd.f32 %v561_v51, %v434_v39  ;;  %v604_v55 = vadd.f32 %v603_v52, %v442_v40  ;;  %v563_v56 = vpop.f32.mrb[3].mxu0  ;;  %v2278_v57 = vpop.f32.mrb[3].mxu1  ;;  %v637_v61 = vrot.slane %v601_v46, %v622_v47 }
 0x1c5   : > { %v614_v58 = vcombine.low %v558_v45, %v560_v50  ;;  %v615_v59 = vcombine.high %v558_v45, %v560_v50  ;;  %v564_v60 = vadd.f32 %v563_v56, %v438_v42 }
 0x1c6   : > { %v644_v62 = vrot.slane %v616_v53, %v622_v47  ;;  %v651_v63 = vcombine.high %v604_v55, %v604_v55  ;;  %v672_v9 = vrot.slane %v604_v55, %v622_v47 }
 0x1c7   : > { %v623_v0 = vrot.slane %v614_v58, %v622_v47  ;;  %v630_v1 = vrot.slane %v615_v59, %v622_v47  ;;  %v649_v2 = vcombine.low %v562_v54, %v564_v60  ;;  %v650_v3 = vcombine.high %v562_v54, %v564_v60 }
 0x1c8   : > { %v679_v4 = vrot.slane %v651_v63, %v622_v47 }
 0x1c9   : > { %v645_v5 = vcombine.low %v623_v0, %v637_v61  ;;  %v646_v6 = vcombine.high %v623_v0, %v637_v61  ;;  %v647_v7 = vcombine.low %v630_v1, %v644_v62  ;;  %v648_v8 = vcombine.high %v630_v1, %v644_v62 }
 0x1ca   : > { %v658_v10 = vrot.slane %v649_v2, %v622_v47  ;;  %v665_v11 = vrot.slane %v650_v3, %v622_v47 }
 0x1cb   : > { %695 = vst [vmem:[%s694_s24] sm:$0x3f] %v645_v5  ;;  %696 = vst [vmem:[%s694_s24 + $0x6] sm:$0x3f] %v646_v6 }
 0x1cc   : > { %697 = vst [vmem:[%s694_s24 + $0xc] sm:$0x3f] %v647_v7  ;;  %698 = vst [vmem:[%s694_s24 + $0x12] sm:$0x3f] %v648_v8  ;;  %v680_v12 = vcombine.low %v658_v10, %v672_v9  ;;  %v681_v13 = vcombine.high %v658_v10, %v672_v9  ;;  %v682_v14 = vcombine.low %v665_v11, %v679_v4 }
 0x1cd   : > { %v683_v15 = vcombine.high %v665_v11, %v679_v4 }
 0x1ce   : > { %699 = vst [vmem:[%s694_s24 + $0x18] sm:$0x3f] %v680_v12  ;;  %700 = vst [vmem:[%s694_s24 + $0x1e] sm:$0x3f] %v681_v13 }
 0x1cf   : > { %701 = vst [vmem:[%s694_s24 + $0x24] sm:$0x3f] %v682_v14  ;;  %702 = vst [vmem:[%s694_s24 + $0x2a] sm:$0x3f] %v683_v15 }
 0x1d0 PF: > { %p2104_p3 = scmp.le.s32.totalorder %s3008_s26, 0 }
 0x1d1   : > { %v3339_v16 = vld [vmem:[#allocation9 + $0x4] ss:$12 sps:$4 sm:$0xff] (!%p2104_p3)   ;;  %v3341_v17 = vld [vmem:[#allocation9] ss:$12 sps:$4 sm:$0xff] (!%p2104_p3)   ;;  %v3037_v18 = vmov (!%p2104_p3), 0.0   ;;  %v3038_v19 = vmov (!%p2104_p3), 0  }
 0x1d2   : > { %706 = sbr.rel (%p2104_p3) target bundleno = 2818 (0xb02), region = 88  ;;  %2279 = vmatprep.subr.bf16.mxu1 (!%p2104_p3), %v3037_v18  ;;  %919 = vmatprep.mubr.bf16.mxu0 (!%p2104_p3), %v3038_v19  ;;  %v3346_v20 = vld [vmem:[#allocation9 + $0x1c] ss:$12 sps:$4 sm:$0xff] (!%p2104_p3)   ;;  %vm3039_vm2 = vmmov (!%p2104_p3), 0   ;;  %v3351_v21 = vld [vmem:[#allocation9 + $0x18] ss:$12 sps:$4 sm:$0xff] (!%p2104_p3)  }
 0x1d3   : > { %887 = vmatprep.subr.bf16.mxu0 (!%p2104_p3), %v3339_v16  ;;  %2295 = vmatprep.mubr.msk.bf16.mxu1 (!%p2104_p3), %vm3039_vm2, %v3037_v18  ;;  %v3354_v22 = vld [vmem:[#allocation9 + $0x34] ss:$12 sps:$4 sm:$0xff] (!%p2104_p3)   ;;  %v3357_v23 = vld [vmem:[#allocation9 + $0x30] ss:$12 sps:$4 sm:$0xff] (!%p2104_p3)   ;;  %v3360_v24 = vld [vmem:[#allocation9 + $0x4c] ss:$12 sps:$4 sm:$0xff] (!%p2104_p3)  }
 0x1d4   : > { %888 = vmatpush1.bf16.msra.mxu0 (!%p2104_p3), %v3341_v17  ;;  %v3362_v25 = vld [vmem:[#allocation9 + $0x8] ss:$12 sps:$4 sm:$0xff] (!%p2104_p3)   ;;  %v3369_v27 = vld [vmem:[#allocation9 + $0x64] ss:$12 sps:$4 sm:$0xff] (!%p2104_p3)   ;;  %v3372_v28 = vld [vmem:[#allocation9 + $0x20] ss:$12 sps:$4 sm:$0xff] (!%p2104_p3)  }
 0x1d5   : > { %889 = vmatprep.subr.bf16.mxu0 (!%p2104_p3), %v3346_v20  ;;  %v3365_v26 = vld [vmem:[#allocation9 + $0x48] ss:$12 sps:$4 sm:$0xff] (!%p2104_p3)   ;;  %2280 = vmatpush3.bf16.msra.mxu1 (!%p2104_p3), %v3362_v25  ;;  %v3374_v29 = vld [vmem:[#allocation9 + $0x60] ss:$12 sps:$4 sm:$0xff] (!%p2104_p3)   ;;  %v3378_v30 = vld [vmem:[#allocation9 + $0x38] ss:$12 sps:$4 sm:$0xff] (!%p2104_p3)  }
 0x1d6   : > { %2281 = vmatprep.subr.bf16.mxu1 (!%p2104_p3), %v3037_v18  ;;  %v3381_v31 = vld [vmem:[#allocation9 + $0x7c] ss:$12 sps:$4 sm:$0xff] (!%p2104_p3)   ;;  %v3385_v32 = vld [vmem:[#allocation9 + $0x78] ss:$12 sps:$4 sm:$0xff] (!%p2104_p3)   ;;  %v3391_v34 = vld [vmem:[#allocation9 + $0x94] ss:$12 sps:$4 sm:$0xff] (!%p2104_p3)  }
 0x1d7   : > { %v3388_v33 = vld [vmem:[#allocation9 + $0x50] ss:$12 sps:$4 sm:$0xff] (!%p2104_p3)   ;;  %v3398_v36 = vld [vmem:[#allocation9 + $0x68] ss:$12 sps:$4 sm:$0xff] (!%p2104_p3)   ;;  %v3401_v37 = vld [vmem:[#allocation9 + $0xac] ss:$12 sps:$4 sm:$0xff] (!%p2104_p3)  }
 0x1d8   : > { %890 = vmatpush1.bf16.msra.mxu0 (!%p2104_p3), %v3351_v21  ;;  %v3395_v35 = vld [vmem:[#allocation9 + $0x90] ss:$12 sps:$4 sm:$0xff] (!%p2104_p3)   ;;  %v3405_v38 = vld [vmem:[#allocation9 + $0xa8] ss:$12 sps:$4 sm:$0xff] (!%p2104_p3)   ;;  %v3410_v40 = vld [vmem:[#allocation9 + $0x80] ss:$12 sps:$4 sm:$0xff] (!%p2104_p3)  }
 0x1d9   : > { %891 = vmatprep.subr.bf16.mxu0 %v3354_v22  ;;  %2282 = vmatpush3.bf16.msra.mxu1 %v3372_v28  ;;  %v3407_v39 = vld [vmem:[#allocation2] sm:$0x3]  ;;  %v3418_v42 = vld [vmem:[#allocation9 + $0x98] ss:$12 sps:$4 sm:$0xff]   ;;  %v3423_v43 = vld [vmem:[#allocation9 + $0xb0] ss:$12 sps:$4 sm:$0xff]  }
 0x1da   : > { %2283 = vmatprep.subr.bf16.mxu1 %v3037_v18  ;;  %v726_v41 = vpack.c.bf16 %v3407_v39, %v3407_v39  ;;  %s707_s3 = sadd.s32 1, %s3008_s26  ;;  %v3467_v60 = vld [vmem:[#allocation12] ss:$0 sm:$0xff]  ;;  %p2173_p13 = scmp.ne.s32.totalorder %s3008_s26, 1 }
 0x1db   : > { %s709_s13 = ssub.s32 0, %s707_s3  ;;  %p708_p11 = scmp.lt.s32.totalorder %s707_s3, 0  ;;  %vm3041_vm3 = vmmov (!%p2173_p13), 0  }
 0x1dc   : > { %892 = vmatpush1.bf16.msra.mxu0 %v3357_v23  ;;  %s2105_s29 = smin.u32 %s709_s13, %s707_s3 }
 0x1dd   : > { %893 = vmatprep.subr.bf16.mxu0 %v3360_v24  ;;  %2284 = vmatpush3.bf16.msra.mxu1 %v3378_v30  ;;  %s711_s17 = sand.u32 1, %s2105_s29  }
 0x1de   : > { %2285 = vmatprep.subr.bf16.mxu1 %v3037_v18  ;;  %s712_s18 = ssub.s32 0, %s711_s17 }
 0x1df   : > { %s3805_s18 = smov (!%p708_p11, %s712_s18), %s711_s17 }
 0x1e0   : > { %894 = vmatpush1.bf16.msra.mxu0 %v3365_v26  ;;  %p2107_p12 = scmp.lt.s32.totalorder %s3805_s18, 0  ;;  %s718_s19 = sadd.s32 2, %s3805_s18 }
 0x1e1   : > { %895 = vmatprep.subr.bf16.mxu0 %v3369_v27  ;;  %2286 = vmatpush3.bf16.msra.mxu1 %v3388_v33 }
 0x1e2   : > { %2287 = vmatprep.subr.bf16.mxu1 %v3037_v18  ;;  %s3807_s19 = smov (!%p2107_p12, %s718_s19), %s3805_s18 }
 0x1e3   : > { %s2189_s23 = smul.u32 48, %s3807_s19 }
 0x1e4   : > { %896 = vmatpush1.bf16.msra.mxu0 %v3374_v29 }
 0x1e5   : > { %897 = vmatprep.subr.bf16.mxu0 %v3381_v31  ;;  %2288 = vmatpush3.bf16.msra.mxu1 %v3398_v36  ;;  %s3464_s22 = scalar_lea.vmem [#allocation3], %s2189_s23 }
 0x1e6   : > { %2289 = vmatprep.subr.bf16.mxu1 %v3037_v18  ;;  %v725_v44 = vld [vmem:[%s3464_s22] sm:$0x3f]  ;;  %v2140_v10 = vld [vmem:[%s3464_s22 + $0x6] sm:$0x3f] }
 0x1e7   : > { %v976_v51 = vrot.slane %v725_v44, 2  ;;  %v994_v63 = vrot.slane %v725_v44, 4 }
 0x1e8   : > { %898 = vmatpush1.bf16.msra.mxu0 %v3385_v32 }
 0x1e9   : > { %899 = vmatprep.subr.bf16.mxu0 %v3391_v34  ;;  %2290 = vmatpush3.bf16.msra.mxu1 %v3410_v40 }
 0x1ea   : > { %2291 = vmatprep.subr.bf16.mxu1 %v3037_v18 }
 0x1ec   : > { %900 = vmatpush1.bf16.msra.mxu0 %v3395_v35 }
 0x1ed   : > { %901 = vmatprep.subr.bf16.mxu0 %v3401_v37  ;;  %2292 = vmatpush3.bf16.msra.mxu1 %v3418_v42 }
 0x1ee   : > { %2293 = vmatprep.subr.bf16.mxu1 %v3037_v18 }
 0x1f0   : > { %902 = vmatpush1.bf16.msra.mxu0 %v3405_v38 }
 0x1f1   : > { %1007 = vmatprep.subr.bf16.mxu0 %v3339_v16  ;;  %2294 = vmatpush3.bf16.msra.mxu1 %v3423_v43 }
 0x1f2   : > { %2299 = vmatprep.subr.bf16.mxu1 %v3037_v18 }
 0x1f3   : > { %920 = vmatmul.mubr.bf16.vlgmr.msra.gmra.mrb[0].mxu0 %v726_v41 }
 0x1f4   : > { %1008 = vmatpush1.bf16.msra.mxu0 %v3341_v17  ;;  %1039 = vmatprep.mubr.bf16.mxu0 %v3038_v19 }
 0x1f5   : > { %1009 = vmatprep.subr.bf16.mxu0 %v3346_v20  ;;  %2296 = vmatmul.mubr.bf16.vlgmr.msra.gmra.mrb[0].mxu1 %v726_v41 }
 0x1f6   : > { %2300 = vmatpush3.bf16.msra.mxu1 %v3362_v25  ;;  %2315 = vmatprep.mubr.msk.bf16.mxu1 %vm3039_vm2, %v3037_v18 }
 0x1f7   : > { %2301 = vmatprep.subr.bf16.mxu1 %v3037_v18 }
 0x1f8   : > { %1010 = vmatpush1.bf16.msra.mxu0 %v3351_v21 }
 0x1f9   : > { %1011 = vmatprep.subr.bf16.mxu0 %v3354_v22 }
 0x1fa   : > { %2302 = vmatpush3.bf16.msra.mxu1 %v3372_v28 }
 0x1fb   : > { %2303 = vmatprep.subr.bf16.mxu1 %v3037_v18 }
 0x1fc   : > { %1012 = vmatpush1.bf16.msra.mxu0 %v3357_v23 }
 0x1fd   : > { %1013 = vmatprep.subr.bf16.mxu0 %v3360_v24 }
 0x1fe   : > { %2304 = vmatpush3.bf16.msra.mxu1 %v3378_v30 }
 0x1ff   : > { %2305 = vmatprep.subr.bf16.mxu1 %v3037_v18 }
 0x200   : > { %1014 = vmatpush1.bf16.msra.mxu0 %v3365_v26 }
 0x201   : > { %1015 = vmatprep.subr.bf16.mxu0 %v3369_v27 }
 0x202   : > { %2306 = vmatpush3.bf16.msra.mxu1 %v3388_v33 }
 0x203   : > { %2307 = vmatprep.subr.bf16.mxu1 %v3037_v18 }
 0x204   : > { %1016 = vmatpush1.bf16.msra.mxu0 %v3374_v29 }
 0x205   : > { %1017 = vmatprep.subr.bf16.mxu0 %v3381_v31 }
 0x206   : > { %2308 = vmatpush3.bf16.msra.mxu1 %v3398_v36 }
 0x207   : > { %2309 = vmatprep.subr.bf16.mxu1 %v3037_v18 }
 0x208   : > { %1018 = vmatpush1.bf16.msra.mxu0 %v3385_v32 }
 0x209   : > { %1019 = vmatprep.subr.bf16.mxu0 %v3391_v34 }
 0x20a   : > { %2310 = vmatpush3.bf16.msra.mxu1 %v3410_v40 }
 0x20b   : > { %2311 = vmatprep.subr.bf16.mxu1 %v3037_v18 }
 0x20c   : > { %1020 = vmatpush1.bf16.msra.mxu0 %v3395_v35 }
 0x20d   : > { %1021 = vmatprep.subr.bf16.mxu0 %v3401_v37 }
 0x20e   : > { %2312 = vmatpush3.bf16.msra.mxu1 %v3418_v42 }
 0x20f   : > { %2313 = vmatprep.subr.bf16.mxu1 %v3037_v18 }
 0x210   : > { %1022 = vmatpush1.bf16.msra.mxu0 %v3405_v38 }
 0x211   : > { %1120 = vmatprep.subr.bf16.mxu0 %v3339_v16 }
 0x212   : > { %2314 = vmatpush3.bf16.msra.mxu1 %v3423_v43 }
 0x213   : > { %2319 = vmatprep.subr.bf16.mxu1 %v3037_v18 }
 0x2c6   : > { %v921_v45 = vpop.f32.mrb[0].mxu0 }
 0x2c7   : > { %v968_v46 = vadd.f32 %v921_v45, %v725_v44  ;;  %v923_v47 = vpop.f32.mrb[1].mxu0 }
 0x2c8   : > { %v925_v48 = vpop.f32.mrb[2].mxu0  ;;  %v962_v52 = vpop.f32.mrb[0].mxu1  ;;  %v978_v53 = vadd.f32 %v976_v51, %v923_v47  ;;  %v1096_v47 = vrot.slane %v2140_v10, 2 }
 0x2c9   : > { %v2135_v49 = vmul.f32 -1.442695, %v968_v46  ;;  %v926_v50 = vpop.f32.mrb[3].mxu0  ;;  %v2297_v54 = vpop.f32.mrb[1].mxu1  ;;  %v992_v61 = vadd.f32 %v3467_v60, %v962_v52 }
 0x2ca   : > { %v965_v55 = vpop.f32.mrb[2].mxu1  ;;  %v2136_v57 = vmul.f32 -1.442695, %v978_v53  ;;  %v1107_v53 = vrot.slane %v2140_v10, 4 }
 0x2cb   : > { %2635 = vpow2.f32 %v2135_v49  ;;  %v2298_v56 = vpop.f32.mrb[3].mxu1 }
 0x2cc   : > { %2637 = vpow2.f32 %v2136_v57 }
 0x2d5   : > { %v2636_v58 = vpop.eup %2635 }
 0x2d6   : > { %v972_v59 = vadd.f32 1.0, %v2636_v58  ;;  %v2638_v62 = vpop.eup %2637 }
 0x2d7   : > { %v982_v2 = vadd.f32 1.0, %v2638_v62 }
 0x2d8   : > { %2639 = vrcp.f32 %v972_v59 }
 0x2e2   : > { %v2640_v0 = vpop.eup %2639 }
 0x2e3   : > { %v993_v1 = vmul.f32 %v2640_v0, %v992_v61 }
 0x2e5   : > { %v996_v3 = vadd.f32 %v994_v63, %v993_v1 }
 0x2e7   : > { %2641 = vtanh.f32 %v996_v3 }
 0x2e8   : > { %2643 = vrcp.f32 %v982_v2  ;;  %v2145_v2 = vld [vmem:[%s3464_s22 + $0xc] sm:$0x3f] }
 0x2f1   : > { %v2642_v4 = vpop.eup %2641 }
 0x2f2   : > { %v998_v5 = vsub.f32 %v3407_v39, %v2642_v4  ;;  %v2644_v6 = vpop.eup %2643 }
 0x2f4   : > { %v999_v7 = vmul.f32 %v2644_v6, %v998_v5 }
 0x2f6   : > { %v3471_v8 = vadd.f32 %v2642_v4, %v999_v7 }
 0x2f8   : > { %v1006_v9 = vpack.c.bf16 %v3471_v8, %v3471_v8 }
 0x2fa   : > { %1040 = vmatmul.mubr.bf16.vlgmr.msra.gmra.mrb[4].mxu0 %v1006_v9  ;;  %2316 = vmatmul.mubr.bf16.vlgmr.msra.gmra.mrb[4].mxu1 %v1006_v9 }
 0x2fb   : > { %1121 = vmatpush1.bf16.msra.mxu0 %v3341_v17  ;;  %2320 = vmatpush3.bf16.msra.mxu1 %v3362_v25 }
 0x2fc   : > { %1122 = vmatprep.subr.bf16.mxu0 %v3346_v20  ;;  %2321 = vmatprep.subr.bf16.mxu1 %v3037_v18 }
 0x2fd   : > { %1152 = vmatprep.mubr.bf16.mxu0 %v3038_v19  ;;  %2335 = vmatprep.mubr.msk.bf16.mxu1 %vm3039_vm2, %v3037_v18 }
 0x2ff   : > { %1123 = vmatpush1.bf16.msra.mxu0 %v3351_v21  ;;  %2322 = vmatpush3.bf16.msra.mxu1 %v3372_v28 }
 0x300   : > { %1124 = vmatprep.subr.bf16.mxu0 %v3354_v22  ;;  %2323 = vmatprep.subr.bf16.mxu1 %v3037_v18 }
 0x303   : > { %1125 = vmatpush1.bf16.msra.mxu0 %v3357_v23  ;;  %2324 = vmatpush3.bf16.msra.mxu1 %v3378_v30 }
 0x304   : > { %1126 = vmatprep.subr.bf16.mxu0 %v3360_v24  ;;  %2325 = vmatprep.subr.bf16.mxu1 %v3037_v18 }
 0x307   : > { %1127 = vmatpush1.bf16.msra.mxu0 %v3365_v26  ;;  %2326 = vmatpush3.bf16.msra.mxu1 %v3388_v33 }
 0x308   : > { %1128 = vmatprep.subr.bf16.mxu0 %v3369_v27  ;;  %2327 = vmatprep.subr.bf16.mxu1 %v3037_v18 }
 0x30b   : > { %1129 = vmatpush1.bf16.msra.mxu0 %v3374_v29  ;;  %2328 = vmatpush3.bf16.msra.mxu1 %v3398_v36 }
 0x30c   : > { %1130 = vmatprep.subr.bf16.mxu0 %v3381_v31  ;;  %2329 = vmatprep.subr.bf16.mxu1 %v3037_v18 }
 0x30f   : > { %1131 = vmatpush1.bf16.msra.mxu0 %v3385_v32  ;;  %2330 = vmatpush3.bf16.msra.mxu1 %v3410_v40 }
 0x310   : > { %1132 = vmatprep.subr.bf16.mxu0 %v3391_v34  ;;  %2331 = vmatprep.subr.bf16.mxu1 %v3037_v18 }
 0x313   : > { %1133 = vmatpush1.bf16.msra.mxu0 %v3395_v35  ;;  %2332 = vmatpush3.bf16.msra.mxu1 %v3418_v42 }
 0x314   : > { %1134 = vmatprep.subr.bf16.mxu0 %v3401_v37  ;;  %2333 = vmatprep.subr.bf16.mxu1 %v3037_v18 }
 0x317   : > { %1135 = vmatpush1.bf16.msra.mxu0 %v3405_v38  ;;  %2334 = vmatpush3.bf16.msra.mxu1 %v3423_v43 }
 0x318   : > { %1233 = vmatprep.subr.bf16.mxu0 %v3339_v16  ;;  %2339 = vmatprep.subr.bf16.mxu1 %v3037_v18 }
 0x3cd   : > { %v1041_v11 = vpop.f32.mrb[4].mxu0  ;;  %v1082_v12 = vpop.f32.mrb[4].mxu1 }
 0x3ce   : > { %v1088_v13 = vadd.f32 %v2140_v10, %v1041_v11  ;;  %v1043_v14 = vpop.f32.mrb[5].mxu0  ;;  %v2317_v15 = vpop.f32.mrb[5].mxu1  ;;  %v1105_v54 = vadd.f32 %v3467_v60, %v1082_v12 }
 0x3cf   : > { %v1045_v39 = vpop.f32.mrb[6].mxu0  ;;  %v1085_v41 = vpop.f32.mrb[6].mxu1  ;;  %v1098_v48 = vadd.f32 %v1096_v47, %v1043_v14 }
 0x3d0   : > { %v2141_v44 = vmul.f32 -1.442695, %v1088_v13  ;;  %v1046_v45 = vpop.f32.mrb[7].mxu0  ;;  %v2318_v46 = vpop.f32.mrb[7].mxu1  ;;  %v1209_v13 = vrot.slane %v2145_v2, 2 }
 0x3d1   : > { %v2142_v49 = vmul.f32 -1.442695, %v1098_v48  ;;  %v1220_v45 = vrot.slane %v2145_v2, 4 }
 0x3d2   : > { %2645 = vpow2.f32 %v2141_v44 }
 0x3d3   : > { %2647 = vpow2.f32 %v2142_v49 }
 0x3dc   : > { %v2646_v50 = vpop.eup %2645 }
 0x3dd   : > { %v1092_v51 = vadd.f32 1.0, %v2646_v50  ;;  %v2648_v52 = vpop.eup %2647 }
 0x3de   : > { %v1102_v58 = vadd.f32 1.0, %v2648_v52 }
 0x3df   : > { %2649 = vrcp.f32 %v1092_v51 }
 0x3e9   : > { %v2650_v55 = vpop.eup %2649 }
 0x3ea   : > { %v1106_v56 = vmul.f32 %v2650_v55, %v1105_v54 }
 0x3ec   : > { %v1109_v57 = vadd.f32 %v1107_v53, %v1106_v56 }
 0x3ee   : > { %2651 = vtanh.f32 %v1109_v57  ;;  %v2150_v57 = vld [vmem:[%s3464_s22 + $0x12] sm:$0x3f] }
 0x3ef   : > { %2653 = vrcp.f32 %v1102_v58 }
 0x3f8   : > { %v2652_v59 = vpop.eup %2651 }
 0x3f9   : > { %v1111_v61 = vsub.f32 %v3471_v8, %v2652_v59  ;;  %v2654_v62 = vpop.eup %2653 }
 0x3fb   : > { %v1112_v63 = vmul.f32 %v2654_v62, %v1111_v61 }
 0x3fd   : > { %v3513_v0 = vadd.f32 %v2652_v59, %v1112_v63 }
 0x3ff   : > { %v1119_v1 = vpack.c.bf16 %v3513_v0, %v3513_v0 }
 0x401   : > { %1153 = vmatmul.mubr.bf16.vlgmr.msra.gmra.mrb[8].mxu0 %v1119_v1  ;;  %2336 = vmatmul.mubr.bf16.vlgmr.msra.gmra.mrb[8].mxu1 %v1119_v1 }
 0x402   : > { %1234 = vmatpush1.bf16.msra.mxu0 %v3341_v17  ;;  %2340 = vmatpush3.bf16.msra.mxu1 %v3362_v25 }
 0x403   : > { %1235 = vmatprep.subr.bf16.mxu0 %v3346_v20  ;;  %2341 = vmatprep.subr.bf16.mxu1 %v3037_v18 }
 0x404   : > { %1265 = vmatprep.mubr.bf16.mxu0 %v3038_v19  ;;  %2355 = vmatprep.mubr.msk.bf16.mxu1 %vm3039_vm2, %v3037_v18 }
 0x406   : > { %1236 = vmatpush1.bf16.msra.mxu0 %v3351_v21  ;;  %2342 = vmatpush3.bf16.msra.mxu1 %v3372_v28 }
 0x407   : > { %1237 = vmatprep.subr.bf16.mxu0 %v3354_v22  ;;  %2343 = vmatprep.subr.bf16.mxu1 %v3037_v18 }
 0x40a   : > { %1238 = vmatpush1.bf16.msra.mxu0 %v3357_v23  ;;  %2344 = vmatpush3.bf16.msra.mxu1 %v3378_v30 }
 0x40b   : > { %1239 = vmatprep.subr.bf16.mxu0 %v3360_v24  ;;  %2345 = vmatprep.subr.bf16.mxu1 %v3037_v18 }
 0x40e   : > { %1240 = vmatpush1.bf16.msra.mxu0 %v3365_v26  ;;  %2346 = vmatpush3.bf16.msra.mxu1 %v3388_v33 }
 0x40f   : > { %1241 = vmatprep.subr.bf16.mxu0 %v3369_v27  ;;  %2347 = vmatprep.subr.bf16.mxu1 %v3037_v18 }
 0x412   : > { %1242 = vmatpush1.bf16.msra.mxu0 %v3374_v29  ;;  %2348 = vmatpush3.bf16.msra.mxu1 %v3398_v36 }
 0x413   : > { %1243 = vmatprep.subr.bf16.mxu0 %v3381_v31  ;;  %2349 = vmatprep.subr.bf16.mxu1 %v3037_v18 }
 0x416   : > { %1244 = vmatpush1.bf16.msra.mxu0 %v3385_v32  ;;  %2350 = vmatpush3.bf16.msra.mxu1 %v3410_v40 }
 0x417   : > { %1245 = vmatprep.subr.bf16.mxu0 %v3391_v34  ;;  %2351 = vmatprep.subr.bf16.mxu1 %v3037_v18 }
 0x41a   : > { %1246 = vmatpush1.bf16.msra.mxu0 %v3395_v35  ;;  %2352 = vmatpush3.bf16.msra.mxu1 %v3418_v42 }
 0x41b   : > { %1247 = vmatprep.subr.bf16.mxu0 %v3401_v37  ;;  %2353 = vmatprep.subr.bf16.mxu1 %v3037_v18 }
 0x41e   : > { %1248 = vmatpush1.bf16.msra.mxu0 %v3405_v38  ;;  %2354 = vmatpush3.bf16.msra.mxu1 %v3423_v43 }
 0x41f   : > { %1346 = vmatprep.subr.bf16.mxu0 %v3339_v16  ;;  %2359 = vmatprep.subr.bf16.mxu1 %v3037_v18 }
 0x4d4   : > { %v1154_v3 = vpop.f32.mrb[8].mxu0  ;;  %v1195_v4 = vpop.f32.mrb[8].mxu1 }
 0x4d5   : > { %v1201_v5 = vadd.f32 %v2145_v2, %v1154_v3  ;;  %v1156_v6 = vpop.f32.mrb[9].mxu0  ;;  %v2337_v7 = vpop.f32.mrb[9].mxu1  ;;  %v1218_v46 = vadd.f32 %v3467_v60, %v1195_v4 }
 0x4d6   : > { %v1158_v8 = vpop.f32.mrb[10].mxu0  ;;  %v1198_v9 = vpop.f32.mrb[10].mxu1  ;;  %v1211_v14 = vadd.f32 %v1209_v13, %v1156_v6 }
 0x4d7   : > { %v2146_v10 = vmul.f32 -1.442695, %v1201_v5  ;;  %v1159_v11 = vpop.f32.mrb[11].mxu0  ;;  %v2338_v12 = vpop.f32.mrb[11].mxu1  ;;  %v1322_v5 = vrot.slane %v2150_v57, 2 }
 0x4d8   : > { %v2147_v15 = vmul.f32 -1.442695, %v1211_v14  ;;  %v1333_v11 = vrot.slane %v2150_v57, 4 }
 0x4d9   : > { %2655 = vpow2.f32 %v2146_v10 }
 0x4da   : > { %2657 = vpow2.f32 %v2147_v15 }
 0x4e3   : > { %v2656_v39 = vpop.eup %2655 }
 0x4e4   : > { %v1205_v41 = vadd.f32 1.0, %v2656_v39  ;;  %v2658_v44 = vpop.eup %2657 }
 0x4e5   : > { %v1215_v50 = vadd.f32 1.0, %v2658_v44 }
 0x4e6   : > { %2659 = vrcp.f32 %v1205_v41 }
 0x4f0   : > { %v2660_v47 = vpop.eup %2659 }
 0x4f1   : > { %v1219_v48 = vmul.f32 %v2660_v47, %v1218_v46 }
 0x4f3   : > { %v1222_v49 = vadd.f32 %v1220_v45, %v1219_v48 }
 0x4f5   : > { %2661 = vtanh.f32 %v1222_v49  ;;  %v2155_v49 = vld [vmem:[%s3464_s22 + $0x18] sm:$0x3f] }
 0x4f6   : > { %2663 = vrcp.f32 %v1215_v50 }
 0x4ff   : > { %v2662_v51 = vpop.eup %2661 }
 0x500   : > { %v1224_v52 = vsub.f32 %v3513_v0, %v2662_v51  ;;  %v2664_v53 = vpop.eup %2663 }
 0x502   : > { %v1225_v54 = vmul.f32 %v2664_v53, %v1224_v52 }
 0x504   : > { %v3555_v55 = vadd.f32 %v2662_v51, %v1225_v54 }
 0x506   : > { %v1232_v56 = vpack.c.bf16 %v3555_v55, %v3555_v55 }
 0x508   : > { %1266 = vmatmul.mubr.bf16.vlgmr.msra.gmra.mrb[12].mxu0 %v1232_v56  ;;  %2356 = vmatmul.mubr.bf16.vlgmr.msra.gmra.mrb[12].mxu1 %v1232_v56 }
 0x509   : > { %1347 = vmatpush1.bf16.msra.mxu0 %v3341_v17  ;;  %2360 = vmatpush3.bf16.msra.mxu1 %v3362_v25 }
 0x50a   : > { %1348 = vmatprep.subr.bf16.mxu0 %v3346_v20  ;;  %2361 = vmatprep.subr.bf16.mxu1 %v3037_v18 }
 0x50b   : > { %1378 = vmatprep.mubr.bf16.mxu0 %v3038_v19  ;;  %2375 = vmatprep.mubr.msk.bf16.mxu1 %vm3039_vm2, %v3037_v18 }
 0x50d   : > { %1349 = vmatpush1.bf16.msra.mxu0 %v3351_v21  ;;  %2362 = vmatpush3.bf16.msra.mxu1 %v3372_v28 }
 0x50e   : > { %1350 = vmatprep.subr.bf16.mxu0 %v3354_v22  ;;  %2363 = vmatprep.subr.bf16.mxu1 %v3037_v18 }
 0x511   : > { %1351 = vmatpush1.bf16.msra.mxu0 %v3357_v23  ;;  %2364 = vmatpush3.bf16.msra.mxu1 %v3378_v30 }
 0x512   : > { %1352 = vmatprep.subr.bf16.mxu0 %v3360_v24  ;;  %2365 = vmatprep.subr.bf16.mxu1 %v3037_v18 }
 0x515   : > { %1353 = vmatpush1.bf16.msra.mxu0 %v3365_v26  ;;  %2366 = vmatpush3.bf16.msra.mxu1 %v3388_v33 }
 0x516   : > { %1354 = vmatprep.subr.bf16.mxu0 %v3369_v27  ;;  %2367 = vmatprep.subr.bf16.mxu1 %v3037_v18 }
 0x519   : > { %1355 = vmatpush1.bf16.msra.mxu0 %v3374_v29  ;;  %2368 = vmatpush3.bf16.msra.mxu1 %v3398_v36 }
 0x51a   : > { %1356 = vmatprep.subr.bf16.mxu0 %v3381_v31  ;;  %2369 = vmatprep.subr.bf16.mxu1 %v3037_v18 }
 0x51d   : > { %1357 = vmatpush1.bf16.msra.mxu0 %v3385_v32  ;;  %2370 = vmatpush3.bf16.msra.mxu1 %v3410_v40 }
 0x51e   : > { %1358 = vmatprep.subr.bf16.mxu0 %v3391_v34  ;;  %2371 = vmatprep.subr.bf16.mxu1 %v3037_v18 }
 0x521   : > { %1359 = vmatpush1.bf16.msra.mxu0 %v3395_v35  ;;  %2372 = vmatpush3.bf16.msra.mxu1 %v3418_v42 }
 0x522   : > { %1360 = vmatprep.subr.bf16.mxu0 %v3401_v37  ;;  %2373 = vmatprep.subr.bf16.mxu1 %v3037_v18 }
 0x525   : > { %1361 = vmatpush1.bf16.msra.mxu0 %v3405_v38  ;;  %2374 = vmatpush3.bf16.msra.mxu1 %v3423_v43 }
 0x526   : > { %1459 = vmatprep.subr.bf16.mxu0 %v3339_v16  ;;  %2379 = vmatprep.subr.bf16.mxu1 %v3037_v18 }
 0x5db   : > { %v1267_v58 = vpop.f32.mrb[12].mxu0  ;;  %v1308_v59 = vpop.f32.mrb[12].mxu1 }
 0x5dc   : > { %v1314_v61 = vadd.f32 %v2150_v57, %v1267_v58  ;;  %v1269_v62 = vpop.f32.mrb[13].mxu0  ;;  %v2357_v63 = vpop.f32.mrb[13].mxu1  ;;  %v1331_v12 = vadd.f32 %v3467_v60, %v1308_v59 }
 0x5dd   : > { %v1271_v0 = vpop.f32.mrb[14].mxu0  ;;  %v1311_v1 = vpop.f32.mrb[14].mxu1  ;;  %v1324_v6 = vadd.f32 %v1322_v5, %v1269_v62 }
 0x5de   : > { %v2151_v2 = vmul.f32 -1.442695, %v1314_v61  ;;  %v1272_v3 = vpop.f32.mrb[15].mxu0  ;;  %v2358_v4 = vpop.f32.mrb[15].mxu1  ;;  %v1435_v61 = vrot.slane %v2155_v49, 2 }
 0x5df   : > { %v2152_v7 = vmul.f32 -1.442695, %v1324_v6  ;;  %v1446_v3 = vrot.slane %v2155_v49, 4 }
 0x5e0   : > { %2665 = vpow2.f32 %v2151_v2 }
 0x5e1   : > { %2667 = vpow2.f32 %v2152_v7 }
 0x5ea   : > { %v2666_v8 = vpop.eup %2665 }
 0x5eb   : > { %v1318_v9 = vadd.f32 1.0, %v2666_v8  ;;  %v2668_v10 = vpop.eup %2667 }
 0x5ec   : > { %v1328_v39 = vadd.f32 1.0, %v2668_v10 }
 0x5ed   : > { %2669 = vrcp.f32 %v1318_v9 }
 0x5f7   : > { %v2670_v13 = vpop.eup %2669 }
 0x5f8   : > { %v1332_v14 = vmul.f32 %v2670_v13, %v1331_v12 }
 0x5fa   : > { %v1335_v15 = vadd.f32 %v1333_v11, %v1332_v14 }
 0x5fc   : > { %2671 = vtanh.f32 %v1335_v15 }
 0x5fd   : > { %2673 = vrcp.f32 %v1328_v39 }
 0x606   : > { %v2672_v41 = vpop.eup %2671 }
 0x607   : > { %v1337_v44 = vsub.f32 %v3555_v55, %v2672_v41  ;;  %v2674_v45 = vpop.eup %2673 }
 0x609   : > { %v1338_v46 = vmul.f32 %v2674_v45, %v1337_v44 }
 0x60b   : > { %v3597_v47 = vadd.f32 %v2672_v41, %v1338_v46 }
 0x60d   : > { %v1345_v48 = vpack.c.bf16 %v3597_v47, %v3597_v47 }
 0x60f   : > { %1379 = vmatmul.mubr.bf16.vlgmr.msra.gmra.mrb[16].mxu0 %v1345_v48  ;;  %2376 = vmatmul.mubr.bf16.vlgmr.msra.gmra.mrb[16].mxu1 %v1345_v48 }
 0x610   : > { %1460 = vmatpush1.bf16.msra.mxu0 %v3341_v17  ;;  %2380 = vmatpush3.bf16.msra.mxu1 %v3362_v25 }
 0x611   : > { %1461 = vmatprep.subr.bf16.mxu0 %v3346_v20  ;;  %2381 = vmatprep.subr.bf16.mxu1 %v3037_v18 }
 0x612   : > { %1491 = vmatprep.mubr.bf16.mxu0 %v3038_v19  ;;  %2395 = vmatprep.mubr.msk.bf16.mxu1 %vm3039_vm2, %v3037_v18 }
 0x614   : > { %1462 = vmatpush1.bf16.msra.mxu0 %v3351_v21  ;;  %2382 = vmatpush3.bf16.msra.mxu1 %v3372_v28 }
 0x615   : > { %1463 = vmatprep.subr.bf16.mxu0 %v3354_v22  ;;  %2383 = vmatprep.subr.bf16.mxu1 %v3037_v18 }
 0x618   : > { %1464 = vmatpush1.bf16.msra.mxu0 %v3357_v23  ;;  %2384 = vmatpush3.bf16.msra.mxu1 %v3378_v30 }
 0x619   : > { %1465 = vmatprep.subr.bf16.mxu0 %v3360_v24  ;;  %2385 = vmatprep.subr.bf16.mxu1 %v3037_v18 }
 0x61c   : > { %1466 = vmatpush1.bf16.msra.mxu0 %v3365_v26  ;;  %2386 = vmatpush3.bf16.msra.mxu1 %v3388_v33 }
 0x61d   : > { %1467 = vmatprep.subr.bf16.mxu0 %v3369_v27  ;;  %2387 = vmatprep.subr.bf16.mxu1 %v3037_v18 }
 0x620   : > { %1468 = vmatpush1.bf16.msra.mxu0 %v3374_v29  ;;  %2388 = vmatpush3.bf16.msra.mxu1 %v3398_v36 }
 0x621   : > { %1469 = vmatprep.subr.bf16.mxu0 %v3381_v31  ;;  %2389 = vmatprep.subr.bf16.mxu1 %v3037_v18 }
 0x624   : > { %1470 = vmatpush1.bf16.msra.mxu0 %v3385_v32  ;;  %2390 = vmatpush3.bf16.msra.mxu1 %v3410_v40 }
 0x625   : > { %1471 = vmatprep.subr.bf16.mxu0 %v3391_v34  ;;  %2391 = vmatprep.subr.bf16.mxu1 %v3037_v18 }
 0x628   : > { %1472 = vmatpush1.bf16.msra.mxu0 %v3395_v35  ;;  %2392 = vmatpush3.bf16.msra.mxu1 %v3418_v42 }
 0x629   : > { %1473 = vmatprep.subr.bf16.mxu0 %v3401_v37  ;;  %2393 = vmatprep.subr.bf16.mxu1 %v3037_v18 }
 0x62c   : > { %1474 = vmatpush1.bf16.msra.mxu0 %v3405_v38  ;;  %2394 = vmatpush3.bf16.msra.mxu1 %v3423_v43 }
 0x62d   : > { %1572 = vmatprep.subr.bf16.mxu0 %v3339_v16  ;;  %2399 = vmatprep.subr.bf16.mxu1 %v3037_v18 }
 0x6e2   : > { %v1380_v50 = vpop.f32.mrb[16].mxu0  ;;  %v1421_v51 = vpop.f32.mrb[16].mxu1 }
 0x6e3   : > { %v1427_v52 = vadd.f32 %v2155_v49, %v1380_v50  ;;  %v1382_v53 = vpop.f32.mrb[17].mxu0  ;;  %v2377_v54 = vpop.f32.mrb[17].mxu1  ;;  %v1444_v4 = vadd.f32 %v3467_v60, %v1421_v51 }
 0x6e4   : > { %v1384_v55 = vpop.f32.mrb[18].mxu0  ;;  %v1424_v56 = vpop.f32.mrb[18].mxu1  ;;  %v1437_v62 = vadd.f32 %v1435_v61, %v1382_v53 }
 0x6e5   : > { %v2156_v57 = vmul.f32 -1.442695, %v1427_v52  ;;  %v1385_v58 = vpop.f32.mrb[19].mxu0  ;;  %v2378_v59 = vpop.f32.mrb[19].mxu1 }
 0x6e6   : > { %v2157_v63 = vmul.f32 -1.442695, %v1437_v62 }
 0x6e7   : > { %2675 = vpow2.f32 %v2156_v57 }
 0x6e8   : > { %2677 = vpow2.f32 %v2157_v63 }
 0x6f1   : > { %v2676_v0 = vpop.eup %2675 }
 0x6f2   : > { %v1431_v1 = vadd.f32 1.0, %v2676_v0  ;;  %v2678_v2 = vpop.eup %2677  ;;  %v2715_v0 = vld [vmem:[#allocation9] ss:$12 sps:$4 sm:$0xff]  }
 0x6f3   : > { %v1441_v8 = vadd.f32 1.0, %v2678_v2  ;;  %v2717_v2 = vld [vmem:[#allocation9 + $0x18] ss:$12 sps:$4 sm:$0xff]  }
 0x6f4   : > { %2679 = vrcp.f32 %v1431_v1  ;;  %v2716_v1 = vld [vmem:[#allocation9 + $0x1c] ss:$12 sps:$4 sm:$0xff]  }
 0x6fe   : > { %v2680_v5 = vpop.eup %2679 }
 0x6ff   : > { %v1445_v6 = vmul.f32 %v2680_v5, %v1444_v4  ;;  %v2719_v4 = vld [vmem:[#allocation9 + $0x30] ss:$12 sps:$4 sm:$0xff]  }
 0x701   : > { %v1448_v7 = vadd.f32 %v1446_v3, %v1445_v6  ;;  %v2718_v3 = vld [vmem:[#allocation9 + $0x34] ss:$12 sps:$4 sm:$0xff]  }
 0x703   : > { %2681 = vtanh.f32 %v1448_v7 }
 0x704   : > { %2683 = vrcp.f32 %v1441_v8 }
 0x70d   : > { %v2682_v9 = vpop.eup %2681 }
 0x70e   : > { %v1450_v10 = vsub.f32 %v3597_v47, %v2682_v9  ;;  %v2684_v11 = vpop.eup %2683 }
 0x710   : > { %v1451_v12 = vmul.f32 %v2684_v11, %v1450_v10 }
 0x712   : > { %v3639_v13 = vadd.f32 %v2682_v9, %v1451_v12 }
 0x714   : > { %v1458_v14 = vpack.c.bf16 %v3639_v13, %v3639_v13 }
 0x716   : > { %1492 = vmatmul.mubr.bf16.vlgmr.msra.gmra.mrb[20].mxu0 %v1458_v14  ;;  %2396 = vmatmul.mubr.bf16.vlgmr.msra.gmra.mrb[20].mxu1 %v1458_v14 }
 0x717   : > { %1573 = vmatpush1.bf16.msra.mxu0 %v3341_v17  ;;  %2400 = vmatpush3.bf16.msra.mxu1 %v3362_v25  ;;  %v2160_v17 = vld [vmem:[%s3464_s22 + $0x1e] sm:$0x3f] }
 0x718   : > { %1574 = vmatprep.subr.bf16.mxu0 %v3346_v20  ;;  %2401 = vmatprep.subr.bf16.mxu1 %v3037_v18  ;;  %v1548_v46 = vrot.slane %v2160_v17, 2  ;;  %v1559_v51 = vrot.slane %v2160_v17, 4 }
 0x719   : > { %1604 = vmatprep.mubr.bf16.mxu0 %v3038_v19  ;;  %2415 = vmatprep.mubr.msk.bf16.mxu1 %vm3039_vm2, %v3037_v18 }
 0x71b   : > { %1575 = vmatpush1.bf16.msra.mxu0 %v3351_v21  ;;  %2402 = vmatpush3.bf16.msra.mxu1 %v3372_v28 }
 0x71c   : > { %1576 = vmatprep.subr.bf16.mxu0 %v3354_v22  ;;  %2403 = vmatprep.subr.bf16.mxu1 %v3037_v18 }
 0x71f   : > { %1577 = vmatpush1.bf16.msra.mxu0 %v3357_v23  ;;  %2404 = vmatpush3.bf16.msra.mxu1 %v3378_v30 }
 0x720   : > { %1578 = vmatprep.subr.bf16.mxu0 %v3360_v24  ;;  %2405 = vmatprep.subr.bf16.mxu1 %v3037_v18 }
 0x723   : > { %1579 = vmatpush1.bf16.msra.mxu0 %v3365_v26  ;;  %2406 = vmatpush3.bf16.msra.mxu1 %v3388_v33 }
 0x724   : > { %1580 = vmatprep.subr.bf16.mxu0 %v3369_v27  ;;  %2407 = vmatprep.subr.bf16.mxu1 %v3037_v18 }
 0x727   : > { %1581 = vmatpush1.bf16.msra.mxu0 %v3374_v29  ;;  %2408 = vmatpush3.bf16.msra.mxu1 %v3398_v36 }
 0x728   : > { %1582 = vmatprep.subr.bf16.mxu0 %v3381_v31  ;;  %2409 = vmatprep.subr.bf16.mxu1 %v3037_v18 }
 0x72b   : > { %1583 = vmatpush1.bf16.msra.mxu0 %v3385_v32  ;;  %2410 = vmatpush3.bf16.msra.mxu1 %v3410_v40 }
 0x72c   : > { %1584 = vmatprep.subr.bf16.mxu0 %v3391_v34  ;;  %2411 = vmatprep.subr.bf16.mxu1 %v3037_v18 }
 0x72f   : > { %1585 = vmatpush1.bf16.msra.mxu0 %v3395_v35  ;;  %2412 = vmatpush3.bf16.msra.mxu1 %v3418_v42 }
 0x730   : > { %1586 = vmatprep.subr.bf16.mxu0 %v3401_v37  ;;  %2413 = vmatprep.subr.bf16.mxu1 %v3037_v18 }
 0x733   : > { %1587 = vmatpush1.bf16.msra.mxu0 %v3405_v38  ;;  %2414 = vmatpush3.bf16.msra.mxu1 %v3423_v43 }
 0x734   : > { %1685 = vmatprep.subr.bf16.mxu0 %v3339_v16  ;;  %2419 = vmatprep.subr.bf16.mxu1 %v3037_v18 }
 0x7e9   : > { %v1493_v20 = vpop.f32.mrb[20].mxu0  ;;  %v1534_v21 = vpop.f32.mrb[20].mxu1 }
 0x7ea   : > { %v1540_v22 = vadd.f32 %v2160_v17, %v1493_v20  ;;  %v1495_v23 = vpop.f32.mrb[21].mxu0  ;;  %v2397_v24 = vpop.f32.mrb[21].mxu1  ;;  %v1557_v52 = vadd.f32 %v3467_v60, %v1534_v21  ;;  %v2170_v20 = vld [vmem:[%s3464_s22 + $0x2a] sm:$0x3f] }
 0x7eb   : > { %v1497_v15 = vpop.f32.mrb[22].mxu0  ;;  %v1537_v39 = vpop.f32.mrb[22].mxu1  ;;  %v1550_v47 = vadd.f32 %v1548_v46, %v1495_v23 }
 0x7ec   : > { %v2161_v41 = vmul.f32 -1.442695, %v1540_v22  ;;  %v1498_v44 = vpop.f32.mrb[23].mxu0  ;;  %v2398_v45 = vpop.f32.mrb[23].mxu1 }
 0x7ed   : > { %v2162_v48 = vmul.f32 -1.442695, %v1550_v47  ;;  %v1774_v47 = vrot.slane %v2170_v20, 2 }
 0x7ee   : > { %2685 = vpow2.f32 %v2161_v41 }
 0x7ef   : > { %2687 = vpow2.f32 %v2162_v48 }
 0x7f8   : > { %v2686_v49 = vpop.eup %2685 }
 0x7f9   : > { %v1544_v50 = vadd.f32 1.0, %v2686_v49  ;;  %v2688_v16 = vpop.eup %2687 }
 0x7fa   : > { %v1554_v56 = vadd.f32 1.0, %v2688_v16 }
 0x7fb   : > { %2689 = vrcp.f32 %v1544_v50 }
 0x805   : > { %v2690_v53 = vpop.eup %2689 }
 0x806   : > { %v1558_v54 = vmul.f32 %v2690_v53, %v1557_v52  ;;  %v1785_v52 = vrot.slane %v2170_v20, 4 }
 0x808   : > { %v1561_v55 = vadd.f32 %v1559_v51, %v1558_v54 }
 0x80a   : > { %2691 = vtanh.f32 %v1561_v55 }
 0x80b   : > { %2693 = vrcp.f32 %v1554_v56 }
 0x814   : > { %v2692_v57 = vpop.eup %2691 }
 0x815   : > { %v1563_v58 = vsub.f32 %v3639_v13, %v2692_v57  ;;  %v2694_v59 = vpop.eup %2693 }
 0x817   : > { %v1564_v61 = vmul.f32 %v2694_v59, %v1563_v58 }
 0x819   : > { %v3681_v62 = vadd.f32 %v2692_v57, %v1564_v61 }
 0x81b   : > { %v1571_v63 = vpack.c.bf16 %v3681_v62, %v3681_v62 }
 0x81d   : > { %1605 = vmatmul.mubr.bf16.vlgmr.msra.gmra.mrb[24].mxu0 %v1571_v63  ;;  %2416 = vmatmul.mubr.bf16.vlgmr.msra.gmra.mrb[24].mxu1 %v1571_v63 }
 0x81e   : > { %1686 = vmatpush1.bf16.msra.mxu0 %v2715_v0  ;;  %2420 = vmatpush3.bf16.msra.mxu1 %v3362_v25  ;;  %v2720_v25 = vld [vmem:[#allocation9 + $0x4c] ss:$12 sps:$4 sm:$0xff]  }
 0x81f   : > { %1687 = vmatprep.subr.bf16.mxu0 %v2716_v1  ;;  %2421 = vmatprep.subr.bf16.mxu1 %v3037_v18  ;;  %v2721_v0 = vld [vmem:[#allocation13] sm:$0xff] (!%p2173_p13)   ;;  %v3040_v1 = vmov (!%p2173_p13), 0.0  }
 0x820   : > { %1717 = vmatprep.mubr.bf16.mxu0 %v3038_v19  ;;  %2435 = vmatprep.mubr.msk.bf16.mxu1 %vm3039_vm2, %v3037_v18  ;;  %v2165_v19 = vld [vmem:[%s3464_s22 + $0x24] sm:$0x3f] }
 0x822   : > { %1688 = vmatpush1.bf16.msra.mxu0 %v2717_v2  ;;  %2422 = vmatpush3.bf16.msra.mxu1 %v3372_v28  ;;  %v2723_v2 = vld [vmem:[#allocation13 + $0x10] sm:$0xff] (!%p2173_p13)  }
 0x823   : > { %1689 = vmatprep.subr.bf16.mxu0 %v2718_v3  ;;  %2423 = vmatprep.subr.bf16.mxu1 %v3037_v18  ;;  %v2724_v3 = vld [vmem:[#allocation13 + $0x18] sm:$0xff] (!%p2173_p13)  }
 0x826   : > { %1690 = vmatpush1.bf16.msra.mxu0 %v2719_v4  ;;  %2424 = vmatpush3.bf16.msra.mxu1 %v3378_v30  ;;  %v2725_v4 = vld [vmem:[#allocation13 + $0x20] sm:$0xff] (!%p2173_p13)  }
 0x827   : > { %1691 = vmatprep.subr.bf16.mxu0 %v2720_v25  ;;  %2425 = vmatprep.subr.bf16.mxu1 %v3037_v18  ;;  %v2726_v25 = vld [vmem:[#allocation13 + $0x28] sm:$0xff] (!%p2173_p13)  }
 0x82a   : > { %1692 = vmatpush1.bf16.msra.mxu0 %v3365_v26  ;;  %2426 = vmatpush3.bf16.msra.mxu1 %v3388_v33 }
 0x82b   : > { %1693 = vmatprep.subr.bf16.mxu0 %v3369_v27  ;;  %2427 = vmatprep.subr.bf16.mxu1 %v3037_v18 }
 0x82e   : > { %1694 = vmatpush1.bf16.msra.mxu0 %v3374_v29  ;;  %2428 = vmatpush3.bf16.msra.mxu1 %v3398_v36  ;;  %v1661_v36 = vrot.slane %v2165_v19, 2 }
 0x82f   : > { %1695 = vmatprep.subr.bf16.mxu0 %v3381_v31  ;;  %2429 = vmatprep.subr.bf16.mxu1 %v3037_v18 }
 0x832   : > { %1696 = vmatpush1.bf16.msra.mxu0 %v3385_v32  ;;  %2430 = vmatpush3.bf16.msra.mxu1 %v3410_v40 }
 0x833   : > { %1697 = vmatprep.subr.bf16.mxu0 %v3391_v34  ;;  %2431 = vmatprep.subr.bf16.mxu1 %v3037_v18 }
 0x836   : > { %1698 = vmatpush1.bf16.msra.mxu0 %v3395_v35  ;;  %2432 = vmatpush3.bf16.msra.mxu1 %v3418_v42 }
 0x837   : > { %1699 = vmatprep.subr.bf16.mxu0 %v3401_v37  ;;  %2433 = vmatprep.subr.bf16.mxu1 %v3037_v18 }
 0x83a   : > { %1700 = vmatpush1.bf16.msra.mxu0 %v3405_v38  ;;  %2434 = vmatpush3.bf16.msra.mxu1 %v3423_v43  ;;  %v1672_v43 = vrot.slane %v2165_v19, 4 }
 0x83b   : > { %2439 = vmatprep.subr.bf16.mxu0 (!%p2173_p13), %v3040_v1 }
 0x8f0   : > { %v1606_v26 = vpop.f32.mrb[24].mxu0  ;;  %v1647_v27 = vpop.f32.mrb[24].mxu1 }
 0x8f1   : > { %v1653_v28 = vadd.f32 %v2165_v19, %v1606_v26  ;;  %v1608_v29 = vpop.f32.mrb[25].mxu0  ;;  %v2417_v30 = vpop.f32.mrb[25].mxu1  ;;  %v1670_v5 = vadd.f32 %v3467_v60, %v1647_v27  ;;  %v2727_v19 = vld [vmem:[#allocation13 + $0x30] sm:$0xff] (!%p2173_p13)   ;;  %v2728_v26 = vld [vmem:[#allocation13 + $0x38] sm:$0xff] (!%p2173_p13)  }
 0x8f2   : > { %v1610_v31 = vpop.f32.mrb[26].mxu0  ;;  %v1650_v32 = vpop.f32.mrb[26].mxu1  ;;  %v1663_v37 = vadd.f32 %v1661_v36, %v1608_v29 }
 0x8f3   : > { %v2166_v33 = vmul.f32 -1.442695, %v1653_v28  ;;  %v1611_v34 = vpop.f32.mrb[27].mxu0  ;;  %v2418_v35 = vpop.f32.mrb[27].mxu1  ;;  %v2174_v28 = vld [vmem:[#allocation15] ss:$0 sm:$0xff] (!%p2173_p13) }
 0x8f4   : > { %v2167_v40 = vmul.f32 -1.442695, %v1663_v37 }
 0x8f5   : > { %2695 = vpow2.f32 %v2166_v33 }
 0x8f6   : > { %2697 = vpow2.f32 %v2167_v40 }
 0x8ff   : > { %v2696_v18 = vpop.eup %2695 }
 0x900   : > { %v1657_v42 = vadd.f32 1.0, %v2696_v18  ;;  %v2698_v38 = vpop.eup %2697 }
 0x901   : > { %v1667_v9 = vadd.f32 1.0, %v2698_v38 }
 0x902   : > { %2699 = vrcp.f32 %v1657_v42 }
 0x90c   : > { %v2700_v6 = vpop.eup %2699 }
 0x90d   : > { %v1671_v7 = vmul.f32 %v2700_v6, %v1670_v5 }
 0x90f   : > { %v1674_v8 = vadd.f32 %v1672_v43, %v1671_v7 }
 0x911   : > { %2701 = vtanh.f32 %v1674_v8 }
 0x912   : > { %2703 = vrcp.f32 %v1667_v9 }
 0x91b   : > { %v2702_v10 = vpop.eup %2701 }
 0x91c   : > { %v1676_v11 = vsub.f32 %v3681_v62, %v2702_v10  ;;  %v2704_v12 = vpop.eup %2703 }
 0x91e   : > { %v1677_v13 = vmul.f32 %v2704_v12, %v1676_v11 }
 0x920   : > { %v1678_v14 = vadd.f32 %v2702_v10, %v1677_v13 }
 0x922   : > { %v1684_v17 = vpack.c.bf16 %v1678_v14, %v1678_v14 }
 0x924   : > { %1718 = vmatmul.mubr.bf16.vlgmr.msra.gmra.mrb[28].mxu0 %v1684_v17  ;;  %2436 = vmatmul.mubr.bf16.vlgmr.msra.gmra.mrb[28].mxu1 %v1684_v17 }
 0x925   : > { %2440 = vmatpush3.bf16.msra.mxu0 (!%p2173_p13), %v2721_v0  ;;  %2455 = vmatprep.mubr.msk.bf16.mxu0 (!%p2173_p13), %vm3041_vm3, %v3040_v1 }
 0x926   : > { %2441 = vmatprep.subr.bf16.mxu0 (!%p2173_p13), %v3040_v1 }
 0x9f7   : > { %v1719_v21 = vpop.f32.mrb[28].mxu0  ;;  %v1760_v22 = vpop.f32.mrb[28].mxu1 }
 0x9f8   : > { %v1766_v23 = vadd.f32 %v2170_v20, %v1719_v21  ;;  %v1721_v24 = vpop.f32.mrb[29].mxu0  ;;  %v2437_v15 = vpop.f32.mrb[29].mxu1  ;;  %v1783_v53 = vadd.f32 %v3467_v60, %v1760_v22  ;;  %v2722_v60 = vld [vmem:[#allocation13 + $0x8] sm:$0xff] (!%p2173_p13)  }
 0x9f9   : > { %v1723_v39 = vpop.f32.mrb[30].mxu0  ;;  %v1763_v41 = vpop.f32.mrb[30].mxu1  ;;  %v1776_v48 = vadd.f32 %v1774_v47, %v1721_v24  ;;  %2442 = vmatpush3.bf16.msra.mxu0 (!%p2173_p13), %v2722_v60 }
 0x9fa   : > { %v2171_v44 = vmul.f32 -1.442695, %v1766_v23  ;;  %v1724_v45 = vpop.f32.mrb[31].mxu0  ;;  %v2438_v46 = vpop.f32.mrb[31].mxu1  ;;  %2443 = vmatprep.subr.bf16.mxu0 (!%p2173_p13), %v3040_v1 }
 0x9fb   : > { %v2172_v49 = vmul.f32 -1.442695, %v1776_v48 }
 0x9fc   : > { %2705 = vpow2.f32 %v2171_v44 }
 0x9fd   : > { %2707 = vpow2.f32 %v2172_v49  ;;  %2444 = vmatpush3.bf16.msra.mxu0 (!%p2173_p13), %v2723_v2 }
 0x9fe   : > { %2445 = vmatprep.subr.bf16.mxu0 (!%p2173_p13), %v3040_v1 }
 0xa01   : > { %2446 = vmatpush3.bf16.msra.mxu0 (!%p2173_p13), %v2724_v3 }
 0xa02   : > { %2447 = vmatprep.subr.bf16.mxu0 (!%p2173_p13), %v3040_v1 }
 0xa05   : > { %2448 = vmatpush3.bf16.msra.mxu0 (!%p2173_p13), %v2725_v4 }
 0xa06   : > { %v2706_v50 = vpop.eup %2705  ;;  %2449 = vmatprep.subr.bf16.mxu0 (!%p2173_p13), %v3040_v1 }
 0xa07   : > { %v1770_v16 = vadd.f32 1.0, %v2706_v50  ;;  %v2708_v51 = vpop.eup %2707 }
 0xa08   : > { %v1780_v57 = vadd.f32 1.0, %v2708_v51 }
 0xa09   : > { %2709 = vrcp.f32 %v1770_v16  ;;  %2450 = vmatpush3.bf16.msra.mxu0 (!%p2173_p13), %v2726_v25 }
 0xa0a   : > { %2451 = vmatprep.subr.bf16.mxu0 (!%p2173_p13), %v3040_v1 }
 0xa0d   : > { %2452 = vmatpush3.bf16.msra.mxu0 (!%p2173_p13), %v2727_v19 }
 0xa0e   : > { %2453 = vmatprep.subr.bf16.mxu0 (!%p2173_p13), %v3040_v1 }
 0xa11   : > { %2454 = vmatpush3.bf16.msra.mxu0 (!%p2173_p13), %v2728_v26 }
 0xa13   : > { %v2710_v54 = vpop.eup %2709 }
 0xa14   : > { %v1784_v55 = vmul.f32 %v2710_v54, %v1783_v53 }
 0xa16   : > { %v1787_v56 = vadd.f32 %v1785_v52, %v1784_v55 }
 0xa18   : > { %2711 = vtanh.f32 %v1787_v56 }
 0xa19   : > { %2713 = vrcp.f32 %v1780_v57 }
 0xa22   : > { %v2712_v58 = vpop.eup %2711 }
 0xa23   : > { %v1789_v59 = vsub.f32 %v1678_v14, %v2712_v58  ;;  %v2714_v61 = vpop.eup %2713  ;;  %1796 = sbr.rel (%p2173_p13) target bundleno = 2818 (0xb02), region = 92 }
 0xa25   : > { %v1790_v62 = vmul.f32 %v2714_v61, %v1789_v59 }
 0xa27   : > { %v1791_v63 = vadd.f32 %v2712_v58, %v1790_v62 }
 0xa29   : > { %1792 = vst [vmem:[#allocation2] sm:$0x3] %v1791_v63  ;;  %v1797_v27 = vpack.c.bf16 (!%p2173_p13), %v1791_v63, %v1791_v63 }
 0xa2b   : > { %2456 = vmatmul.mubr.bf16.vlgmr.msra.gmra.mrb[0].mxu0 %v1797_v27 }
 0xafe   : > { %v1903_v29 = vpop.f32.mrb[0].mxu0 }
 0xaff   : > { %v1904_v30 = vadd.f32 %v2174_v28, %v1903_v29  ;;  %v2457_v31 = vpop.f32.mrb[1].mxu0 }
 0xb00   : > { %v1906_v32 = vpop.f32.mrb[2].mxu0 }
 0xb01   : > { %1909 = vst [vmem:[#allocation16] sm:$0x3] %v1904_v30  ;;  %v2458_v33 = vpop.f32.mrb[3].mxu0 }
 0xb02 PF: > { %s3793_s26 = sadd.s32 4294967295, %s3016_s28   ;;  %s3042_s10 = smov [#allocation16]  }
 0xb03   : > { %p3720_p0 = scmp.eq.s32.totalorder %s3793_s26, 1  ;;  %s1919_s20 = sshll.u32 %s3042_s10, 4  ;;  %s1920_s20 = int_to_ptr.vmem [resolvable:$true] %s1919_s20 }
 0xb04   : > { %s2927_s12 = scalar_lea.vmem %s1920_s20, 32  ;;  %p2934_p2 = scmp.lt.s32.totalorder %s1920_s20, %s1920_s20 }
 0xb05   : > { %p2928_p5 = scmp.ne.s32.totalorder %s1920_s20, %s2927_s12  ;;  %p2935_p4 = scmp.lt.s32.totalorder %s2927_s12, %s2927_s12 }
 0xb07   : > { %p2929_p8 = pnand %p2928_p5, %p3720_p0  ;;  %p2936_p6 = por %p2935_p4, %p2934_p2 }
 0xb09   : > { %p2930_p9 = pneg %p2929_p8 }
 0xb0b   : > { %p2937_p10 = pnand %p2936_p6, %p2930_p9 }
 0xb0d   : > { %2940 = shalt.err (!%p2937_p10)
}
 0xb0e   : > { %s2941_s8 = scalar_lea.hbm %s3767_s7, 32 }
 0xb0f   : > { %p2942_p7 = scmp.ne.s32.totalorder %s3767_s7, %s2941_s8  ;;  %p2947_p11 = scmp.lt.u32.totalorder %s2941_s8, %s3767_s7 }
 0xb11   : > { %p2943_p1 = pnand %p2942_p7, %p3720_p0 }
 0xb13   : > { %p2944_p3 = pneg %p2943_p1 }
 0xb15   : > { %p2949_p12 = pnand %p2947_p11, %p2944_p3 }
 0xb17   : > { %2952 = shalt.err (!%p2949_p12)
}
 0xb18   : > { %2486 = dma.vmem_to_hbm [thread:$0]  (%p3720_p0), %s1920_s20, 32, %s3767_s7, [#allocation6]  }
 0xb19   : > { %2994 = dma.done.wait (%p3720_p0), [#allocation6], 32  }
 0xb1a   : > { %2996 = vsyncadd (%p3720_p0), [#allocation6], 4294967264 }
 0xb1b PF: > { %s24_s28 = sadd.s32 1, %s3016_s28   ;;  %s3795_s24 = smov %s3004_s25 }
 0xb1c   : > { %p21_p13 = scmp.ge.s32.totalorder %s24_s28, 4   ;;  %s3750_s25 = smov 0  }
 0xb1d   : > { %s3796_s26 = smov %s3012_s27  ;;  %s3797_s27 = smov %s3799_s21 }
 0xb1e   :  { %23 = sbr.rel (!%p21_p13) target bundleno = 11 (0xb), region = 135 }
 0xb25   :  { %1932 = vsyncpa [#allocation5], 1 }
 0xb26   :  { %1934 = vsyncpa [#allocation5 + $0x1], 1 }
 0xb27   :  { %1935 = vsyncpa [#allocation8], 1 }
 0xb28   :  { %1936 = vsyncpa [#allocation11], 1 }
 0xb29   :  { %1937 = vsyncpa [#allocation14], 1 }
 0xb2a   :  { %1938 = vsyncpa [#allocation6], 1 }
 0xb2b   :  { %1940 = vsyncpa [#allocation6 + $0x1], 1 }

// kernel: tpu_custom_call.1
= control target key start
LH: loop header
LB: loop body
LE: loop exit
PB: predicated region body
PF: predicated region fallthrough
CT: control target
= control target key end

     0   :  { %s3760_s0 = inlined_call_operand.hbm [shape: bf16[8,2,16], index: 0, kind: input, shape index: {}]   ;;  %s3761_s1 = inlined_call_operand.hbm [shape: bf16[16,384], index: 1, kind: input, shape index: {}]   ;;  %s3762_s2 = inlined_call_operand.hbm [shape: bf16[128,384], index: 2, kind: input, shape index: {}]   ;;  %s3763_s3 = inlined_call_operand.hbm [shape: f32[1,384], index: 3, kind: input, shape index: {}]   ;;  %s3764_s4 = inlined_call_operand.hbm [shape: f32[1,128], index: 4, kind: input, shape index: {}]   ;;  %s3765_s5 = inlined_call_operand.hbm [shape: bf16[128,128], index: 5, kind: input, shape index: {}]   ;;  %s3766_s6 = inlined_call_operand.hbm [shape: f32[1,128], index: 6, kind: input, shape index: {}]   ;;  %s3767_s7 = inlined_call_operand.hbm [shape: f32[2,128], index: 7, kind: output, shape index: {}]  }
   0x1   :  { %3776 = sst [smem:[#allocation22_spill]] %s3761_s1 }
   0x2   :  { %3777 = sst [smem:[#allocation23_spill]] %s3763_s3 }
   0x3   :  { %12 = vsyncpa [#allocation5], 0 }
   0x4   :  { %14 = vsyncpa [#allocation5 + $0x1], 0 }
   0x5   :  { %15 = vsyncpa [#allocation8], 0 }
   0x6   :  { %16 = vsyncpa [#allocation11], 0 }
   0x7   :  { %17 = vsyncpa [#allocation14], 0 }
   0x8   :  { %18 = vsyncpa [#allocation6], 0  ;;  %s3083_s24 = smov 0   ;;  %s3085_s25 = smov 0  }
   0x9   :  { %s3087_s26 = smov 0   ;;  %s3089_s27 = smov 0  }
   0xa   :  { %s3091_s28 = smov 0  }
   0xb LB: > { %s3768_s29 = sadd.s32 4294967295, %s3016_s28   ;;  %p2072_p0 = scmp.ge.s32.totalorder %s3016_s28, 1  ;;  %s3016_s28 = sphi %s3091_s28, %s24_s28   ;;  %s3012_s27 = sphi %s3089_s27, %s3797_s27   ;;  %s3008_s26 = sphi %s3087_s26, %s3796_s26   ;;  %s3004_s25 = sphi %s3085_s25, %s3750_s25   ;;  %s3000_s24 = sphi %s3083_s24, %s3795_s24  }
   0xc   : > { %p3112_p1 = scmp.eq.s32.totalorder %s3768_s29, 0  ;;  %p225_p2 = scmp.lt.s32.totalorder %s3016_s28, 3 }
   0xd   : > { %s3018_s9 = smov [#allocation7]   ;;  %s3019_s12 = smov [#allocation10]  }
   0xe   : > { %s3778_s30 = scalar_select %p3112_p1, 1, 0 }
   0xf   : > { %p3117_p3 = pnand %p2072_p0, %p225_p2  ;;  %s237_s10 = sshll.u32 %s3018_s9, 4  ;;  %s3121_s10 = int_to_ptr.vmem [resolvable:$true] %s237_s10 }
  0x10   : > { %s264_s13 = sshll.u32 %s3019_s12, 4  ;;  %s3020_s14 = smov [#allocation13]   ;;  %s3131_s13 = int_to_ptr.vmem [resolvable:$true] %s264_s13 }
  0x11   : > { %s3779_s8 = scalar_select %p3117_p3, 1, 0 }
  0x12   : > { %p2489_p4 = pneg %p3117_p3  ;;  %s3133_s15 = sshll.u32 %s3020_s14, 4  ;;  %s286_s15 = int_to_ptr.vmem [resolvable:$true] %s3133_s15 }
  0x13   : > { %s3781_s1 = sld [smem:[#allocation22_spill]] }
  0x14   : > { %p3127_p5 = pnand %p2489_p4, %p3112_p1 }
  0x16   : > { %p3143_p7 = pneg %p3127_p5 }
  0x19   : > { %s2729_s18 = scalar_lea.hbm %s3781_s1, 384 }
  0x1a   : > { %p2730_p6 = scmp.ne.s32.totalorder %s3781_s1, %s2729_s18  ;;  %p2736_p10 = scmp.lt.u32.totalorder %s2729_s18, %s3781_s1 }
  0x1c   : > { %p2732_p8 = pnand %p3143_p7, %p2730_p6 }
  0x1e   : > { %p2733_p9 = pneg %p2732_p8 }
  0x20   : > { %p2738_p11 = pnand %p2736_p10, %p2733_p9 }
  0x22   : > { %2741 = shalt.err (!%p2738_p11)
}
  0x23   : > { %s2742_s9 = scalar_lea.vmem %s3121_s10, 384  ;;  %p2750_p2 = scmp.lt.s32.totalorder %s3121_s10, %s3121_s10 }
  0x24   : > { %p2743_p12 = scmp.ne.s32.totalorder %s3121_s10, %s2742_s9  ;;  %p2751_p4 = scmp.lt.s32.totalorder %s2742_s9, %s2742_s9 }
  0x26   : > { %p2745_p13 = pnand %p2743_p12, %p3143_p7  ;;  %p2752_p6 = por %p2751_p4, %p2750_p2 }
  0x28   : > { %p2746_p0 = pneg %p2745_p13 }
  0x2a   : > { %p2753_p8 = pnand %p2752_p6, %p2746_p0 }
  0x2c   : > { %2756 = shalt.err (!%p2753_p8)
}
  0x2d   : > { %s3772_s12 = smov 192   ;;  %s3773_s14 = smov 12  }
  0x2e   : > { %2492 = dma.hbm_to_vmem [thread:$0]  (!%p3127_p5), %s3781_s1, 384, %s3121_s10, [#allocation8], %s3772_s12, %s3772_s12, %s3773_s14  }
  0x2f   : > { %s3783_s3 = sld [smem:[#allocation23_spill]] }
  0x35   : > { %s2757_s20 = scalar_lea.hbm %s3783_s3, 48 }
  0x36   : > { %p2758_p9 = scmp.ne.s32.totalorder %s3783_s3, %s2757_s20  ;;  %p2764_p12 = scmp.lt.u32.totalorder %s2757_s20, %s3783_s3 }
  0x38   : > { %p2760_p10 = pnand %p2758_p9, %p3143_p7 }
  0x3a   : > { %p2761_p11 = pneg %p2760_p10 }
  0x3c   : > { %p2766_p13 = pnand %p2764_p12, %p2761_p11 }
  0x3e   : > { %2769 = shalt.err (!%p2766_p13)
}
  0x3f   : > { %s2770_s10 = scalar_lea.vmem %s3131_s13, 48  ;;  %s2777_s16 = scalar_lea.vmem %s3131_s13, 64 }
  0x40   : > { %p2771_p0 = scmp.ne.s32.totalorder %s3131_s13, %s2770_s10  ;;  %p2778_p6 = scmp.lt.s32.totalorder %s3131_s13, %s3131_s13 }
  0x41   : > { %p2779_p8 = scmp.lt.s32.totalorder %s2777_s16, %s2770_s10 }
  0x42   : > { %p2773_p2 = pnand %p2771_p0, %p3143_p7 }
  0x43   : > { %p2780_p9 = por %p2779_p8, %p2778_p6 }
  0x44   : > { %p2774_p4 = pneg %p2773_p2 }
  0x46   : > { %p2781_p10 = pnand %p2780_p9, %p2774_p4 }
  0x48   : > { %2784 = shalt.err (!%p2781_p10)
}
  0x49   : > { %2498 = dma.hbm_to_vmem [thread:$0]  (!%p3127_p5), %s3783_s3, 48, %s3131_s13, [#allocation11]  }
  0x4a   : > { %s2785_s20 = scalar_lea.hbm %s3765_s5, 1024 }
  0x4b   : > { %p2786_p11 = scmp.ne.s32.totalorder %s3765_s5, %s2785_s20  ;;  %p2792_p0 = scmp.lt.u32.totalorder %s2785_s20, %s3765_s5 }
  0x4d   : > { %p2788_p12 = pnand %p2786_p11, %p3143_p7 }
  0x4f   : > { %p2789_p13 = pneg %p2788_p12 }
  0x51   : > { %p2794_p2 = pnand %p2792_p0, %p2789_p13 }
  0x53   : > { %2797 = shalt.err (!%p2794_p2)
}
  0x54   : > { %s2798_s16 = scalar_lea.vmem %s286_s15, 1024  ;;  %p2806_p9 = scmp.lt.s32.totalorder %s286_s15, %s286_s15 }
  0x55   : > { %p2799_p4 = scmp.ne.s32.totalorder %s286_s15, %s2798_s16  ;;  %p2807_p10 = scmp.lt.s32.totalorder %s2798_s16, %s2798_s16 }
  0x57   : > { %p2801_p6 = pnand %p2799_p4, %p3143_p7  ;;  %p2808_p3 = por %p2807_p10, %p2806_p9 }
  0x59   : > { %p2802_p8 = pneg %p2801_p6 }
  0x5b   : > { %p2809_p1 = pnand %p2808_p3, %p2802_p8 }
  0x5d   : > { %2812 = shalt.err (!%p2809_p1)
}
  0x5e   : > { %s3023_s13 = smov 64   ;;  %s3024_s29 = smov 4  }
  0x5f   : > { %2504 = dma.hbm_to_vmem [thread:$0]  (!%p3127_p5), %s3765_s5, 1024, %s286_s15, [#allocation14], %s3023_s13, %s3023_s13, %s3024_s29  }
  0x60   : > { %s3025_s19 = smov [#allocation9]   ;;  %s3026_s22 = smov [#allocation12]  }
  0x61   : > { %s250_s20 = sshll.u32 %s3025_s19, 4  ;;  %s275_s23 = sshll.u32 %s3026_s22, 4  ;;  %s251_s20 = int_to_ptr.vmem [resolvable:$true] %s250_s20  ;;  %s276_s23 = int_to_ptr.vmem [resolvable:$true] %s275_s23 }
  0x62   : > { %s2813_s16 = scalar_lea.hbm %s3762_s2, 3072 }
  0x63   : > { %p2814_p1 = scmp.ne.s32.totalorder %s3762_s2, %s2813_s16  ;;  %p2820_p12 = scmp.lt.u32.totalorder %s2813_s16, %s3762_s2 }
  0x65   : > { %p2816_p3 = pnand %p2814_p1, %p3143_p7 }
  0x67   : > { %p2817_p11 = pneg %p2816_p3 }
  0x69   : > { %p2822_p13 = pnand %p2820_p12, %p2817_p11 }
  0x6b   : > { %2825 = shalt.err (!%p2822_p13)
}
  0x6c   : > { %s2826_s15 = scalar_lea.vmem %s251_s20, 3072  ;;  %p2834_p6 = scmp.lt.s32.totalorder %s251_s20, %s251_s20 }
  0x6d   : > { %p2827_p0 = scmp.ne.s32.totalorder %s251_s20, %s2826_s15  ;;  %p2835_p8 = scmp.lt.s32.totalorder %s2826_s15, %s2826_s15 }
  0x6f   : > { %p2829_p2 = pnand %p2827_p0, %p3143_p7  ;;  %p2836_p9 = por %p2835_p8, %p2834_p6 }
  0x71   : > { %p2830_p4 = pneg %p2829_p2 }
  0x73   : > { %p2837_p10 = pnand %p2836_p9, %p2830_p4 }
  0x75   : > { %2840 = shalt.err (!%p2837_p10)
}
  0x76   : > { %s3784_s12 = smov 12   ;;  %s3785_s14 = smov 192  }
  0x77   : > { %2495 = dma.hbm_to_vmem [thread:$0]  (!%p3127_p5), %s3762_s2, 3072, %s251_s20, [#allocation8], %s3785_s14, %s3785_s14, %s3784_s12  }
  0x78   : > { %s2841_s17 = scalar_lea.hbm %s3764_s4, 16 }
  0x79   : > { %p2842_p1 = scmp.ne.s32.totalorder %s3764_s4, %s2841_s17  ;;  %p2848_p12 = scmp.lt.u32.totalorder %s2841_s17, %s3764_s4 }
  0x7b   : > { %p2844_p3 = pnand %p2842_p1, %p3143_p7 }
  0x7d   : > { %p2845_p11 = pneg %p2844_p3 }
  0x7f   : > { %p2850_p13 = pnand %p2848_p12, %p2845_p11 }
  0x81   : > { %2853 = shalt.err (!%p2850_p13)
}
  0x82   : > { %s2854_s10 = scalar_lea.vmem %s276_s23, 16  ;;  %s2861_s20 = scalar_lea.vmem %s276_s23, 32 }
  0x83   : > { %p2855_p0 = scmp.ne.s32.totalorder %s276_s23, %s2854_s10  ;;  %p2862_p6 = scmp.lt.s32.totalorder %s276_s23, %s276_s23 }
  0x84   : > { %p2863_p8 = scmp.lt.s32.totalorder %s2861_s20, %s2854_s10 }
  0x85   : > { %p2857_p2 = pnand %p2855_p0, %p3143_p7 }
  0x86   : > { %p2864_p9 = por %p2863_p8, %p2862_p6 }
  0x87   : > { %p2858_p4 = pneg %p2857_p2 }
  0x89   : > { %p2865_p10 = pnand %p2864_p9, %p2858_p4 }
  0x8b   : > { %2868 = shalt.err (!%p2865_p10)
}
  0x8c   : > { %2501 = dma.hbm_to_vmem [thread:$0]  (!%p3127_p5), %s3764_s4, 16, %s276_s23, [#allocation11]  }
  0x8d   : > { %s3027_s12 = smov [#allocation15]   ;;  %s2869_s13 = scalar_lea.hbm %s3766_s6, 16 }
  0x8e   : > { %s299_s14 = sshll.u32 %s3027_s12, 4  ;;  %p2870_p1 = scmp.ne.s32.totalorder %s3766_s6, %s2869_s13  ;;  %s300_s14 = int_to_ptr.vmem [resolvable:$true] %s299_s14 }
  0x8f   : > { %p2876_p12 = scmp.lt.u32.totalorder %s2869_s13, %s3766_s6 }
  0x90   : > { %p2872_p3 = pnand %p2870_p1, %p3143_p7 }
  0x92   : > { %p2873_p11 = pneg %p2872_p3 }
  0x94   : > { %p2878_p13 = pnand %p2876_p12, %p2873_p11 }
  0x96   : > { %2881 = shalt.err (!%p2878_p13)
}
  0x97   : > { %s2882_s23 = scalar_lea.vmem %s300_s14, 16  ;;  %s2889_s22 = scalar_lea.vmem %s300_s14, 32 }
  0x98   : > { %p2883_p0 = scmp.ne.s32.totalorder %s300_s14, %s2882_s23  ;;  %p2890_p6 = scmp.lt.s32.totalorder %s300_s14, %s300_s14 }
  0x99   : > { %p2891_p8 = scmp.lt.s32.totalorder %s2889_s22, %s2882_s23 }
  0x9a   : > { %p2885_p2 = pnand %p2883_p0, %p3143_p7 }
  0x9b   : > { %p2892_p9 = por %p2891_p8, %p2890_p6 }
  0x9c   : > { %p2886_p4 = pneg %p2885_p2 }
  0x9e   : > { %p2893_p10 = pnand %p2892_p9, %p2886_p4 }
  0xa0   : > { %2896 = shalt.err (!%p2893_p10)
}
  0xa1   : > { %2507 = dma.hbm_to_vmem [thread:$0]  (!%p3127_p5), %s3766_s6, 16, %s300_s14, [#allocation14]  }
  0xa2   : > { %s33_s21 = sadd.s32 1, %s3012_s27  ;;  %p2997_p1 = scmp.ne.s32.totalorder %s3004_s25, 0 }
  0xa3   : > { %p34_p7 = scmp.ge.s32.totalorder %s33_s21, 2  ;;  %p57_p3 = scmp.eq.s32.totalorder %s3016_s28, 0 }
  0xa4   : > { %p62_p11 = scmp.ne.s32.totalorder %s3004_s25, %s3000_s24  ;;  %p2518_p13 = scmp.lt.s32.totalorder %s3016_s28, 2 }
  0xa5   : > { %s3799_s21 = smov (%p34_p7, %s33_s21), 0  ;;  %p58_p12 = por %p2997_p1, %p57_p3 }
  0xa6   : > { %p3786_p0 = scmp.ne.s32.totalorder %s3778_s30, 0  ;;  %s3028_s20 = smov [#allocation4]  }
  0xa7   : > { %s324_s16 = sshll.u32 %s3028_s20, 4  ;;  %p3281_p4 = pnand %p2518_p13, %p58_p12  ;;  %s325_s16 = int_to_ptr.vmem [resolvable:$true] %s324_s16 }
  0xa8   : > { %p3277_p2 = por %p3786_p0, %p62_p11  ;;  %s2897_s1 = scalar_lea.hbm %s3760_s0, 128 }
  0xa9   : > { %s3788_s15 = scalar_select %p3281_p4, 1, 0 }
  0xaa   : > { %s3787_s11 = scalar_select %p3277_p2, 1, 0 }
  0xab   : > { %p2898_p5 = scmp.ne.s32.totalorder %s3760_s0, %s2897_s1  ;;  %p2899_p6 = pneg %p3281_p4 }
  0xac   : > { %p2904_p10 = scmp.lt.u32.totalorder %s2897_s1, %s2897_s1  ;;  %p2906_p7 = scmp.lt.u32.totalorder %s2897_s1, %s3760_s0 }
  0xad   : > { %p2900_p8 = pnand %p2899_p6, %p2898_p5 }
  0xae   : > { %p2907_p1 = por %p2906_p7, %p2904_p10 }
  0xaf   : > { %p2901_p9 = pneg %p2900_p8 }
  0xb1   : > { %p2908_p3 = pnand %p2907_p1, %p2901_p9 }
  0xb3   : > { %2911 = shalt.err (!%p2908_p3)
}
  0xb4   : > { %s2912_s17 = scalar_lea.vmem %s325_s16, 128  ;;  %s2919_s18 = scalar_lea.vmem %s325_s16, 256 }
  0xb5   : > { %p2913_p11 = scmp.ne.s32.totalorder %s325_s16, %s2912_s17  ;;  %p2920_p0 = scmp.lt.s32.totalorder %s325_s16, %s325_s16 }
  0xb6   : > { %p2921_p2 = scmp.lt.s32.totalorder %s2919_s18, %s2912_s17 }
  0xb7   : > { %p2915_p12 = pnand %p2913_p11, %p2899_p6 }
  0xb8   : > { %p2922_p4 = por %p2921_p2, %p2920_p0 }
  0xb9   : > { %p2916_p13 = pneg %p2915_p12 }
  0xbb   : > { %p2923_p5 = pnand %p2922_p4, %p2916_p13 }
  0xbd   : > { %2926 = shalt.err (!%p2923_p5)
}
  0xbe   : > { %s3029_s19 = smov 16   ;;  %s3030_s23 = smov 1  }
  0xbf   : > { %p3789_p8 = scmp.ne.s32.totalorder %s3788_s15, 0  ;;  %p3790_p9 = scmp.ne.s32.totalorder %s3779_s8, 0 }
  0xc0   : > { %s338_s10 = sand.u32 (!%p3790_p9), 1, %s3004_s25   ;;  %p3791_p2 = scmp.ne.s32.totalorder (!%p3790_p9), %s3787_s11, 0 }
  0xc1   : > { %2511 = dma.hbm_to_vmem [thread:$0]  (!%p3789_p8), %s3760_s0, 128, %s325_s16, [#allocation5], %s3029_s19, %s3029_s19, %s3030_s23  }
  0xc2   : > { %336 = sbr.rel (%p3790_p9) target bundleno = 2843 (0xb1b), region = 48  ;;  %s2084_s20 = sshll.u32 (!%p3790_p9), %s338_s10, 3 }
  0xc3   : > { %s339_s12 = scalar_lea.sflag (!%p3790_p9), [#allocation5], %s338_s10  ;;  %s3304_s14 = scalar_lea.vmem (!%p3790_p9), [#allocation4], %s2084_s20 }
  0xc9   : > { %2978 = dma.done.wait (%p3791_p2), %s339_s12, 128  }
  0xca   : > { %2980 = vsyncadd (%p3791_p2), %s339_s12, 4294967168  ;;  %p3792_p4 = scmp.ne.s32.totalorder %s3778_s30, 0 }
  0xcc   : > { %2982 = dma.done.wait (%p3792_p4), [#allocation8], 3456  }
  0xcd   : > { %2984 = vsyncadd (%p3792_p4), [#allocation8], 4294963840 }
  0xce   : > { %2986 = dma.done.wait (%p3792_p4), [#allocation11], 64  }
  0xcf   : > { %2988 = vsyncadd (%p3792_p4), [#allocation11], 4294967232 }
  0xd0   : > { %2990 = dma.done.wait (%p3792_p4), [#allocation14], 1040  }
  0xd1   : > { %2992 = vsyncadd (%p3792_p4), [#allocation14], 4294966256  ;;  %p2091_p6 = scmp.ne.s32.totalorder %s3008_s26, 0 }
  0xd2   : > { %v3031_v0 = vmov (!%p2091_p6), 0.0  }
  0xd3   : > { %399 = sbr.rel (%p2091_p6) target bundleno = 218 (0xda), region = 80  ;;  %400 = vst [vmem:[#allocation2] sm:$0x3] (!%p2091_p6), %v3031_v0 }
  0xda PF: > { %p2092_p10 = scmp.ge.s32.totalorder %s3008_s26, 1 }
  0xdb   : > { %v2599_v1 = vld [vmem:[#allocation7 + $0x4] ss:$12 sps:$4 sm:$0xff] (!%p2092_p10)   ;;  %v3032_v2 = vmov (!%p2092_p10), 0.0   ;;  %v2601_v3 = vld [vmem:[#allocation7] ss:$12 sps:$4 sm:$0xff] (!%p2092_p10)   ;;  %v3033_v4 = vmov (!%p2092_p10), 0   ;;  %v431_v6 = vlaneseq (!%p2092_p10) }
  0xdc   : > { %404 = sbr.rel (%p2092_p10) target bundleno = 464 (0x1d0), region = 84  ;;  %2273 = vmatprep.subr.bf16.mxu1 (!%p2092_p10), %v3032_v2  ;;  %555 = vmatprep.mubr.bf16.mxu0 (!%p2092_p10), %v3033_v4  ;;  %v2602_v5 = vld [vmem:[#allocation7 + $0x8] ss:$12 sps:$4 sm:$0xff] (!%p2092_p10)   ;;  %vm3034_vm0 = vmmov (!%p2092_p10), 0   ;;  %v417_v7 = vld [vmem:[%s3304_s14] sm:$0x1] (!%p2092_p10) }
  0xdd   : > { %523 = vmatprep.subr.bf16.mxu0 (!%p2092_p10), %v2599_v1  ;;  %2275 = vmatprep.mubr.msk.bf16.mxu1 (!%p2092_p10), %vm3034_vm0, %v3032_v2  ;;  %v418_v8 = vld [vmem:[%s3304_s14 + $0x1] sm:$0x1] (!%p2092_p10)  ;;  %v419_v9 = vld [vmem:[%s3304_s14 + $0x2] sm:$0x1] (!%p2092_p10)  ;;  %v420_v10 = vld [vmem:[%s3304_s14 + $0x3] sm:$0x1] (!%p2092_p10) }
  0xde   : > { %524 = vmatpush1.bf16.msra.mxu0 (!%p2092_p10), %v2601_v3  ;;  %2274 = vmatpush3.bf16.msra.mxu1 (!%p2092_p10), %v2602_v5  ;;  %v421_v11 = vld [vmem:[%s3304_s14 + $0x4] sm:$0x1] (!%p2092_p10)  ;;  %v422_v12 = vld [vmem:[%s3304_s14 + $0x5] sm:$0x1] (!%p2092_p10)  ;;  %v423_v13 = vld [vmem:[%s3304_s14 + $0x6] sm:$0x1] (!%p2092_p10)  ;;  %v454_v18 = vcombine.low (!%p2092_p10), %v417_v7, %v418_v8  ;;  %v455_v19 = vcombine.low (!%p2092_p10), %v419_v9, %v420_v10 }
  0xdf   : > { %v424_v14 = vld [vmem:[%s3304_s14 + $0x7] sm:$0x1] (!%p2092_p10)  ;;  %v432_v15 = vshrl.u32 (!%p2092_p10), %v431_v6, 7  ;;  %v3035_v16 = vmov (!%p2092_p10), 1966171168   ;;  %v456_v20 = vcombine.low (!%p2092_p10), %v421_v11, %v422_v12  ;;  %vm519_vm1 = vcmask (!%p2092_p10), 130048  }
  0xe0   : > { %v459_v17 = vunpack.c.l.s4 (!%p2092_p10), %v3035_v16  ;;  %v457_v21 = vcombine.low (!%p2092_p10), %v423_v13, %v424_v14  ;;  %s406_s30 = ssub.s32 (!%p2092_p10), 0, %s3008_s26  ;;  %p405_p7 = scmp.lt.s32.totalorder (!%p2092_p10), %s3008_s26, 0  ;;  %v3036_v35 = vmov (!%p2092_p10), 1983009808   ;;  %v429_v37 = vld [vmem:[#allocation10] sm:$0x7] (!%p2092_p10) }
  0xe1   : > { %s2093_s8 = smin.u32 (!%p2092_p10), %s3008_s26, %s406_s30  ;;  %v433_v33 = vsub.s32 (!%p2092_p10), 0, %v432_v15  ;;  %v441_v34 = vsub.s32 (!%p2092_p10), 2, %v432_v15  ;;  %v618_v36 = vunpack.c.l.s4 (!%p2092_p10), %v3036_v35  ;;  %v437_v38 = vsub.s32 (!%p2092_p10), 1, %v432_v15 }
  0xe2   : > { %v460_v22 = vunpack.c.0.s8 (!%p2092_p10), %v459_v17  ;;  %s408_s11 = sand.u32 (!%p2092_p10), 1, %s2093_s8  }
  0xe3   : > { %s409_s16 = ssub.s32 0, %s408_s11  ;;  %v434_v39 = vrot.slane %v429_v37, %v433_v33  ;;  %v442_v40 = vrot.slane %v429_v37, %v441_v34  ;;  %v619_v41 = vunpack.c.0.s8 %v618_v36  ;;  %v438_v42 = vrot.slane %v429_v37, %v437_v38 }
  0xe4   : > { %v463_v23 = vsub.s32 %v460_v22, %v432_v15  ;;  %s3801_s16 = smov (!%p405_p7, %s409_s16), %s408_s11 }
  0xe5   : > { %p2095_p1 = scmp.lt.s32.totalorder %s3801_s16, 0  ;;  %s415_s15 = sadd.s32 2, %s3801_s16  ;;  %v622_v47 = vsub.s32 %v619_v41, %v432_v15 }
  0xe6   : > { %v464_v24 = vrot.slane %v454_v18, %v463_v23  ;;  %v471_v25 = vrot.slane %v455_v19, %v463_v23  ;;  %v478_v26 = vrot.slane %v456_v20, %v463_v23  ;;  %v485_v27 = vrot.slane %v457_v21, %v463_v23 }
  0xe7   : > { %s3803_s15 = smov (!%p2095_p1, %s415_s15), %s3801_s16 }
  0xe8   : > { %v486_v28 = vcombine.low %v464_v24, %v471_v25  ;;  %v487_v29 = vcombine.low %v478_v26, %v485_v27  ;;  %s2188_s1 = smul.u32 48, %s3803_s15 }
  0xea   : > { %v494_v30 = vrot.slane %v486_v28, %v463_v23  ;;  %v501_v31 = vrot.slane %v487_v29, %v463_v23  ;;  %s694_s24 = scalar_lea.vmem [#allocation3], %s2188_s1 }
  0xec   : > { %v502_v32 = vcombine.low %v494_v30, %v501_v31 }
  0xee   : > { %2099 = vmatmul.mubr.msk.bf16.vlgmr.msra.gmra.mrb[0].mxu0 %vm519_vm1, %v502_v32  ;;  %2276 = vmatmul.mubr.msk.bf16.vlgmr.msra.gmra.mrb[0].mxu1 %vm519_vm1, %v502_v32 }
 0x1c1   : > { %v557_v43 = vpop.f32.mrb[0].mxu0  ;;  %v600_v44 = vpop.f32.mrb[0].mxu1 }
 0x1c2   : > { %v558_v45 = vadd.f32 %v557_v43, %v434_v39  ;;  %v601_v46 = vadd.f32 %v600_v44, %v442_v40  ;;  %v559_v48 = vpop.f32.mrb[1].mxu0  ;;  %v2277_v49 = vpop.f32.mrb[1].mxu1 }
 0x1c3   : > { %v560_v50 = vadd.f32 %v559_v48, %v438_v42  ;;  %v561_v51 = vpop.f32.mrb[2].mxu0  ;;  %v603_v52 = vpop.f32.mrb[2].mxu1 }
 0x1c4   : > { %v616_v53 = vcombine.high %v601_v46, %v601_v46  ;;  %v562_v54 = vadd.f32 %v561_v51, %v434_v39  ;;  %v604_v55 = vadd.f32 %v603_v52, %v442_v40  ;;  %v563_v56 = vpop.f32.mrb[3].mxu0  ;;  %v2278_v57 = vpop.f32.mrb[3].mxu1  ;;  %v637_v61 = vrot.slane %v601_v46, %v622_v47 }
 0x1c5   : > { %v614_v58 = vcombine.low %v558_v45, %v560_v50  ;;  %v615_v59 = vcombine.high %v558_v45, %v560_v50  ;;  %v564_v60 = vadd.f32 %v563_v56, %v438_v42 }
 0x1c6   : > { %v644_v62 = vrot.slane %v616_v53, %v622_v47  ;;  %v651_v63 = vcombine.high %v604_v55, %v604_v55  ;;  %v672_v9 = vrot.slane %v604_v55, %v622_v47 }
 0x1c7   : > { %v623_v0 = vrot.slane %v614_v58, %v622_v47  ;;  %v630_v1 = vrot.slane %v615_v59, %v622_v47  ;;  %v649_v2 = vcombine.low %v562_v54, %v564_v60  ;;  %v650_v3 = vcombine.high %v562_v54, %v564_v60 }
 0x1c8   : > { %v679_v4 = vrot.slane %v651_v63, %v622_v47 }
 0x1c9   : > { %v645_v5 = vcombine.low %v623_v0, %v637_v61  ;;  %v646_v6 = vcombine.high %v623_v0, %v637_v61  ;;  %v647_v7 = vcombine.low %v630_v1, %v644_v62  ;;  %v648_v8 = vcombine.high %v630_v1, %v644_v62 }
 0x1ca   : > { %v658_v10 = vrot.slane %v649_v2, %v622_v47  ;;  %v665_v11 = vrot.slane %v650_v3, %v622_v47 }
 0x1cb   : > { %695 = vst [vmem:[%s694_s24] sm:$0x3f] %v645_v5  ;;  %696 = vst [vmem:[%s694_s24 + $0x6] sm:$0x3f] %v646_v6 }
 0x1cc   : > { %697 = vst [vmem:[%s694_s24 + $0xc] sm:$0x3f] %v647_v7  ;;  %698 = vst [vmem:[%s694_s24 + $0x12] sm:$0x3f] %v648_v8  ;;  %v680_v12 = vcombine.low %v658_v10, %v672_v9  ;;  %v681_v13 = vcombine.high %v658_v10, %v672_v9  ;;  %v682_v14 = vcombine.low %v665_v11, %v679_v4 }
 0x1cd   : > { %v683_v15 = vcombine.high %v665_v11, %v679_v4 }
 0x1ce   : > { %699 = vst [vmem:[%s694_s24 + $0x18] sm:$0x3f] %v680_v12  ;;  %700 = vst [vmem:[%s694_s24 + $0x1e] sm:$0x3f] %v681_v13 }
 0x1cf   : > { %701 = vst [vmem:[%s694_s24 + $0x24] sm:$0x3f] %v682_v14  ;;  %702 = vst [vmem:[%s694_s24 + $0x2a] sm:$0x3f] %v683_v15 }
 0x1d0 PF: > { %p2104_p3 = scmp.le.s32.totalorder %s3008_s26, 0 }
 0x1d1   : > { %v3339_v16 = vld [vmem:[#allocation9 + $0x4] ss:$12 sps:$4 sm:$0xff] (!%p2104_p3)   ;;  %v3341_v17 = vld [vmem:[#allocation9] ss:$12 sps:$4 sm:$0xff] (!%p2104_p3)   ;;  %v3037_v18 = vmov (!%p2104_p3), 0.0   ;;  %v3038_v19 = vmov (!%p2104_p3), 0  }
 0x1d2   : > { %706 = sbr.rel (%p2104_p3) target bundleno = 2818 (0xb02), region = 88  ;;  %2279 = vmatprep.subr.bf16.mxu1 (!%p2104_p3), %v3037_v18  ;;  %919 = vmatprep.mubr.bf16.mxu0 (!%p2104_p3), %v3038_v19  ;;  %v3346_v20 = vld [vmem:[#allocation9 + $0x1c] ss:$12 sps:$4 sm:$0xff] (!%p2104_p3)   ;;  %vm3039_vm2 = vmmov (!%p2104_p3), 0   ;;  %v3351_v21 = vld [vmem:[#allocation9 + $0x18] ss:$12 sps:$4 sm:$0xff] (!%p2104_p3)  }
 0x1d3   : > { %887 = vmatprep.subr.bf16.mxu0 (!%p2104_p3), %v3339_v16  ;;  %2295 = vmatprep.mubr.msk.bf16.mxu1 (!%p2104_p3), %vm3039_vm2, %v3037_v18  ;;  %v3354_v22 = vld [vmem:[#allocation9 + $0x34] ss:$12 sps:$4 sm:$0xff] (!%p2104_p3)   ;;  %v3357_v23 = vld [vmem:[#allocation9 + $0x30] ss:$12 sps:$4 sm:$0xff] (!%p2104_p3)   ;;  %v3360_v24 = vld [vmem:[#allocation9 + $0x4c] ss:$12 sps:$4 sm:$0xff] (!%p2104_p3)  }
 0x1d4   : > { %888 = vmatpush1.bf16.msra.mxu0 (!%p2104_p3), %v3341_v17  ;;  %v3362_v25 = vld [vmem:[#allocation9 + $0x8] ss:$12 sps:$4 sm:$0xff] (!%p2104_p3)   ;;  %v3369_v27 = vld [vmem:[#allocation9 + $0x64] ss:$12 sps:$4 sm:$0xff] (!%p2104_p3)   ;;  %v3372_v28 = vld [vmem:[#allocation9 + $0x20] ss:$12 sps:$4 sm:$0xff] (!%p2104_p3)  }
 0x1d5   : > { %889 = vmatprep.subr.bf16.mxu0 (!%p2104_p3), %v3346_v20  ;;  %v3365_v26 = vld [vmem:[#allocation9 + $0x48] ss:$12 sps:$4 sm:$0xff] (!%p2104_p3)   ;;  %2280 = vmatpush3.bf16.msra.mxu1 (!%p2104_p3), %v3362_v25  ;;  %v3374_v29 = vld [vmem:[#allocation9 + $0x60] ss:$12 sps:$4 sm:$0xff] (!%p2104_p3)   ;;  %v3378_v30 = vld [vmem:[#allocation9 + $0x38] ss:$12 sps:$4 sm:$0xff] (!%p2104_p3)  }
 0x1d6   : > { %2281 = vmatprep.subr.bf16.mxu1 (!%p2104_p3), %v3037_v18  ;;  %v3381_v31 = vld [vmem:[#allocation9 + $0x7c] ss:$12 sps:$4 sm:$0xff] (!%p2104_p3)   ;;  %v3385_v32 = vld [vmem:[#allocation9 + $0x78] ss:$12 sps:$4 sm:$0xff] (!%p2104_p3)   ;;  %v3391_v34 = vld [vmem:[#allocation9 + $0x94] ss:$12 sps:$4 sm:$0xff] (!%p2104_p3)  }
 0x1d7   : > { %v3388_v33 = vld [vmem:[#allocation9 + $0x50] ss:$12 sps:$4 sm:$0xff] (!%p2104_p3)   ;;  %v3398_v36 = vld [vmem:[#allocation9 + $0x68] ss:$12 sps:$4 sm:$0xff] (!%p2104_p3)   ;;  %v3401_v37 = vld [vmem:[#allocation9 + $0xac] ss:$12 sps:$4 sm:$0xff] (!%p2104_p3)  }
 0x1d8   : > { %890 = vmatpush1.bf16.msra.mxu0 (!%p2104_p3), %v3351_v21  ;;  %v3395_v35 = vld [vmem:[#allocation9 + $0x90] ss:$12 sps:$4 sm:$0xff] (!%p2104_p3)   ;;  %v3405_v38 = vld [vmem:[#allocation9 + $0xa8] ss:$12 sps:$4 sm:$0xff] (!%p2104_p3)   ;;  %v3410_v40 = vld [vmem:[#allocation9 + $0x80] ss:$12 sps:$4 sm:$0xff] (!%p2104_p3)  }
 0x1d9   : > { %891 = vmatprep.subr.bf16.mxu0 %v3354_v22  ;;  %2282 = vmatpush3.bf16.msra.mxu1 %v3372_v28  ;;  %v3407_v39 = vld [vmem:[#allocation2] sm:$0x3]  ;;  %v3418_v42 = vld [vmem:[#allocation9 + $0x98] ss:$12 sps:$4 sm:$0xff]   ;;  %v3423_v43 = vld [vmem:[#allocation9 + $0xb0] ss:$12 sps:$4 sm:$0xff]  }
 0x1da   : > { %2283 = vmatprep.subr.bf16.mxu1 %v3037_v18  ;;  %v726_v41 = vpack.c.bf16 %v3407_v39, %v3407_v39  ;;  %s707_s3 = sadd.s32 1, %s3008_s26  ;;  %v3467_v60 = vld [vmem:[#allocation12] ss:$0 sm:$0xff]  ;;  %p2173_p13 = scmp.ne.s32.totalorder %s3008_s26, 1 }
 0x1db   : > { %s709_s13 = ssub.s32 0, %s707_s3  ;;  %p708_p11 = scmp.lt.s32.totalorder %s707_s3, 0  ;;  %vm3041_vm3 = vmmov (!%p2173_p13), 0  }
 0x1dc   : > { %892 = vmatpush1.bf16.msra.mxu0 %v3357_v23  ;;  %s2105_s29 = smin.u32 %s709_s13, %s707_s3 }
 0x1dd   : > { %893 = vmatprep.subr.bf16.mxu0 %v3360_v24  ;;  %2284 = vmatpush3.bf16.msra.mxu1 %v3378_v30  ;;  %s711_s17 = sand.u32 1, %s2105_s29  }
 0x1de   : > { %2285 = vmatprep.subr.bf16.mxu1 %v3037_v18  ;;  %s712_s18 = ssub.s32 0, %s711_s17 }
 0x1df   : > { %s3805_s18 = smov (!%p708_p11, %s712_s18), %s711_s17 }
 0x1e0   : > { %894 = vmatpush1.bf16.msra.mxu0 %v3365_v26  ;;  %p2107_p12 = scmp.lt.s32.totalorder %s3805_s18, 0  ;;  %s718_s19 = sadd.s32 2, %s3805_s18 }
 0x1e1   : > { %895 = vmatprep.subr.bf16.mxu0 %v3369_v27  ;;  %2286 = vmatpush3.bf16.msra.mxu1 %v3388_v33 }
 0x1e2   : > { %2287 = vmatprep.subr.bf16.mxu1 %v3037_v18  ;;  %s3807_s19 = smov (!%p2107_p12, %s718_s19), %s3805_s18 }
 0x1e3   : > { %s2189_s23 = smul.u32 48, %s3807_s19 }
 0x1e4   : > { %896 = vmatpush1.bf16.msra.mxu0 %v3374_v29 }
 0x1e5   : > { %897 = vmatprep.subr.bf16.mxu0 %v3381_v31  ;;  %2288 = vmatpush3.bf16.msra.mxu1 %v3398_v36  ;;  %s3464_s22 = scalar_lea.vmem [#allocation3], %s2189_s23 }
 0x1e6   : > { %2289 = vmatprep.subr.bf16.mxu1 %v3037_v18  ;;  %v725_v44 = vld [vmem:[%s3464_s22] sm:$0x3f]  ;;  %v2140_v10 = vld [vmem:[%s3464_s22 + $0x6] sm:$0x3f] }
 0x1e7   : > { %v976_v51 = vrot.slane %v725_v44, 2  ;;  %v994_v63 = vrot.slane %v725_v44, 4 }
 0x1e8   : > { %898 = vmatpush1.bf16.msra.mxu0 %v3385_v32 }
 0x1e9   : > { %899 = vmatprep.subr.bf16.mxu0 %v3391_v34  ;;  %2290 = vmatpush3.bf16.msra.mxu1 %v3410_v40 }
 0x1ea   : > { %2291 = vmatprep.subr.bf16.mxu1 %v3037_v18 }
 0x1ec   : > { %900 = vmatpush1.bf16.msra.mxu0 %v3395_v35 }
 0x1ed   : > { %901 = vmatprep.subr.bf16.mxu0 %v3401_v37  ;;  %2292 = vmatpush3.bf16.msra.mxu1 %v3418_v42 }
 0x1ee   : > { %2293 = vmatprep.subr.bf16.mxu1 %v3037_v18 }
 0x1f0   : > { %902 = vmatpush1.bf16.msra.mxu0 %v3405_v38 }
 0x1f1   : > { %1007 = vmatprep.subr.bf16.mxu0 %v3339_v16  ;;  %2294 = vmatpush3.bf16.msra.mxu1 %v3423_v43 }
 0x1f2   : > { %2299 = vmatprep.subr.bf16.mxu1 %v3037_v18 }
 0x1f3   : > { %920 = vmatmul.mubr.bf16.vlgmr.msra.gmra.mrb[0].mxu0 %v726_v41 }
 0x1f4   : > { %1008 = vmatpush1.bf16.msra.mxu0 %v3341_v17  ;;  %1039 = vmatprep.mubr.bf16.mxu0 %v3038_v19 }
 0x1f5   : > { %1009 = vmatprep.subr.bf16.mxu0 %v3346_v20  ;;  %2296 = vmatmul.mubr.bf16.vlgmr.msra.gmra.mrb[0].mxu1 %v726_v41 }
 0x1f6   : > { %2300 = vmatpush3.bf16.msra.mxu1 %v3362_v25  ;;  %2315 = vmatprep.mubr.msk.bf16.mxu1 %vm3039_vm2, %v3037_v18 }
 0x1f7   : > { %2301 = vmatprep.subr.bf16.mxu1 %v3037_v18 }
 0x1f8   : > { %1010 = vmatpush1.bf16.msra.mxu0 %v3351_v21 }
 0x1f9   : > { %1011 = vmatprep.subr.bf16.mxu0 %v3354_v22 }
 0x1fa   : > { %2302 = vmatpush3.bf16.msra.mxu1 %v3372_v28 }
 0x1fb   : > { %2303 = vmatprep.subr.bf16.mxu1 %v3037_v18 }
 0x1fc   : > { %1012 = vmatpush1.bf16.msra.mxu0 %v3357_v23 }
 0x1fd   : > { %1013 = vmatprep.subr.bf16.mxu0 %v3360_v24 }
 0x1fe   : > { %2304 = vmatpush3.bf16.msra.mxu1 %v3378_v30 }
 0x1ff   : > { %2305 = vmatprep.subr.bf16.mxu1 %v3037_v18 }
 0x200   : > { %1014 = vmatpush1.bf16.msra.mxu0 %v3365_v26 }
 0x201   : > { %1015 = vmatprep.subr.bf16.mxu0 %v3369_v27 }
 0x202   : > { %2306 = vmatpush3.bf16.msra.mxu1 %v3388_v33 }
 0x203   : > { %2307 = vmatprep.subr.bf16.mxu1 %v3037_v18 }
 0x204   : > { %1016 = vmatpush1.bf16.msra.mxu0 %v3374_v29 }
 0x205   : > { %1017 = vmatprep.subr.bf16.mxu0 %v3381_v31 }
 0x206   : > { %2308 = vmatpush3.bf16.msra.mxu1 %v3398_v36 }
 0x207   : > { %2309 = vmatprep.subr.bf16.mxu1 %v3037_v18 }
 0x208   : > { %1018 = vmatpush1.bf16.msra.mxu0 %v3385_v32 }
 0x209   : > { %1019 = vmatprep.subr.bf16.mxu0 %v3391_v34 }
 0x20a   : > { %2310 = vmatpush3.bf16.msra.mxu1 %v3410_v40 }
 0x20b   : > { %2311 = vmatprep.subr.bf16.mxu1 %v3037_v18 }
 0x20c   : > { %1020 = vmatpush1.bf16.msra.mxu0 %v3395_v35 }
 0x20d   : > { %1021 = vmatprep.subr.bf16.mxu0 %v3401_v37 }
 0x20e   : > { %2312 = vmatpush3.bf16.msra.mxu1 %v3418_v42 }
 0x20f   : > { %2313 = vmatprep.subr.bf16.mxu1 %v3037_v18 }
 0x210   : > { %1022 = vmatpush1.bf16.msra.mxu0 %v3405_v38 }
 0x211   : > { %1120 = vmatprep.subr.bf16.mxu0 %v3339_v16 }
 0x212   : > { %2314 = vmatpush3.bf16.msra.mxu1 %v3423_v43 }
 0x213   : > { %2319 = vmatprep.subr.bf16.mxu1 %v3037_v18 }
 0x2c6   : > { %v921_v45 = vpop.f32.mrb[0].mxu0 }
 0x2c7   : > { %v968_v46 = vadd.f32 %v921_v45, %v725_v44  ;;  %v923_v47 = vpop.f32.mrb[1].mxu0 }
 0x2c8   : > { %v925_v48 = vpop.f32.mrb[2].mxu0  ;;  %v962_v52 = vpop.f32.mrb[0].mxu1  ;;  %v978_v53 = vadd.f32 %v976_v51, %v923_v47  ;;  %v1096_v47 = vrot.slane %v2140_v10, 2 }
 0x2c9   : > { %v2135_v49 = vmul.f32 -1.442695, %v968_v46  ;;  %v926_v50 = vpop.f32.mrb[3].mxu0  ;;  %v2297_v54 = vpop.f32.mrb[1].mxu1  ;;  %v992_v61 = vadd.f32 %v3467_v60, %v962_v52 }
 0x2ca   : > { %v965_v55 = vpop.f32.mrb[2].mxu1  ;;  %v2136_v57 = vmul.f32 -1.442695, %v978_v53  ;;  %v1107_v53 = vrot.slane %v2140_v10, 4 }
 0x2cb   : > { %2635 = vpow2.f32 %v2135_v49  ;;  %v2298_v56 = vpop.f32.mrb[3].mxu1 }
 0x2cc   : > { %2637 = vpow2.f32 %v2136_v57 }
 0x2d5   : > { %v2636_v58 = vpop.eup %2635 }
 0x2d6   : > { %v972_v59 = vadd.f32 1.0, %v2636_v58  ;;  %v2638_v62 = vpop.eup %2637 }
 0x2d7   : > { %v982_v2 = vadd.f32 1.0, %v2638_v62 }
 0x2d8   : > { %2639 = vrcp.f32 %v972_v59 }
 0x2e2   : > { %v2640_v0 = vpop.eup %2639 }
 0x2e3   : > { %v993_v1 = vmul.f32 %v2640_v0, %v992_v61 }
 0x2e5   : > { %v996_v3 = vadd.f32 %v994_v63, %v993_v1 }
 0x2e7   : > { %2641 = vtanh.f32 %v996_v3 }
 0x2e8   : > { %2643 = vrcp.f32 %v982_v2  ;;  %v2145_v2 = vld [vmem:[%s3464_s22 + $0xc] sm:$0x3f] }
 0x2f1   : > { %v2642_v4 = vpop.eup %2641 }
 0x2f2   : > { %v998_v5 = vsub.f32 %v3407_v39, %v2642_v4  ;;  %v2644_v6 = vpop.eup %2643 }
 0x2f4   : > { %v999_v7 = vmul.f32 %v2644_v6, %v998_v5 }
 0x2f6   : > { %v3471_v8 = vadd.f32 %v2642_v4, %v999_v7 }
 0x2f8   : > { %v1006_v9 = vpack.c.bf16 %v3471_v8, %v3471_v8 }
 0x2fa   : > { %1040 = vmatmul.mubr.bf16.vlgmr.msra.gmra.mrb[4].mxu0 %v1006_v9  ;;  %2316 = vmatmul.mubr.bf16.vlgmr.msra.gmra.mrb[4].mxu1 %v1006_v9 }
 0x2fb   : > { %1121 = vmatpush1.bf16.msra.mxu0 %v3341_v17  ;;  %2320 = vmatpush3.bf16.msra.mxu1 %v3362_v25 }
 0x2fc   : > { %1122 = vmatprep.subr.bf16.mxu0 %v3346_v20  ;;  %2321 = vmatprep.subr.bf16.mxu1 %v3037_v18 }
 0x2fd   : > { %1152 = vmatprep.mubr.bf16.mxu0 %v3038_v19  ;;  %2335 = vmatprep.mubr.msk.bf16.mxu1 %vm3039_vm2, %v3037_v18 }
 0x2ff   : > { %1123 = vmatpush1.bf16.msra.mxu0 %v3351_v21  ;;  %2322 = vmatpush3.bf16.msra.mxu1 %v3372_v28 }
 0x300   : > { %1124 = vmatprep.subr.bf16.mxu0 %v3354_v22  ;;  %2323 = vmatprep.subr.bf16.mxu1 %v3037_v18 }
 0x303   : > { %1125 = vmatpush1.bf16.msra.mxu0 %v3357_v23  ;;  %2324 = vmatpush3.bf16.msra.mxu1 %v3378_v30 }
 0x304   : > { %1126 = vmatprep.subr.bf16.mxu0 %v3360_v24  ;;  %2325 = vmatprep.subr.bf16.mxu1 %v3037_v18 }
 0x307   : > { %1127 = vmatpush1.bf16.msra.mxu0 %v3365_v26  ;;  %2326 = vmatpush3.bf16.msra.mxu1 %v3388_v33 }
 0x308   : > { %1128 = vmatprep.subr.bf16.mxu0 %v3369_v27  ;;  %2327 = vmatprep.subr.bf16.mxu1 %v3037_v18 }
 0x30b   : > { %1129 = vmatpush1.bf16.msra.mxu0 %v3374_v29  ;;  %2328 = vmatpush3.bf16.msra.mxu1 %v3398_v36 }
 0x30c   : > { %1130 = vmatprep.subr.bf16.mxu0 %v3381_v31  ;;  %2329 = vmatprep.subr.bf16.mxu1 %v3037_v18 }
 0x30f   : > { %1131 = vmatpush1.bf16.msra.mxu0 %v3385_v32  ;;  %2330 = vmatpush3.bf16.msra.mxu1 %v3410_v40 }
 0x310   : > { %1132 = vmatprep.subr.bf16.mxu0 %v3391_v34  ;;  %2331 = vmatprep.subr.bf16.mxu1 %v3037_v18 }
 0x313   : > { %1133 = vmatpush1.bf16.msra.mxu0 %v3395_v35  ;;  %2332 = vmatpush3.bf16.msra.mxu1 %v3418_v42 }
 0x314   : > { %1134 = vmatprep.subr.bf16.mxu0 %v3401_v37  ;;  %2333 = vmatprep.subr.bf16.mxu1 %v3037_v18 }
 0x317   : > { %1135 = vmatpush1.bf16.msra.mxu0 %v3405_v38  ;;  %2334 = vmatpush3.bf16.msra.mxu1 %v3423_v43 }
 0x318   : > { %1233 = vmatprep.subr.bf16.mxu0 %v3339_v16  ;;  %2339 = vmatprep.subr.bf16.mxu1 %v3037_v18 }
 0x3cd   : > { %v1041_v11 = vpop.f32.mrb[4].mxu0  ;;  %v1082_v12 = vpop.f32.mrb[4].mxu1 }
 0x3ce   : > { %v1088_v13 = vadd.f32 %v2140_v10, %v1041_v11  ;;  %v1043_v14 = vpop.f32.mrb[5].mxu0  ;;  %v2317_v15 = vpop.f32.mrb[5].mxu1  ;;  %v1105_v54 = vadd.f32 %v3467_v60, %v1082_v12 }
 0x3cf   : > { %v1045_v39 = vpop.f32.mrb[6].mxu0  ;;  %v1085_v41 = vpop.f32.mrb[6].mxu1  ;;  %v1098_v48 = vadd.f32 %v1096_v47, %v1043_v14 }
 0x3d0   : > { %v2141_v44 = vmul.f32 -1.442695, %v1088_v13  ;;  %v1046_v45 = vpop.f32.mrb[7].mxu0  ;;  %v2318_v46 = vpop.f32.mrb[7].mxu1  ;;  %v1209_v13 = vrot.slane %v2145_v2, 2 }
 0x3d1   : > { %v2142_v49 = vmul.f32 -1.442695, %v1098_v48  ;;  %v1220_v45 = vrot.slane %v2145_v2, 4 }
 0x3d2   : > { %2645 = vpow2.f32 %v2141_v44 }
 0x3d3   : > { %2647 = vpow2.f32 %v2142_v49 }
 0x3dc   : > { %v2646_v50 = vpop.eup %2645 }
 0x3dd   : > { %v1092_v51 = vadd.f32 1.0, %v2646_v50  ;;  %v2648_v52 = vpop.eup %2647 }
 0x3de   : > { %v1102_v58 = vadd.f32 1.0, %v2648_v52 }
 0x3df   : > { %2649 = vrcp.f32 %v1092_v51 }
 0x3e9   : > { %v2650_v55 = vpop.eup %2649 }
 0x3ea   : > { %v1106_v56 = vmul.f32 %v2650_v55, %v1105_v54 }
 0x3ec   : > { %v1109_v57 = vadd.f32 %v1107_v53, %v1106_v56 }
 0x3ee   : > { %2651 = vtanh.f32 %v1109_v57  ;;  %v2150_v57 = vld [vmem:[%s3464_s22 + $0x12] sm:$0x3f] }
 0x3ef   : > { %2653 = vrcp.f32 %v1102_v58 }
 0x3f8   : > { %v2652_v59 = vpop.eup %2651 }
 0x3f9   : > { %v1111_v61 = vsub.f32 %v3471_v8, %v2652_v59  ;;  %v2654_v62 = vpop.eup %2653 }
 0x3fb   : > { %v1112_v63 = vmul.f32 %v2654_v62, %v1111_v61 }
 0x3fd   : > { %v3513_v0 = vadd.f32 %v2652_v59, %v1112_v63 }
 0x3ff   : > { %v1119_v1 = vpack.c.bf16 %v3513_v0, %v3513_v0 }
 0x401   : > { %1153 = vmatmul.mubr.bf16.vlgmr.msra.gmra.mrb[8].mxu0 %v1119_v1  ;;  %2336 = vmatmul.mubr.bf16.vlgmr.msra.gmra.mrb[8].mxu1 %v1119_v1 }
 0x402   : > { %1234 = vmatpush1.bf16.msra.mxu0 %v3341_v17  ;;  %2340 = vmatpush3.bf16.msra.mxu1 %v3362_v25 }
 0x403   : > { %1235 = vmatprep.subr.bf16.mxu0 %v3346_v20  ;;  %2341 = vmatprep.subr.bf16.mxu1 %v3037_v18 }
 0x404   : > { %1265 = vmatprep.mubr.bf16.mxu0 %v3038_v19  ;;  %2355 = vmatprep.mubr.msk.bf16.mxu1 %vm3039_vm2, %v3037_v18 }
 0x406   : > { %1236 = vmatpush1.bf16.msra.mxu0 %v3351_v21  ;;  %2342 = vmatpush3.bf16.msra.mxu1 %v3372_v28 }
 0x407   : > { %1237 = vmatprep.subr.bf16.mxu0 %v3354_v22  ;;  %2343 = vmatprep.subr.bf16.mxu1 %v3037_v18 }
 0x40a   : > { %1238 = vmatpush1.bf16.msra.mxu0 %v3357_v23  ;;  %2344 = vmatpush3.bf16.msra.mxu1 %v3378_v30 }
 0x40b   : > { %1239 = vmatprep.subr.bf16.mxu0 %v3360_v24  ;;  %2345 = vmatprep.subr.bf16.mxu1 %v3037_v18 }
 0x40e   : > { %1240 = vmatpush1.bf16.msra.mxu0 %v3365_v26  ;;  %2346 = vmatpush3.bf16.msra.mxu1 %v3388_v33 }
 0x40f   : > { %1241 = vmatprep.subr.bf16.mxu0 %v3369_v27  ;;  %2347 = vmatprep.subr.bf16.mxu1 %v3037_v18 }
 0x412   : > { %1242 = vmatpush1.bf16.msra.mxu0 %v3374_v29  ;;  %2348 = vmatpush3.bf16.msra.mxu1 %v3398_v36 }
 0x413   : > { %1243 = vmatprep.subr.bf16.mxu0 %v3381_v31  ;;  %2349 = vmatprep.subr.bf16.mxu1 %v3037_v18 }
 0x416   : > { %1244 = vmatpush1.bf16.msra.mxu0 %v3385_v32  ;;  %2350 = vmatpush3.bf16.msra.mxu1 %v3410_v40 }
 0x417   : > { %1245 = vmatprep.subr.bf16.mxu0 %v3391_v34  ;;  %2351 = vmatprep.subr.bf16.mxu1 %v3037_v18 }
 0x41a   : > { %1246 = vmatpush1.bf16.msra.mxu0 %v3395_v35  ;;  %2352 = vmatpush3.bf16.msra.mxu1 %v3418_v42 }
 0x41b   : > { %1247 = vmatprep.subr.bf16.mxu0 %v3401_v37  ;;  %2353 = vmatprep.subr.bf16.mxu1 %v3037_v18 }
 0x41e   : > { %1248 = vmatpush1.bf16.msra.mxu0 %v3405_v38  ;;  %2354 = vmatpush3.bf16.msra.mxu1 %v3423_v43 }
 0x41f   : > { %1346 = vmatprep.subr.bf16.mxu0 %v3339_v16  ;;  %2359 = vmatprep.subr.bf16.mxu1 %v3037_v18 }
 0x4d4   : > { %v1154_v3 = vpop.f32.mrb[8].mxu0  ;;  %v1195_v4 = vpop.f32.mrb[8].mxu1 }
 0x4d5   : > { %v1201_v5 = vadd.f32 %v2145_v2, %v1154_v3  ;;  %v1156_v6 = vpop.f32.mrb[9].mxu0  ;;  %v2337_v7 = vpop.f32.mrb[9].mxu1  ;;  %v1218_v46 = vadd.f32 %v3467_v60, %v1195_v4 }
 0x4d6   : > { %v1158_v8 = vpop.f32.mrb[10].mxu0  ;;  %v1198_v9 = vpop.f32.mrb[10].mxu1  ;;  %v1211_v14 = vadd.f32 %v1209_v13, %v1156_v6 }
 0x4d7   : > { %v2146_v10 = vmul.f32 -1.442695, %v1201_v5  ;;  %v1159_v11 = vpop.f32.mrb[11].mxu0  ;;  %v2338_v12 = vpop.f32.mrb[11].mxu1  ;;  %v1322_v5 = vrot.slane %v2150_v57, 2 }
 0x4d8   : > { %v2147_v15 = vmul.f32 -1.442695, %v1211_v14  ;;  %v1333_v11 = vrot.slane %v2150_v57, 4 }
 0x4d9   : > { %2655 = vpow2.f32 %v2146_v10 }
 0x4da   : > { %2657 = vpow2.f32 %v2147_v15 }
 0x4e3   : > { %v2656_v39 = vpop.eup %2655 }
 0x4e4   : > { %v1205_v41 = vadd.f32 1.0, %v2656_v39  ;;  %v2658_v44 = vpop.eup %2657 }
 0x4e5   : > { %v1215_v50 = vadd.f32 1.0, %v2658_v44 }
 0x4e6   : > { %2659 = vrcp.f32 %v1205_v41 }
 0x4f0   : > { %v2660_v47 = vpop.eup %2659 }
 0x4f1   : > { %v1219_v48 = vmul.f32 %v2660_v47, %v1218_v46 }
 0x4f3   : > { %v1222_v49 = vadd.f32 %v1220_v45, %v1219_v48 }
 0x4f5   : > { %2661 = vtanh.f32 %v1222_v49  ;;  %v2155_v49 = vld [vmem:[%s3464_s22 + $0x18] sm:$0x3f] }
 0x4f6   : > { %2663 = vrcp.f32 %v1215_v50 }
 0x4ff   : > { %v2662_v51 = vpop.eup %2661 }
 0x500   : > { %v1224_v52 = vsub.f32 %v3513_v0, %v2662_v51  ;;  %v2664_v53 = vpop.eup %2663 }
 0x502   : > { %v1225_v54 = vmul.f32 %v2664_v53, %v1224_v52 }
 0x504   : > { %v3555_v55 = vadd.f32 %v2662_v51, %v1225_v54 }
 0x506   : > { %v1232_v56 = vpack.c.bf16 %v3555_v55, %v3555_v55 }
 0x508   : > { %1266 = vmatmul.mubr.bf16.vlgmr.msra.gmra.mrb[12].mxu0 %v1232_v56  ;;  %2356 = vmatmul.mubr.bf16.vlgmr.msra.gmra.mrb[12].mxu1 %v1232_v56 }
 0x509   : > { %1347 = vmatpush1.bf16.msra.mxu0 %v3341_v17  ;;  %2360 = vmatpush3.bf16.msra.mxu1 %v3362_v25 }
 0x50a   : > { %1348 = vmatprep.subr.bf16.mxu0 %v3346_v20  ;;  %2361 = vmatprep.subr.bf16.mxu1 %v3037_v18 }
 0x50b   : > { %1378 = vmatprep.mubr.bf16.mxu0 %v3038_v19  ;;  %2375 = vmatprep.mubr.msk.bf16.mxu1 %vm3039_vm2, %v3037_v18 }
 0x50d   : > { %1349 = vmatpush1.bf16.msra.mxu0 %v3351_v21  ;;  %2362 = vmatpush3.bf16.msra.mxu1 %v3372_v28 }
 0x50e   : > { %1350 = vmatprep.subr.bf16.mxu0 %v3354_v22  ;;  %2363 = vmatprep.subr.bf16.mxu1 %v3037_v18 }
 0x511   : > { %1351 = vmatpush1.bf16.msra.mxu0 %v3357_v23  ;;  %2364 = vmatpush3.bf16.msra.mxu1 %v3378_v30 }
 0x512   : > { %1352 = vmatprep.subr.bf16.mxu0 %v3360_v24  ;;  %2365 = vmatprep.subr.bf16.mxu1 %v3037_v18 }
 0x515   : > { %1353 = vmatpush1.bf16.msra.mxu0 %v3365_v26  ;;  %2366 = vmatpush3.bf16.msra.mxu1 %v3388_v33 }
 0x516   : > { %1354 = vmatprep.subr.bf16.mxu0 %v3369_v27  ;;  %2367 = vmatprep.subr.bf16.mxu1 %v3037_v18 }
 0x519   : > { %1355 = vmatpush1.bf16.msra.mxu0 %v3374_v29  ;;  %2368 = vmatpush3.bf16.msra.mxu1 %v3398_v36 }
 0x51a   : > { %1356 = vmatprep.subr.bf16.mxu0 %v3381_v31  ;;  %2369 = vmatprep.subr.bf16.mxu1 %v3037_v18 }
 0x51d   : > { %1357 = vmatpush1.bf16.msra.mxu0 %v3385_v32  ;;  %2370 = vmatpush3.bf16.msra.mxu1 %v3410_v40 }
 0x51e   : > { %1358 = vmatprep.subr.bf16.mxu0 %v3391_v34  ;;  %2371 = vmatprep.subr.bf16.mxu1 %v3037_v18 }
 0x521   : > { %1359 = vmatpush1.bf16.msra.mxu0 %v3395_v35  ;;  %2372 = vmatpush3.bf16.msra.mxu1 %v3418_v42 }
 0x522   : > { %1360 = vmatprep.subr.bf16.mxu0 %v3401_v37  ;;  %2373 = vmatprep.subr.bf16.mxu1 %v3037_v18 }
 0x525   : > { %1361 = vmatpush1.bf16.msra.mxu0 %v3405_v38  ;;  %2374 = vmatpush3.bf16.msra.mxu1 %v3423_v43 }
 0x526   : > { %1459 = vmatprep.subr.bf16.mxu0 %v3339_v16  ;;  %2379 = vmatprep.subr.bf16.mxu1 %v3037_v18 }
 0x5db   : > { %v1267_v58 = vpop.f32.mrb[12].mxu0  ;;  %v1308_v59 = vpop.f32.mrb[12].mxu1 }
 0x5dc   : > { %v1314_v61 = vadd.f32 %v2150_v57, %v1267_v58  ;;  %v1269_v62 = vpop.f32.mrb[13].mxu0  ;;  %v2357_v63 = vpop.f32.mrb[13].mxu1  ;;  %v1331_v12 = vadd.f32 %v3467_v60, %v1308_v59 }
 0x5dd   : > { %v1271_v0 = vpop.f32.mrb[14].mxu0  ;;  %v1311_v1 = vpop.f32.mrb[14].mxu1  ;;  %v1324_v6 = vadd.f32 %v1322_v5, %v1269_v62 }
 0x5de   : > { %v2151_v2 = vmul.f32 -1.442695, %v1314_v61  ;;  %v1272_v3 = vpop.f32.mrb[15].mxu0  ;;  %v2358_v4 = vpop.f32.mrb[15].mxu1  ;;  %v1435_v61 = vrot.slane %v2155_v49, 2 }
 0x5df   : > { %v2152_v7 = vmul.f32 -1.442695, %v1324_v6  ;;  %v1446_v3 = vrot.slane %v2155_v49, 4 }
 0x5e0   : > { %2665 = vpow2.f32 %v2151_v2 }
 0x5e1   : > { %2667 = vpow2.f32 %v2152_v7 }
 0x5ea   : > { %v2666_v8 = vpop.eup %2665 }
 0x5eb   : > { %v1318_v9 = vadd.f32 1.0, %v2666_v8  ;;  %v2668_v10 = vpop.eup %2667 }
 0x5ec   : > { %v1328_v39 = vadd.f32 1.0, %v2668_v10 }
 0x5ed   : > { %2669 = vrcp.f32 %v1318_v9 }
 0x5f7   : > { %v2670_v13 = vpop.eup %2669 }
 0x5f8   : > { %v1332_v14 = vmul.f32 %v2670_v13, %v1331_v12 }
 0x5fa   : > { %v1335_v15 = vadd.f32 %v1333_v11, %v1332_v14 }
 0x5fc   : > { %2671 = vtanh.f32 %v1335_v15 }
 0x5fd   : > { %2673 = vrcp.f32 %v1328_v39 }
 0x606   : > { %v2672_v41 = vpop.eup %2671 }
 0x607   : > { %v1337_v44 = vsub.f32 %v3555_v55, %v2672_v41  ;;  %v2674_v45 = vpop.eup %2673 }
 0x609   : > { %v1338_v46 = vmul.f32 %v2674_v45, %v1337_v44 }
 0x60b   : > { %v3597_v47 = vadd.f32 %v2672_v41, %v1338_v46 }
 0x60d   : > { %v1345_v48 = vpack.c.bf16 %v3597_v47, %v3597_v47 }
 0x60f   : > { %1379 = vmatmul.mubr.bf16.vlgmr.msra.gmra.mrb[16].mxu0 %v1345_v48  ;;  %2376 = vmatmul.mubr.bf16.vlgmr.msra.gmra.mrb[16].mxu1 %v1345_v48 }
 0x610   : > { %1460 = vmatpush1.bf16.msra.mxu0 %v3341_v17  ;;  %2380 = vmatpush3.bf16.msra.mxu1 %v3362_v25 }
 0x611   : > { %1461 = vmatprep.subr.bf16.mxu0 %v3346_v20  ;;  %2381 = vmatprep.subr.bf16.mxu1 %v3037_v18 }
 0x612   : > { %1491 = vmatprep.mubr.bf16.mxu0 %v3038_v19  ;;  %2395 = vmatprep.mubr.msk.bf16.mxu1 %vm3039_vm2, %v3037_v18 }
 0x614   : > { %1462 = vmatpush1.bf16.msra.mxu0 %v3351_v21  ;;  %2382 = vmatpush3.bf16.msra.mxu1 %v3372_v28 }
 0x615   : > { %1463 = vmatprep.subr.bf16.mxu0 %v3354_v22  ;;  %2383 = vmatprep.subr.bf16.mxu1 %v3037_v18 }
 0x618   : > { %1464 = vmatpush1.bf16.msra.mxu0 %v3357_v23  ;;  %2384 = vmatpush3.bf16.msra.mxu1 %v3378_v30 }
 0x619   : > { %1465 = vmatprep.subr.bf16.mxu0 %v3360_v24  ;;  %2385 = vmatprep.subr.bf16.mxu1 %v3037_v18 }
 0x61c   : > { %1466 = vmatpush1.bf16.msra.mxu0 %v3365_v26  ;;  %2386 = vmatpush3.bf16.msra.mxu1 %v3388_v33 }
 0x61d   : > { %1467 = vmatprep.subr.bf16.mxu0 %v3369_v27  ;;  %2387 = vmatprep.subr.bf16.mxu1 %v3037_v18 }
 0x620   : > { %1468 = vmatpush1.bf16.msra.mxu0 %v3374_v29  ;;  %2388 = vmatpush3.bf16.msra.mxu1 %v3398_v36 }
 0x621   : > { %1469 = vmatprep.subr.bf16.mxu0 %v3381_v31  ;;  %2389 = vmatprep.subr.bf16.mxu1 %v3037_v18 }
 0x624   : > { %1470 = vmatpush1.bf16.msra.mxu0 %v3385_v32  ;;  %2390 = vmatpush3.bf16.msra.mxu1 %v3410_v40 }
 0x625   : > { %1471 = vmatprep.subr.bf16.mxu0 %v3391_v34  ;;  %2391 = vmatprep.subr.bf16.mxu1 %v3037_v18 }
 0x628   : > { %1472 = vmatpush1.bf16.msra.mxu0 %v3395_v35  ;;  %2392 = vmatpush3.bf16.msra.mxu1 %v3418_v42 }
 0x629   : > { %1473 = vmatprep.subr.bf16.mxu0 %v3401_v37  ;;  %2393 = vmatprep.subr.bf16.mxu1 %v3037_v18 }
 0x62c   : > { %1474 = vmatpush1.bf16.msra.mxu0 %v3405_v38  ;;  %2394 = vmatpush3.bf16.msra.mxu1 %v3423_v43 }
 0x62d   : > { %1572 = vmatprep.subr.bf16.mxu0 %v3339_v16  ;;  %2399 = vmatprep.subr.bf16.mxu1 %v3037_v18 }
 0x6e2   : > { %v1380_v50 = vpop.f32.mrb[16].mxu0  ;;  %v1421_v51 = vpop.f32.mrb[16].mxu1 }
 0x6e3   : > { %v1427_v52 = vadd.f32 %v2155_v49, %v1380_v50  ;;  %v1382_v53 = vpop.f32.mrb[17].mxu0  ;;  %v2377_v54 = vpop.f32.mrb[17].mxu1  ;;  %v1444_v4 = vadd.f32 %v3467_v60, %v1421_v51 }
 0x6e4   : > { %v1384_v55 = vpop.f32.mrb[18].mxu0  ;;  %v1424_v56 = vpop.f32.mrb[18].mxu1  ;;  %v1437_v62 = vadd.f32 %v1435_v61, %v1382_v53 }
 0x6e5   : > { %v2156_v57 = vmul.f32 -1.442695, %v1427_v52  ;;  %v1385_v58 = vpop.f32.mrb[19].mxu0  ;;  %v2378_v59 = vpop.f32.mrb[19].mxu1 }
 0x6e6   : > { %v2157_v63 = vmul.f32 -1.442695, %v1437_v62 }
 0x6e7   : > { %2675 = vpow2.f32 %v2156_v57 }
 0x6e8   : > { %2677 = vpow2.f32 %v2157_v63 }
 0x6f1   : > { %v2676_v0 = vpop.eup %2675 }
 0x6f2   : > { %v1431_v1 = vadd.f32 1.0, %v2676_v0  ;;  %v2678_v2 = vpop.eup %2677  ;;  %v2715_v0 = vld [vmem:[#allocation9] ss:$12 sps:$4 sm:$0xff]  }
 0x6f3   : > { %v1441_v8 = vadd.f32 1.0, %v2678_v2  ;;  %v2717_v2 = vld [vmem:[#allocation9 + $0x18] ss:$12 sps:$4 sm:$0xff]  }
 0x6f4   : > { %2679 = vrcp.f32 %v1431_v1  ;;  %v2716_v1 = vld [vmem:[#allocation9 + $0x1c] ss:$12 sps:$4 sm:$0xff]  }
 0x6fe   : > { %v2680_v5 = vpop.eup %2679 }
 0x6ff   : > { %v1445_v6 = vmul.f32 %v2680_v5, %v1444_v4  ;;  %v2719_v4 = vld [vmem:[#allocation9 + $0x30] ss:$12 sps:$4 sm:$0xff]  }
 0x701   : > { %v1448_v7 = vadd.f32 %v1446_v3, %v1445_v6  ;;  %v2718_v3 = vld [vmem:[#allocation9 + $0x34] ss:$12 sps:$4 sm:$0xff]  }
 0x703   : > { %2681 = vtanh.f32 %v1448_v7 }
 0x704   : > { %2683 = vrcp.f32 %v1441_v8 }
 0x70d   : > { %v2682_v9 = vpop.eup %2681 }
 0x70e   : > { %v1450_v10 = vsub.f32 %v3597_v47, %v2682_v9  ;;  %v2684_v11 = vpop.eup %2683 }
 0x710   : > { %v1451_v12 = vmul.f32 %v2684_v11, %v1450_v10 }
 0x712   : > { %v3639_v13 = vadd.f32 %v2682_v9, %v1451_v12 }
 0x714   : > { %v1458_v14 = vpack.c.bf16 %v3639_v13, %v3639_v13 }
 0x716   : > { %1492 = vmatmul.mubr.bf16.vlgmr.msra.gmra.mrb[20].mxu0 %v1458_v14  ;;  %2396 = vmatmul.mubr.bf16.vlgmr.msra.gmra.mrb[20].mxu1 %v1458_v14 }
 0x717   : > { %1573 = vmatpush1.bf16.msra.mxu0 %v3341_v17  ;;  %2400 = vmatpush3.bf16.msra.mxu1 %v3362_v25  ;;  %v2160_v17 = vld [vmem:[%s3464_s22 + $0x1e] sm:$0x3f] }
 0x718   : > { %1574 = vmatprep.subr.bf16.mxu0 %v3346_v20  ;;  %2401 = vmatprep.subr.bf16.mxu1 %v3037_v18  ;;  %v1548_v46 = vrot.slane %v2160_v17, 2  ;;  %v1559_v51 = vrot.slane %v2160_v17, 4 }
 0x719   : > { %1604 = vmatprep.mubr.bf16.mxu0 %v3038_v19  ;;  %2415 = vmatprep.mubr.msk.bf16.mxu1 %vm3039_vm2, %v3037_v18 }
 0x71b   : > { %1575 = vmatpush1.bf16.msra.mxu0 %v3351_v21  ;;  %2402 = vmatpush3.bf16.msra.mxu1 %v3372_v28 }
 0x71c   : > { %1576 = vmatprep.subr.bf16.mxu0 %v3354_v22  ;;  %2403 = vmatprep.subr.bf16.mxu1 %v3037_v18 }
 0x71f   : > { %1577 = vmatpush1.bf16.msra.mxu0 %v3357_v23  ;;  %2404 = vmatpush3.bf16.msra.mxu1 %v3378_v30 }
 0x720   : > { %1578 = vmatprep.subr.bf16.mxu0 %v3360_v24  ;;  %2405 = vmatprep.subr.bf16.mxu1 %v3037_v18 }
 0x723   : > { %1579 = vmatpush1.bf16.msra.mxu0 %v3365_v26  ;;  %2406 = vmatpush3.bf16.msra.mxu1 %v3388_v33 }
 0x724   : > { %1580 = vmatprep.subr.bf16.mxu0 %v3369_v27  ;;  %2407 = vmatprep.subr.bf16.mxu1 %v3037_v18 }
 0x727   : > { %1581 = vmatpush1.bf16.msra.mxu0 %v3374_v29  ;;  %2408 = vmatpush3.bf16.msra.mxu1 %v3398_v36 }
 0x728   : > { %1582 = vmatprep.subr.bf16.mxu0 %v3381_v31  ;;  %2409 = vmatprep.subr.bf16.mxu1 %v3037_v18 }
 0x72b   : > { %1583 = vmatpush1.bf16.msra.mxu0 %v3385_v32  ;;  %2410 = vmatpush3.bf16.msra.mxu1 %v3410_v40 }
 0x72c   : > { %1584 = vmatprep.subr.bf16.mxu0 %v3391_v34  ;;  %2411 = vmatprep.subr.bf16.mxu1 %v3037_v18 }
 0x72f   : > { %1585 = vmatpush1.bf16.msra.mxu0 %v3395_v35  ;;  %2412 = vmatpush3.bf16.msra.mxu1 %v3418_v42 }
 0x730   : > { %1586 = vmatprep.subr.bf16.mxu0 %v3401_v37  ;;  %2413 = vmatprep.subr.bf16.mxu1 %v3037_v18 }
 0x733   : > { %1587 = vmatpush1.bf16.msra.mxu0 %v3405_v38  ;;  %2414 = vmatpush3.bf16.msra.mxu1 %v3423_v43 }
 0x734   : > { %1685 = vmatprep.subr.bf16.mxu0 %v3339_v16  ;;  %2419 = vmatprep.subr.bf16.mxu1 %v3037_v18 }
 0x7e9   : > { %v1493_v20 = vpop.f32.mrb[20].mxu0  ;;  %v1534_v21 = vpop.f32.mrb[20].mxu1 }
 0x7ea   : > { %v1540_v22 = vadd.f32 %v2160_v17, %v1493_v20  ;;  %v1495_v23 = vpop.f32.mrb[21].mxu0  ;;  %v2397_v24 = vpop.f32.mrb[21].mxu1  ;;  %v1557_v52 = vadd.f32 %v3467_v60, %v1534_v21  ;;  %v2170_v20 = vld [vmem:[%s3464_s22 + $0x2a] sm:$0x3f] }
 0x7eb   : > { %v1497_v15 = vpop.f32.mrb[22].mxu0  ;;  %v1537_v39 = vpop.f32.mrb[22].mxu1  ;;  %v1550_v47 = vadd.f32 %v1548_v46, %v1495_v23 }
 0x7ec   : > { %v2161_v41 = vmul.f32 -1.442695, %v1540_v22  ;;  %v1498_v44 = vpop.f32.mrb[23].mxu0  ;;  %v2398_v45 = vpop.f32.mrb[23].mxu1 }
 0x7ed   : > { %v2162_v48 = vmul.f32 -1.442695, %v1550_v47  ;;  %v1774_v47 = vrot.slane %v2170_v20, 2 }
 0x7ee   : > { %2685 = vpow2.f32 %v2161_v41 }
 0x7ef   : > { %2687 = vpow2.f32 %v2162_v48 }
 0x7f8   : > { %v2686_v49 = vpop.eup %2685 }
 0x7f9   : > { %v1544_v50 = vadd.f32 1.0, %v2686_v49  ;;  %v2688_v16 = vpop.eup %2687 }
 0x7fa   : > { %v1554_v56 = vadd.f32 1.0, %v2688_v16 }
 0x7fb   : > { %2689 = vrcp.f32 %v1544_v50 }
 0x805   : > { %v2690_v53 = vpop.eup %2689 }
 0x806   : > { %v1558_v54 = vmul.f32 %v2690_v53, %v1557_v52  ;;  %v1785_v52 = vrot.slane %v2170_v20, 4 }
 0x808   : > { %v1561_v55 = vadd.f32 %v1559_v51, %v1558_v54 }
 0x80a   : > { %2691 = vtanh.f32 %v1561_v55 }
 0x80b   : > { %2693 = vrcp.f32 %v1554_v56 }
 0x814   : > { %v2692_v57 = vpop.eup %2691 }
 0x815   : > { %v1563_v58 = vsub.f32 %v3639_v13, %v2692_v57  ;;  %v2694_v59 = vpop.eup %2693 }
 0x817   : > { %v1564_v61 = vmul.f32 %v2694_v59, %v1563_v58 }
 0x819   : > { %v3681_v62 = vadd.f32 %v2692_v57, %v1564_v61 }
 0x81b   : > { %v1571_v63 = vpack.c.bf16 %v3681_v62, %v3681_v62 }
 0x81d   : > { %1605 = vmatmul.mubr.bf16.vlgmr.msra.gmra.mrb[24].mxu0 %v1571_v63  ;;  %2416 = vmatmul.mubr.bf16.vlgmr.msra.gmra.mrb[24].mxu1 %v1571_v63 }
 0x81e   : > { %1686 = vmatpush1.bf16.msra.mxu0 %v2715_v0  ;;  %2420 = vmatpush3.bf16.msra.mxu1 %v3362_v25  ;;  %v2720_v25 = vld [vmem:[#allocation9 + $0x4c] ss:$12 sps:$4 sm:$0xff]  }
 0x81f   : > { %1687 = vmatprep.subr.bf16.mxu0 %v2716_v1  ;;  %2421 = vmatprep.subr.bf16.mxu1 %v3037_v18  ;;  %v2721_v0 = vld [vmem:[#allocation13] sm:$0xff] (!%p2173_p13)   ;;  %v3040_v1 = vmov (!%p2173_p13), 0.0  }
 0x820   : > { %1717 = vmatprep.mubr.bf16.mxu0 %v3038_v19  ;;  %2435 = vmatprep.mubr.msk.bf16.mxu1 %vm3039_vm2, %v3037_v18  ;;  %v2165_v19 = vld [vmem:[%s3464_s22 + $0x24] sm:$0x3f] }
 0x822   : > { %1688 = vmatpush1.bf16.msra.mxu0 %v2717_v2  ;;  %2422 = vmatpush3.bf16.msra.mxu1 %v3372_v28  ;;  %v2723_v2 = vld [vmem:[#allocation13 + $0x10] sm:$0xff] (!%p2173_p13)  }
 0x823   : > { %1689 = vmatprep.subr.bf16.mxu0 %v2718_v3  ;;  %2423 = vmatprep.subr.bf16.mxu1 %v3037_v18  ;;  %v2724_v3 = vld [vmem:[#allocation13 + $0x18] sm:$0xff] (!%p2173_p13)  }
 0x826   : > { %1690 = vmatpush1.bf16.msra.mxu0 %v2719_v4  ;;  %2424 = vmatpush3.bf16.msra.mxu1 %v3378_v30  ;;  %v2725_v4 = vld [vmem:[#allocation13 + $0x20] sm:$0xff] (!%p2173_p13)  }
 0x827   : > { %1691 = vmatprep.subr.bf16.mxu0 %v2720_v25  ;;  %2425 = vmatprep.subr.bf16.mxu1 %v3037_v18  ;;  %v2726_v25 = vld [vmem:[#allocation13 + $0x28] sm:$0xff] (!%p2173_p13)  }
 0x82a   : > { %1692 = vmatpush1.bf16.msra.mxu0 %v3365_v26  ;;  %2426 = vmatpush3.bf16.msra.mxu1 %v3388_v33 }
 0x82b   : > { %1693 = vmatprep.subr.bf16.mxu0 %v3369_v27  ;;  %2427 = vmatprep.subr.bf16.mxu1 %v3037_v18 }
 0x82e   : > { %1694 = vmatpush1.bf16.msra.mxu0 %v3374_v29  ;;  %2428 = vmatpush3.bf16.msra.mxu1 %v3398_v36  ;;  %v1661_v36 = vrot.slane %v2165_v19, 2 }
 0x82f   : > { %1695 = vmatprep.subr.bf16.mxu0 %v3381_v31  ;;  %2429 = vmatprep.subr.bf16.mxu1 %v3037_v18 }
 0x832   : > { %1696 = vmatpush1.bf16.msra.mxu0 %v3385_v32  ;;  %2430 = vmatpush3.bf16.msra.mxu1 %v3410_v40 }
 0x833   : > { %1697 = vmatprep.subr.bf16.mxu0 %v3391_v34  ;;  %2431 = vmatprep.subr.bf16.mxu1 %v3037_v18 }
 0x836   : > { %1698 = vmatpush1.bf16.msra.mxu0 %v3395_v35  ;;  %2432 = vmatpush3.bf16.msra.mxu1 %v3418_v42 }
 0x837   : > { %1699 = vmatprep.subr.bf16.mxu0 %v3401_v37  ;;  %2433 = vmatprep.subr.bf16.mxu1 %v3037_v18 }
 0x83a   : > { %1700 = vmatpush1.bf16.msra.mxu0 %v3405_v38  ;;  %2434 = vmatpush3.bf16.msra.mxu1 %v3423_v43  ;;  %v1672_v43 = vrot.slane %v2165_v19, 4 }
 0x83b   : > { %2439 = vmatprep.subr.bf16.mxu0 (!%p2173_p13), %v3040_v1 }
 0x8f0   : > { %v1606_v26 = vpop.f32.mrb[24].mxu0  ;;  %v1647_v27 = vpop.f32.mrb[24].mxu1 }
 0x8f1   : > { %v1653_v28 = vadd.f32 %v2165_v19, %v1606_v26  ;;  %v1608_v29 = vpop.f32.mrb[25].mxu0  ;;  %v2417_v30 = vpop.f32.mrb[25].mxu1  ;;  %v1670_v5 = vadd.f32 %v3467_v60, %v1647_v27  ;;  %v2727_v19 = vld [vmem:[#allocation13 + $0x30] sm:$0xff] (!%p2173_p13)   ;;  %v2728_v26 = vld [vmem:[#allocation13 + $0x38] sm:$0xff] (!%p2173_p13)  }
 0x8f2   : > { %v1610_v31 = vpop.f32.mrb[26].mxu0  ;;  %v1650_v32 = vpop.f32.mrb[26].mxu1  ;;  %v1663_v37 = vadd.f32 %v1661_v36, %v1608_v29 }
 0x8f3   : > { %v2166_v33 = vmul.f32 -1.442695, %v1653_v28  ;;  %v1611_v34 = vpop.f32.mrb[27].mxu0  ;;  %v2418_v35 = vpop.f32.mrb[27].mxu1  ;;  %v2174_v28 = vld [vmem:[#allocation15] ss:$0 sm:$0xff] (!%p2173_p13) }
 0x8f4   : > { %v2167_v40 = vmul.f32 -1.442695, %v1663_v37 }
 0x8f5   : > { %2695 = vpow2.f32 %v2166_v33 }
 0x8f6   : > { %2697 = vpow2.f32 %v2167_v40 }
 0x8ff   : > { %v2696_v18 = vpop.eup %2695 }
 0x900   : > { %v1657_v42 = vadd.f32 1.0, %v2696_v18  ;;  %v2698_v38 = vpop.eup %2697 }
 0x901   : > { %v1667_v9 = vadd.f32 1.0, %v2698_v38 }
 0x902   : > { %2699 = vrcp.f32 %v1657_v42 }
 0x90c   : > { %v2700_v6 = vpop.eup %2699 }
 0x90d   : > { %v1671_v7 = vmul.f32 %v2700_v6, %v1670_v5 }
 0x90f   : > { %v1674_v8 = vadd.f32 %v1672_v43, %v1671_v7 }
 0x911   : > { %2701 = vtanh.f32 %v1674_v8 }
 0x912   : > { %2703 = vrcp.f32 %v1667_v9 }
 0x91b   : > { %v2702_v10 = vpop.eup %2701 }
 0x91c   : > { %v1676_v11 = vsub.f32 %v3681_v62, %v2702_v10  ;;  %v2704_v12 = vpop.eup %2703 }
 0x91e   : > { %v1677_v13 = vmul.f32 %v2704_v12, %v1676_v11 }
 0x920   : > { %v1678_v14 = vadd.f32 %v2702_v10, %v1677_v13 }
 0x922   : > { %v1684_v17 = vpack.c.bf16 %v1678_v14, %v1678_v14 }
 0x924   : > { %1718 = vmatmul.mubr.bf16.vlgmr.msra.gmra.mrb[28].mxu0 %v1684_v17  ;;  %2436 = vmatmul.mubr.bf16.vlgmr.msra.gmra.mrb[28].mxu1 %v1684_v17 }
 0x925   : > { %2440 = vmatpush3.bf16.msra.mxu0 (!%p2173_p13), %v2721_v0  ;;  %2455 = vmatprep.mubr.msk.bf16.mxu0 (!%p2173_p13), %vm3041_vm3, %v3040_v1 }
 0x926   : > { %2441 = vmatprep.subr.bf16.mxu0 (!%p2173_p13), %v3040_v1 }
 0x9f7   : > { %v1719_v21 = vpop.f32.mrb[28].mxu0  ;;  %v1760_v22 = vpop.f32.mrb[28].mxu1 }
 0x9f8   : > { %v1766_v23 = vadd.f32 %v2170_v20, %v1719_v21  ;;  %v1721_v24 = vpop.f32.mrb[29].mxu0  ;;  %v2437_v15 = vpop.f32.mrb[29].mxu1  ;;  %v1783_v53 = vadd.f32 %v3467_v60, %v1760_v22  ;;  %v2722_v60 = vld [vmem:[#allocation13 + $0x8] sm:$0xff] (!%p2173_p13)  }
 0x9f9   : > { %v1723_v39 = vpop.f32.mrb[30].mxu0  ;;  %v1763_v41 = vpop.f32.mrb[30].mxu1  ;;  %v1776_v48 = vadd.f32 %v1774_v47, %v1721_v24  ;;  %2442 = vmatpush3.bf16.msra.mxu0 (!%p2173_p13), %v2722_v60 }
 0x9fa   : > { %v2171_v44 = vmul.f32 -1.442695, %v1766_v23  ;;  %v1724_v45 = vpop.f32.mrb[31].mxu0  ;;  %v2438_v46 = vpop.f32.mrb[31].mxu1  ;;  %2443 = vmatprep.subr.bf16.mxu0 (!%p2173_p13), %v3040_v1 }
 0x9fb   : > { %v2172_v49 = vmul.f32 -1.442695, %v1776_v48 }
 0x9fc   : > { %2705 = vpow2.f32 %v2171_v44 }
 0x9fd   : > { %2707 = vpow2.f32 %v2172_v49  ;;  %2444 = vmatpush3.bf16.msra.mxu0 (!%p2173_p13), %v2723_v2 }
 0x9fe   : > { %2445 = vmatprep.subr.bf16.mxu0 (!%p2173_p13), %v3040_v1 }
 0xa01   : > { %2446 = vmatpush3.bf16.msra.mxu0 (!%p2173_p13), %v2724_v3 }
 0xa02   : > { %2447 = vmatprep.subr.bf16.mxu0 (!%p2173_p13), %v3040_v1 }
 0xa05   : > { %2448 = vmatpush3.bf16.msra.mxu0 (!%p2173_p13), %v2725_v4 }
 0xa06   : > { %v2706_v50 = vpop.eup %2705  ;;  %2449 = vmatprep.subr.bf16.mxu0 (!%p2173_p13), %v3040_v1 }
 0xa07   : > { %v1770_v16 = vadd.f32 1.0, %v2706_v50  ;;  %v2708_v51 = vpop.eup %2707 }
 0xa08   : > { %v1780_v57 = vadd.f32 1.0, %v2708_v51 }
 0xa09   : > { %2709 = vrcp.f32 %v1770_v16  ;;  %2450 = vmatpush3.bf16.msra.mxu0 (!%p2173_p13), %v2726_v25 }
 0xa0a   : > { %2451 = vmatprep.subr.bf16.mxu0 (!%p2173_p13), %v3040_v1 }
 0xa0d   : > { %2452 = vmatpush3.bf16.msra.mxu0 (!%p2173_p13), %v2727_v19 }
 0xa0e   : > { %2453 = vmatprep.subr.bf16.mxu0 (!%p2173_p13), %v3040_v1 }
 0xa11   : > { %2454 = vmatpush3.bf16.msra.mxu0 (!%p2173_p13), %v2728_v26 }
 0xa13   : > { %v2710_v54 = vpop.eup %2709 }
 0xa14   : > { %v1784_v55 = vmul.f32 %v2710_v54, %v1783_v53 }
 0xa16   : > { %v1787_v56 = vadd.f32 %v1785_v52, %v1784_v55 }
 0xa18   : > { %2711 = vtanh.f32 %v1787_v56 }
 0xa19   : > { %2713 = vrcp.f32 %v1780_v57 }
 0xa22   : > { %v2712_v58 = vpop.eup %2711 }
 0xa23   : > { %v1789_v59 = vsub.f32 %v1678_v14, %v2712_v58  ;;  %v2714_v61 = vpop.eup %2713  ;;  %1796 = sbr.rel (%p2173_p13) target bundleno = 2818 (0xb02), region = 92 }
 0xa25   : > { %v1790_v62 = vmul.f32 %v2714_v61, %v1789_v59 }
 0xa27   : > { %v1791_v63 = vadd.f32 %v2712_v58, %v1790_v62 }
 0xa29   : > { %1792 = vst [vmem:[#allocation2] sm:$0x3] %v1791_v63  ;;  %v1797_v27 = vpack.c.bf16 (!%p2173_p13), %v1791_v63, %v1791_v63 }
 0xa2b   : > { %2456 = vmatmul.mubr.bf16.vlgmr.msra.gmra.mrb[0].mxu0 %v1797_v27 }
 0xafe   : > { %v1903_v29 = vpop.f32.mrb[0].mxu0 }
 0xaff   : > { %v1904_v30 = vadd.f32 %v2174_v28, %v1903_v29  ;;  %v2457_v31 = vpop.f32.mrb[1].mxu0 }
 0xb00   : > { %v1906_v32 = vpop.f32.mrb[2].mxu0 }
 0xb01   : > { %1909 = vst [vmem:[#allocation16] sm:$0x3] %v1904_v30  ;;  %v2458_v33 = vpop.f32.mrb[3].mxu0 }
 0xb02 PF: > { %s3793_s26 = sadd.s32 4294967295, %s3016_s28   ;;  %s3042_s10 = smov [#allocation16]  }
 0xb03   : > { %p3720_p0 = scmp.eq.s32.totalorder %s3793_s26, 1  ;;  %s1919_s20 = sshll.u32 %s3042_s10, 4  ;;  %s1920_s20 = int_to_ptr.vmem [resolvable:$true] %s1919_s20 }
 0xb04   : > { %s2927_s12 = scalar_lea.vmem %s1920_s20, 32  ;;  %p2934_p2 = scmp.lt.s32.totalorder %s1920_s20, %s1920_s20 }
 0xb05   : > { %p2928_p5 = scmp.ne.s32.totalorder %s1920_s20, %s2927_s12  ;;  %p2935_p4 = scmp.lt.s32.totalorder %s2927_s12, %s2927_s12 }
 0xb07   : > { %p2929_p8 = pnand %p2928_p5, %p3720_p0  ;;  %p2936_p6 = por %p2935_p4, %p2934_p2 }
 0xb09   : > { %p2930_p9 = pneg %p2929_p8 }
 0xb0b   : > { %p2937_p10 = pnand %p2936_p6, %p2930_p9 }
 0xb0d   : > { %2940 = shalt.err (!%p2937_p10)
}
 0xb0e   : > { %s2941_s8 = scalar_lea.hbm %s3767_s7, 32 }
 0xb0f   : > { %p2942_p7 = scmp.ne.s32.totalorder %s3767_s7, %s2941_s8  ;;  %p2947_p11 = scmp.lt.u32.totalorder %s2941_s8, %s3767_s7 }
 0xb11   : > { %p2943_p1 = pnand %p2942_p7, %p3720_p0 }
 0xb13   : > { %p2944_p3 = pneg %p2943_p1 }
 0xb15   : > { %p2949_p12 = pnand %p2947_p11, %p2944_p3 }
 0xb17   : > { %2952 = shalt.err (!%p2949_p12)
}
 0xb18   : > { %2486 = dma.vmem_to_hbm [thread:$0]  (%p3720_p0), %s1920_s20, 32, %s3767_s7, [#allocation6]  }
 0xb19   : > { %2994 = dma.done.wait (%p3720_p0), [#allocation6], 32  }
 0xb1a   : > { %2996 = vsyncadd (%p3720_p0), [#allocation6], 4294967264 }
 0xb1b PF: > { %s24_s28 = sadd.s32 1, %s3016_s28   ;;  %s3795_s24 = smov %s3004_s25 }
 0xb1c   : > { %p21_p13 = scmp.ge.s32.totalorder %s24_s28, 4   ;;  %s3750_s25 = smov 0  }
 0xb1d   : > { %s3796_s26 = smov %s3012_s27  ;;  %s3797_s27 = smov %s3799_s21 }
 0xb1e   :  { %23 = sbr.rel (!%p21_p13) target bundleno = 11 (0xb), region = 135 }
 0xb25   :  { %1932 = vsyncpa [#allocation5], 1 }
 0xb26   :  { %1934 = vsyncpa [#allocation5 + $0x1], 1 }
 0xb27   :  { %1935 = vsyncpa [#allocation8], 1 }
 0xb28   :  { %1936 = vsyncpa [#allocation11], 1 }
 0xb29   :  { %1937 = vsyncpa [#allocation14], 1 }
 0xb2a   :  { %1938 = vsyncpa [#allocation6], 1 }
 0xb2b   :  { %1940 = vsyncpa [#allocation6 + $0x1], 1 }

</bundles_post_ra>
